<compile_context>
chip_gen: v7x
topology: tpu7x:2x2x1
jax: 0.10.0
libtpu: 0.0.40
codegen_flags: <defaults>
</compile_context>

<pallas_src>
import math

import jax
import jax.numpy as jnp
from jax.experimental import pallas as pl
from jax.experimental.pallas import tpu as pltpu


def _pick_tile_n(N, cap=256):
    """Largest divisor of N that is <= cap, preferring >= 2 grid steps (v7x: 2 TCs)."""
    best = None
    for cand in range(1, min(cap, N) + 1):
        if N % cand == 0 and N // cand >= 2:
            best = cand
    return best if best is not None else N


def _make_kernel(num_heads):
    def kernel(x_ref, pe_ref, w_in_t_ref, b_in_ref, wt_fused_ref, b_fused_ref, o_ref):
        TN, F, C = x_ref.shape
        H = num_heads
        hd = C // H
        M = TN * F

        x = x_ref[...]                                     # (TN, F, C) f32 residual input
        # positional encoding feeds only the attention branch
        h0 = (x + pe_ref[...][None, :, :]).reshape(M, C)   # leading-dim merge -> tall 2-D

        # ---- LayerNorm statistics (f32; affine is folded into w_in_t/b_in) ----
        mean = jnp.mean(h0, axis=-1, keepdims=True)
        var = jnp.mean(jnp.square(h0 - mean), axis=-1, keepdims=True)
        hn = (h0 - mean) * jax.lax.rsqrt(var + 1e-5)

        # ---- fused QKV projection: one (M,C)x(C,3C) MXU matmul, bf16 operands ----
        # (LayerNorm gamma/beta and the 1/sqrt(hd) q-scale are pre-folded in.)
        qkv = jnp.dot(hn.astype(jnp.bfloat16), w_in_t_ref[...],
                      preferred_element_type=jnp.float32) + b_in_ref[...]
        qkv_bf = qkv.astype(jnp.bfloat16)                  # single cast, sliced per head

        # ---- attention, with the fused (out_proj o proj) applied per head ----
        # Each head's output flows straight through its (hd, C) slab of the
        # fused projection weight (leading-axis ref index, no lane slicing of
        # weights) and is accumulated in f32 -> no per-head concatenate.
        h_acc = jnp.zeros((M, C), jnp.float32)
        for hh in range(H):                                # static unroll, H is small
            lo = hh * hd
            qh = qkv_bf[:, lo:lo + hd].reshape(TN, F, hd)
            kh = qkv_bf[:, C + lo:C + lo + hd].reshape(TN, F, hd)
            vh = qkv_bf[:, 2 * C + lo:2 * C + lo + hd].reshape(TN, F, hd)

            s = jnp.einsum('nqd,nkd->nqk', qh, kh,
                           preferred_element_type=jnp.float32)   # already scaled
            s = s - jnp.max(s, axis=-1, keepdims=True)           # f32 softmax stats
            p = jnp.exp(s)
            p = p * pl.reciprocal(jnp.sum(p, axis=-1, keepdims=True), approx=True)

            oh = jnp.einsum('nqk,nkd->nqd', p.astype(jnp.bfloat16), vh,
                            preferred_element_type=jnp.float32)
            h_acc = h_acc + jnp.dot(oh.reshape(M, hd).astype(jnp.bfloat16),
                                    wt_fused_ref[hh],
                                    preferred_element_type=jnp.float32)

        h_proj = h_acc + b_fused_ref[...]                  # fused bias (b_out @ Wp^T + b_proj)

        # residual uses x WITHOUT the positional encoding (matches PyTorch)
        o_ref[...] = (x + h_proj.reshape(TN, F, C)).astype(o_ref.dtype)

    return kernel


def temporal_attention_pallas(x_bhwcf, params, num_heads, tile_n=None):
    b, h, w, c, f = x_bhwcf.shape
    assert c % num_heads == 0, "channels must be divisible by num_heads"
    hd = c // num_heads
    N = b * h * w

    if tile_n is None:
        tile_n = _pick_tile_n(N)
    assert N % tile_n == 0

    # (b,h,w,c,f) -> (N, f, c).  The (c,f)->(f,c) relayout stays in XLA (see header).
    x_seq = jnp.transpose(x_bhwcf.reshape(N, c, f), (0, 2, 1)).astype(jnp.float32)

    # ---- weight prep (all host/XLA-side, tiny) ----
    pe = params['pe'][:f, :].astype(jnp.float32)                       # (f, c)

    # Fold LayerNorm affine into the in_proj weight/bias:
    #   (z*g + beta) @ W^T + b = z @ (g[:,None] * W^T) + (beta @ W^T + b)
    w_in_t = params['w_in'].T.astype(jnp.float32)                      # (c, 3c)
    g = params['ln_g'].astype(jnp.float32).reshape(c, 1)
    beta = params['ln_b'].astype(jnp.float32)                          # (1, c)
    w_in_t = g * w_in_t
    b_in = (beta @ params['w_in'].T.astype(jnp.float32)
            + params['b_in'].astype(jnp.float32))                      # (1, 3c)
    # Fold the attention scale into the q columns (as nn.MultiheadAttention does).
    scale = 1.0 / math.sqrt(hd)
    qscale = jnp.concatenate(
        [jnp.full((1, c), scale, jnp.float32), jnp.ones((1, 2 * c), jnp.float32)], axis=1)
    w_in_t = (w_in_t * qscale).astype(jnp.bfloat16)
    b_in = (b_in * qscale).astype(jnp.float32)

    # Algebraic fusion of MHA out_proj and the final Linear:
    #   y = (A @ Wo^T + bo) @ Wp^T + bp = A @ (Wp @ Wo)^T + (bo @ Wp^T + bp)
    wt_fused = (params['w_proj'] @ params['w_out']).T                  # (c_in, c_out)
    wt_fused_heads = wt_fused.reshape(num_heads, hd, c).astype(jnp.bfloat16)
    b_fused = (params['b_out'] @ params['w_proj'].T
               + params['b_proj']).astype(jnp.float32)                 # (1, c)

    xmap = lambda i: (i, 0, 0)
    w2 = lambda i: (0, 0)
    w3 = lambda i: (0, 0, 0)

    out = pl.pallas_call(
        _make_kernel(num_heads),
        out_shape=jax.ShapeDtypeStruct((N, f, c), jnp.float32),
        grid=(N // tile_n,),
        in_specs=[
            pl.BlockSpec((tile_n, f, c), xmap),          # x
            pl.BlockSpec((f, c), w2),                    # pe
            pl.BlockSpec((c, 3 * c), w2),                # in_proj weight^T (gamma+scale folded, bf16)
            pl.BlockSpec((1, 3 * c), w2),                # in_proj bias (beta+scale folded)
            pl.BlockSpec((num_heads, hd, c), w3),        # fused projection weight^T (bf16)
            pl.BlockSpec((1, c), w2),                    # fused projection bias
        ],
        out_specs=pl.BlockSpec((tile_n, f, c), xmap),
        compiler_params=pltpu.CompilerParams(dimension_semantics=("parallel",)),
    )(x_seq, pe, w_in_t, b_in, wt_fused_heads, b_fused)

    # (N, f, c) -> (N, c, f) -> (b, h, w, c, f)
    return jnp.transpose(out, (0, 2, 1)).reshape(b, h, w, c, f)


def generate_positional_encoding(max_len, channels):
    pos = jnp.arange(max_len, dtype=jnp.float32)[:, None]
    div = jnp.exp(jnp.arange(0, channels, 2, dtype=jnp.float32)
                  * (-math.log(10000.0) / channels))
    pe = jnp.zeros((max_len, channels), jnp.float32)
    pe = pe.at[:, 0::2].set(jnp.sin(pos * div))
    pe = pe.at[:, 1::2].set(jnp.cos(pos * div))
    return pe


def make_params(channels, max_len, key):
    ks = jax.random.split(key, 6)
    std = 1.0 / math.sqrt(channels)
    return {
        'pe': generate_positional_encoding(max_len, channels),
        'ln_g': jnp.ones((1, channels), jnp.float32),
        'ln_b': jnp.zeros((1, channels), jnp.float32),
        'w_in': jax.random.normal(ks[0], (3 * channels, channels), jnp.float32) * std,
        'b_in': jax.random.normal(ks[1], (1, 3 * channels), jnp.float32) * 0.02,
        'w_out': jax.random.normal(ks[2], (channels, channels), jnp.float32) * std,
        'b_out': jax.random.normal(ks[3], (1, channels), jnp.float32) * 0.02,
        'w_proj': jax.random.normal(ks[4], (channels, channels), jnp.float32) * std,
        'b_proj': jax.random.normal(ks[5], (1, channels), jnp.float32) * 0.02,
    }


def temporal_attention_ref(x_bhwcf, params, num_heads):
    """Pure-JAX float32 reference mirroring the PyTorch module (unfused weights)."""
    b, h, w, c, f = x_bhwcf.shape
    N = b * h * w
    x = jnp.transpose(x_bhwcf.reshape(N, c, f), (0, 2, 1))       # (N, f, c)
    pe = params['pe'][:f, :]
    h0 = x + pe[None]
    mean = jnp.mean(h0, -1, keepdims=True)
    var = jnp.mean((h0 - mean) ** 2, -1, keepdims=True)
    hn = (h0 - mean) / jnp.sqrt(var + 1e-5) * params['ln_g'][0] + params['ln_b'][0]
    qkv = hn @ params['w_in'].T + params['b_in'][0]
    q, k, v = qkv[..., :c], qkv[..., c:2 * c], qkv[..., 2 * c:]
    hd = c // num_heads
    qh = q.reshape(N, f, num_heads, hd).transpose(0, 2, 1, 3)
    kh = k.reshape(N, f, num_heads, hd).transpose(0, 2, 1, 3)
    vh = v.reshape(N, f, num_heads, hd).transpose(0, 2, 1, 3)
    s = jnp.einsum('nhqd,nhkd->nhqk', qh, kh) / math.sqrt(hd)
    p = jax.nn.softmax(s, axis=-1)
    o = jnp.einsum('nhqk,nhkd->nhqd', p, vh).transpose(0, 2, 1, 3).reshape(N, f, c)
    o = o @ params['w_out'].T + params['b_out'][0]
    o = o @ params['w_proj'].T + params['b_proj'][0]
    y = x + o
    return jnp.transpose(y, (0, 2, 1)).reshape(b, h, w, c, f)


if __name__ == "__main__":
    channels, num_heads, max_len = 32, 4, 16
    b, h, w, f = 2, 4, 4, 8                       # N = b*h*w = 32 -> tile_n=16, grid=(2,)

    key = jax.random.PRNGKey(0)
    kx, kp = jax.random.split(key)
    x = jax.random.normal(kx, (b, h, w, channels, f), jnp.float32)
    params = make_params(channels, max_len, kp)

    out = temporal_attention_pallas(x, params, num_heads)
    out = jax.block_until_ready(out)

    ref = temporal_attention_ref(x, params, num_heads)
    assert out.shape == (b, h, w, channels, f)
    # Kernel uses bf16 MXU operands (equivalent of the module's fp16 autocast)
    # with gamma/scale folded into the bf16 weights; the reference is pure f32,
    # so allow for half-precision matmul rounding while still catching any real
    # indexing / fusion error.
    err = jnp.abs(out - ref)
    assert jnp.allclose(out, ref, rtol=1e-1, atol=1e-1), float(jnp.max(err))
    assert float(jnp.mean(err)) < 4e-2, float(jnp.mean(err))

    print("KERNEL_OK")
</pallas_src>

<mosaic_0001>
module attributes {stable_mosaic.version = 11 : i64} {
  func.func @kernel(%arg0: i32, %arg1: memref<16x8x32xf32, #tpu.memory_space<vmem>>, %arg2: memref<8x32xf32, #tpu.memory_space<vmem>>, %arg3: memref<32x96xbf16, #tpu.memory_space<vmem>>, %arg4: memref<1x96xf32, #tpu.memory_space<vmem>>, %arg5: memref<4x8x32xbf16, #tpu.memory_space<vmem>>, %arg6: memref<1x32xf32, #tpu.memory_space<vmem>>, %arg7: memref<16x8x32xf32, #tpu.memory_space<vmem>>) attributes {dimension_semantics = [#tpu.dimension_semantics<parallel>], iteration_bounds = array<i64: 2>, scalar_prefetch = 0 : i64, scratch_operands = 0 : i64, tpu.core_type = #tpu.core_type<tc>, window_params = [{transform_indices = @transform_0, window_bounds = array<i64: 16, 8, 32>}, {pipeline_mode = #tpu.pipeline_mode<synchronous>, transform_indices = @transform_1, window_bounds = array<i64: 8, 32>}, {pipeline_mode = #tpu.pipeline_mode<synchronous>, transform_indices = @transform_2, window_bounds = array<i64: 32, 96>}, {pipeline_mode = #tpu.pipeline_mode<synchronous>, transform_indices = @transform_3, window_bounds = array<i64: 1, 96>}, {pipeline_mode = #tpu.pipeline_mode<synchronous>, transform_indices = @transform_4, window_bounds = array<i64: 4, 8, 32>}, {pipeline_mode = #tpu.pipeline_mode<synchronous>, transform_indices = @transform_5, window_bounds = array<i64: 1, 32>}, {transform_indices = @transform_6, window_bounds = array<i64: 16, 8, 32>}]} {
    %c0 = arith.constant 0 : index
    %c0_0 = arith.constant 0 : index
    %c0_1 = arith.constant 0 : index
    %0 = vector.load %arg1[%c0, %c0_0, %c0_1] : memref<16x8x32xf32, #tpu.memory_space<vmem>>, vector<16x8x32xf32>
    %c0_2 = arith.constant 0 : index
    %c0_3 = arith.constant 0 : index
    %1 = vector.load %arg2[%c0_2, %c0_3] : memref<8x32xf32, #tpu.memory_space<vmem>>, vector<8x32xf32>
    %2 = vector.shape_cast %1 : vector<8x32xf32> to vector<1x8x32xf32>
    %3 = vector.broadcast %2 : vector<1x8x32xf32> to vector<16x8x32xf32>
    %4 = arith.addf %0, %3 : vector<16x8x32xf32>
    %5 = vector.shape_cast %4 : vector<16x8x32xf32> to vector<128x32xf32>
    %cst = arith.constant dense<0.000000e+00> : vector<128xf32>
    %6 = vector.multi_reduction <add>, %5, %cst [1] : vector<128x32xf32> to vector<128xf32>
    %7 = vector.shape_cast %6 : vector<128xf32> to vector<128x1xf32>
    %cst_4 = arith.constant 3.200000e+01 : f32
    %8 = vector.broadcast %cst_4 : f32 to vector<128x1xf32>
    %9 = arith.divf %7, %8 : vector<128x1xf32>
    %10 = vector.broadcast %9 : vector<128x1xf32> to vector<128x32xf32>
    %11 = arith.subf %5, %10 : vector<128x32xf32>
    %12 = arith.mulf %11, %11 : vector<128x32xf32>
    %cst_5 = arith.constant dense<0.000000e+00> : vector<128xf32>
    %13 = vector.multi_reduction <add>, %12, %cst_5 [1] : vector<128x32xf32> to vector<128xf32>
    %14 = vector.shape_cast %13 : vector<128xf32> to vector<128x1xf32>
    %cst_6 = arith.constant 3.200000e+01 : f32
    %15 = vector.broadcast %cst_6 : f32 to vector<128x1xf32>
    %16 = arith.divf %14, %15 : vector<128x1xf32>
    %17 = vector.broadcast %9 : vector<128x1xf32> to vector<128x32xf32>
    %18 = arith.subf %5, %17 : vector<128x32xf32>
    %cst_7 = arith.constant 9.99999974E-6 : f32
    %19 = vector.broadcast %cst_7 : f32 to vector<128x1xf32>
    %20 = arith.addf %16, %19 : vector<128x1xf32>
    %21 = math.rsqrt %20 : vector<128x1xf32>
    %22 = vector.broadcast %21 : vector<128x1xf32> to vector<128x32xf32>
    %23 = arith.mulf %18, %22 : vector<128x32xf32>
    %24 = arith.truncf %23 : vector<128x32xf32> to vector<128x32xbf16>
    %c0_8 = arith.constant 0 : index
    %c0_9 = arith.constant 0 : index
    %25 = vector.load %arg3[%c0_8, %c0_9] : memref<32x96xbf16, #tpu.memory_space<vmem>>, vector<32x96xbf16>
    %cst_10 = arith.constant dense<0.000000e+00> : vector<128x96xf32>
    %26 = tpu.matmul %24, %25, %cst_10 {dimension_numbers = #tpu.dot_dimension_numbers<[1], [0], [0], [1], [0, 0, 1, 1], [], []>} : vector<128x32xbf16>, vector<32x96xbf16>, vector<128x96xf32> -> vector<128x96xf32>
    %c0_11 = arith.constant 0 : index
    %c0_12 = arith.constant 0 : index
    %27 = vector.load %arg4[%c0_11, %c0_12] : memref<1x96xf32, #tpu.memory_space<vmem>>, vector<1x96xf32>
    %28 = vector.broadcast %27 : vector<1x96xf32> to vector<128x96xf32>
    %29 = arith.addf %26, %28 : vector<128x96xf32>
    %30 = arith.truncf %29 : vector<128x96xf32> to vector<128x96xbf16>
    %cst_13 = arith.constant 0.000000e+00 : f32
    %31 = vector.broadcast %cst_13 : f32 to vector<128x32xf32>
    %32 = vector.extract_strided_slice %30 {offsets = [0, 0], sizes = [128, 8], strides = [1, 1]} : vector<128x96xbf16> to vector<128x8xbf16>
    %33 = vector.shape_cast %32 : vector<128x8xbf16> to vector<16x8x8xbf16>
    %34 = vector.extract_strided_slice %30 {offsets = [0, 32], sizes = [128, 8], strides = [1, 1]} : vector<128x96xbf16> to vector<128x8xbf16>
    %35 = vector.shape_cast %34 : vector<128x8xbf16> to vector<16x8x8xbf16>
    %36 = vector.extract_strided_slice %30 {offsets = [0, 64], sizes = [128, 8], strides = [1, 1]} : vector<128x96xbf16> to vector<128x8xbf16>
    %37 = vector.shape_cast %36 : vector<128x8xbf16> to vector<16x8x8xbf16>
    "tpu.trace_start"() <{level = 10 : i32, message = "nqd,nkd->nqk"}> : () -> ()
    %cst_14 = arith.constant dense<0.000000e+00> : vector<16x8x8xf32>
    %38 = tpu.matmul %33, %35, %cst_14 {dimension_numbers = #tpu.dot_dimension_numbers<[2], [2], [1], [1], [0, 0, 0, 1, 1, 1], [0], [0]>} : vector<16x8x8xbf16>, vector<16x8x8xbf16>, vector<16x8x8xf32> -> vector<16x8x8xf32>
    "tpu.trace_stop"() : () -> ()
    %cst_15 = arith.constant dense<0xFF800000> : vector<16x8xf32>
    %39 = vector.multi_reduction <maximumf>, %38, %cst_15 [2] : vector<16x8x8xf32> to vector<16x8xf32>
    %40 = vector.shape_cast %39 : vector<16x8xf32> to vector<16x8x1xf32>
    %41 = vector.broadcast %40 : vector<16x8x1xf32> to vector<16x8x8xf32>
    %42 = arith.subf %38, %41 : vector<16x8x8xf32>
    %43 = math.exp %42 : vector<16x8x8xf32>
    %cst_16 = arith.constant dense<0.000000e+00> : vector<16x8xf32>
    %44 = vector.multi_reduction <add>, %43, %cst_16 [2] : vector<16x8x8xf32> to vector<16x8xf32>
    %45 = vector.shape_cast %44 : vector<16x8xf32> to vector<16x8x1xf32>
    %46 = tpu.reciprocal %45 {approx = true} : vector<16x8x1xf32> -> vector<16x8x1xf32>
    %47 = vector.broadcast %46 : vector<16x8x1xf32> to vector<16x8x8xf32>
    %48 = arith.mulf %43, %47 : vector<16x8x8xf32>
    %49 = arith.truncf %48 : vector<16x8x8xf32> to vector<16x8x8xbf16>
    "tpu.trace_start"() <{level = 10 : i32, message = "nqk,nkd->nqd"}> : () -> ()
    %cst_17 = arith.constant dense<0.000000e+00> : vector<16x8x8xf32>
    %50 = tpu.matmul %49, %37, %cst_17 {dimension_numbers = #tpu.dot_dimension_numbers<[2], [1], [1], [2], [0, 0, 0, 1, 1, 2], [0], [0]>} : vector<16x8x8xbf16>, vector<16x8x8xbf16>, vector<16x8x8xf32> -> vector<16x8x8xf32>
    "tpu.trace_stop"() : () -> ()
    %51 = vector.shape_cast %50 : vector<16x8x8xf32> to vector<128x8xf32>
    %52 = arith.truncf %51 : vector<128x8xf32> to vector<128x8xbf16>
    %c0_18 = arith.constant 0 : index
    %c0_19 = arith.constant 0 : index
    %c0_20 = arith.constant 0 : index
    %53 = vector.load %arg5[%c0_18, %c0_19, %c0_20] : memref<4x8x32xbf16, #tpu.memory_space<vmem>>, vector<1x8x32xbf16>
    %54 = vector.shape_cast %53 : vector<1x8x32xbf16> to vector<8x32xbf16>
    %cst_21 = arith.constant dense<0.000000e+00> : vector<128x32xf32>
    %55 = tpu.matmul %52, %54, %cst_21 {dimension_numbers = #tpu.dot_dimension_numbers<[1], [0], [0], [1], [0, 0, 1, 1], [], []>} : vector<128x8xbf16>, vector<8x32xbf16>, vector<128x32xf32> -> vector<128x32xf32>
    %56 = arith.addf %31, %55 : vector<128x32xf32>
    %57 = vector.extract_strided_slice %30 {offsets = [0, 8], sizes = [128, 8], strides = [1, 1]} : vector<128x96xbf16> to vector<128x8xbf16>
    %58 = vector.shape_cast %57 : vector<128x8xbf16> to vector<16x8x8xbf16>
    %59 = vector.extract_strided_slice %30 {offsets = [0, 40], sizes = [128, 8], strides = [1, 1]} : vector<128x96xbf16> to vector<128x8xbf16>
    %60 = vector.shape_cast %59 : vector<128x8xbf16> to vector<16x8x8xbf16>
    %61 = vector.extract_strided_slice %30 {offsets = [0, 72], sizes = [128, 8], strides = [1, 1]} : vector<128x96xbf16> to vector<128x8xbf16>
    %62 = vector.shape_cast %61 : vector<128x8xbf16> to vector<16x8x8xbf16>
    "tpu.trace_start"() <{level = 10 : i32, message = "nqd,nkd->nqk"}> : () -> ()
    %cst_22 = arith.constant dense<0.000000e+00> : vector<16x8x8xf32>
    %63 = tpu.matmul %58, %60, %cst_22 {dimension_numbers = #tpu.dot_dimension_numbers<[2], [2], [1], [1], [0, 0, 0, 1, 1, 1], [0], [0]>} : vector<16x8x8xbf16>, vector<16x8x8xbf16>, vector<16x8x8xf32> -> vector<16x8x8xf32>
    "tpu.trace_stop"() : () -> ()
    %cst_23 = arith.constant dense<0xFF800000> : vector<16x8xf32>
    %64 = vector.multi_reduction <maximumf>, %63, %cst_23 [2] : vector<16x8x8xf32> to vector<16x8xf32>
    %65 = vector.shape_cast %64 : vector<16x8xf32> to vector<16x8x1xf32>
    %66 = vector.broadcast %65 : vector<16x8x1xf32> to vector<16x8x8xf32>
    %67 = arith.subf %63, %66 : vector<16x8x8xf32>
    %68 = math.exp %67 : vector<16x8x8xf32>
    %cst_24 = arith.constant dense<0.000000e+00> : vector<16x8xf32>
    %69 = vector.multi_reduction <add>, %68, %cst_24 [2] : vector<16x8x8xf32> to vector<16x8xf32>
    %70 = vector.shape_cast %69 : vector<16x8xf32> to vector<16x8x1xf32>
    %71 = tpu.reciprocal %70 {approx = true} : vector<16x8x1xf32> -> vector<16x8x1xf32>
    %72 = vector.broadcast %71 : vector<16x8x1xf32> to vector<16x8x8xf32>
    %73 = arith.mulf %68, %72 : vector<16x8x8xf32>
    %74 = arith.truncf %73 : vector<16x8x8xf32> to vector<16x8x8xbf16>
    "tpu.trace_start"() <{level = 10 : i32, message = "nqk,nkd->nqd"}> : () -> ()
    %cst_25 = arith.constant dense<0.000000e+00> : vector<16x8x8xf32>
    %75 = tpu.matmul %74, %62, %cst_25 {dimension_numbers = #tpu.dot_dimension_numbers<[2], [1], [1], [2], [0, 0, 0, 1, 1, 2], [0], [0]>} : vector<16x8x8xbf16>, vector<16x8x8xbf16>, vector<16x8x8xf32> -> vector<16x8x8xf32>
    "tpu.trace_stop"() : () -> ()
    %76 = vector.shape_cast %75 : vector<16x8x8xf32> to vector<128x8xf32>
    %77 = arith.truncf %76 : vector<128x8xf32> to vector<128x8xbf16>
    %c1 = arith.constant 1 : index
    %c0_26 = arith.constant 0 : index
    %c0_27 = arith.constant 0 : index
    %78 = vector.load %arg5[%c1, %c0_26, %c0_27] : memref<4x8x32xbf16, #tpu.memory_space<vmem>>, vector<1x8x32xbf16>
    %79 = vector.shape_cast %78 : vector<1x8x32xbf16> to vector<8x32xbf16>
    %cst_28 = arith.constant dense<0.000000e+00> : vector<128x32xf32>
    %80 = tpu.matmul %77, %79, %cst_28 {dimension_numbers = #tpu.dot_dimension_numbers<[1], [0], [0], [1], [0, 0, 1, 1], [], []>} : vector<128x8xbf16>, vector<8x32xbf16>, vector<128x32xf32> -> vector<128x32xf32>
    %81 = arith.addf %56, %80 : vector<128x32xf32>
    %82 = vector.extract_strided_slice %30 {offsets = [0, 16], sizes = [128, 8], strides = [1, 1]} : vector<128x96xbf16> to vector<128x8xbf16>
    %83 = vector.shape_cast %82 : vector<128x8xbf16> to vector<16x8x8xbf16>
    %84 = vector.extract_strided_slice %30 {offsets = [0, 48], sizes = [128, 8], strides = [1, 1]} : vector<128x96xbf16> to vector<128x8xbf16>
    %85 = vector.shape_cast %84 : vector<128x8xbf16> to vector<16x8x8xbf16>
    %86 = vector.extract_strided_slice %30 {offsets = [0, 80], sizes = [128, 8], strides = [1, 1]} : vector<128x96xbf16> to vector<128x8xbf16>
    %87 = vector.shape_cast %86 : vector<128x8xbf16> to vector<16x8x8xbf16>
    "tpu.trace_start"() <{level = 10 : i32, message = "nqd,nkd->nqk"}> : () -> ()
    %cst_29 = arith.constant dense<0.000000e+00> : vector<16x8x8xf32>
    %88 = tpu.matmul %83, %85, %cst_29 {dimension_numbers = #tpu.dot_dimension_numbers<[2], [2], [1], [1], [0, 0, 0, 1, 1, 1], [0], [0]>} : vector<16x8x8xbf16>, vector<16x8x8xbf16>, vector<16x8x8xf32> -> vector<16x8x8xf32>
    "tpu.trace_stop"() : () -> ()
    %cst_30 = arith.constant dense<0xFF800000> : vector<16x8xf32>
    %89 = vector.multi_reduction <maximumf>, %88, %cst_30 [2] : vector<16x8x8xf32> to vector<16x8xf32>
    %90 = vector.shape_cast %89 : vector<16x8xf32> to vector<16x8x1xf32>
    %91 = vector.broadcast %90 : vector<16x8x1xf32> to vector<16x8x8xf32>
    %92 = arith.subf %88, %91 : vector<16x8x8xf32>
    %93 = math.exp %92 : vector<16x8x8xf32>
    %cst_31 = arith.constant dense<0.000000e+00> : vector<16x8xf32>
    %94 = vector.multi_reduction <add>, %93, %cst_31 [2] : vector<16x8x8xf32> to vector<16x8xf32>
    %95 = vector.shape_cast %94 : vector<16x8xf32> to vector<16x8x1xf32>
    %96 = tpu.reciprocal %95 {approx = true} : vector<16x8x1xf32> -> vector<16x8x1xf32>
    %97 = vector.broadcast %96 : vector<16x8x1xf32> to vector<16x8x8xf32>
    %98 = arith.mulf %93, %97 : vector<16x8x8xf32>
    %99 = arith.truncf %98 : vector<16x8x8xf32> to vector<16x8x8xbf16>
    "tpu.trace_start"() <{level = 10 : i32, message = "nqk,nkd->nqd"}> : () -> ()
    %cst_32 = arith.constant dense<0.000000e+00> : vector<16x8x8xf32>
    %100 = tpu.matmul %99, %87, %cst_32 {dimension_numbers = #tpu.dot_dimension_numbers<[2], [1], [1], [2], [0, 0, 0, 1, 1, 2], [0], [0]>} : vector<16x8x8xbf16>, vector<16x8x8xbf16>, vector<16x8x8xf32> -> vector<16x8x8xf32>
    "tpu.trace_stop"() : () -> ()
    %101 = vector.shape_cast %100 : vector<16x8x8xf32> to vector<128x8xf32>
    %102 = arith.truncf %101 : vector<128x8xf32> to vector<128x8xbf16>
    %c2 = arith.constant 2 : index
    %c0_33 = arith.constant 0 : index
    %c0_34 = arith.constant 0 : index
    %103 = vector.load %arg5[%c2, %c0_33, %c0_34] : memref<4x8x32xbf16, #tpu.memory_space<vmem>>, vector<1x8x32xbf16>
    %104 = vector.shape_cast %103 : vector<1x8x32xbf16> to vector<8x32xbf16>
    %cst_35 = arith.constant dense<0.000000e+00> : vector<128x32xf32>
    %105 = tpu.matmul %102, %104, %cst_35 {dimension_numbers = #tpu.dot_dimension_numbers<[1], [0], [0], [1], [0, 0, 1, 1], [], []>} : vector<128x8xbf16>, vector<8x32xbf16>, vector<128x32xf32> -> vector<128x32xf32>
    %106 = arith.addf %81, %105 : vector<128x32xf32>
    %107 = vector.extract_strided_slice %30 {offsets = [0, 24], sizes = [128, 8], strides = [1, 1]} : vector<128x96xbf16> to vector<128x8xbf16>
    %108 = vector.shape_cast %107 : vector<128x8xbf16> to vector<16x8x8xbf16>
    %109 = vector.extract_strided_slice %30 {offsets = [0, 56], sizes = [128, 8], strides = [1, 1]} : vector<128x96xbf16> to vector<128x8xbf16>
    %110 = vector.shape_cast %109 : vector<128x8xbf16> to vector<16x8x8xbf16>
    %111 = vector.extract_strided_slice %30 {offsets = [0, 88], sizes = [128, 8], strides = [1, 1]} : vector<128x96xbf16> to vector<128x8xbf16>
    %112 = vector.shape_cast %111 : vector<128x8xbf16> to vector<16x8x8xbf16>
    "tpu.trace_start"() <{level = 10 : i32, message = "nqd,nkd->nqk"}> : () -> ()
    %cst_36 = arith.constant dense<0.000000e+00> : vector<16x8x8xf32>
    %113 = tpu.matmul %108, %110, %cst_36 {dimension_numbers = #tpu.dot_dimension_numbers<[2], [2], [1], [1], [0, 0, 0, 1, 1, 1], [0], [0]>} : vector<16x8x8xbf16>, vector<16x8x8xbf16>, vector<16x8x8xf32> -> vector<16x8x8xf32>
    "tpu.trace_stop"() : () -> ()
    %cst_37 = arith.constant dense<0xFF800000> : vector<16x8xf32>
    %114 = vector.multi_reduction <maximumf>, %113, %cst_37 [2] : vector<16x8x8xf32> to vector<16x8xf32>
    %115 = vector.shape_cast %114 : vector<16x8xf32> to vector<16x8x1xf32>
    %116 = vector.broadcast %115 : vector<16x8x1xf32> to vector<16x8x8xf32>
    %117 = arith.subf %113, %116 : vector<16x8x8xf32>
    %118 = math.exp %117 : vector<16x8x8xf32>
    %cst_38 = arith.constant dense<0.000000e+00> : vector<16x8xf32>
    %119 = vector.multi_reduction <add>, %118, %cst_38 [2] : vector<16x8x8xf32> to vector<16x8xf32>
    %120 = vector.shape_cast %119 : vector<16x8xf32> to vector<16x8x1xf32>
    %121 = tpu.reciprocal %120 {approx = true} : vector<16x8x1xf32> -> vector<16x8x1xf32>
    %122 = vector.broadcast %121 : vector<16x8x1xf32> to vector<16x8x8xf32>
    %123 = arith.mulf %118, %122 : vector<16x8x8xf32>
    %124 = arith.truncf %123 : vector<16x8x8xf32> to vector<16x8x8xbf16>
    "tpu.trace_start"() <{level = 10 : i32, message = "nqk,nkd->nqd"}> : () -> ()
    %cst_39 = arith.constant dense<0.000000e+00> : vector<16x8x8xf32>
    %125 = tpu.matmul %124, %112, %cst_39 {dimension_numbers = #tpu.dot_dimension_numbers<[2], [1], [1], [2], [0, 0, 0, 1, 1, 2], [0], [0]>} : vector<16x8x8xbf16>, vector<16x8x8xbf16>, vector<16x8x8xf32> -> vector<16x8x8xf32>
    "tpu.trace_stop"() : () -> ()
    %126 = vector.shape_cast %125 : vector<16x8x8xf32> to vector<128x8xf32>
    %127 = arith.truncf %126 : vector<128x8xf32> to vector<128x8xbf16>
    %c3 = arith.constant 3 : index
    %c0_40 = arith.constant 0 : index
    %c0_41 = arith.constant 0 : index
    %128 = vector.load %arg5[%c3, %c0_40, %c0_41] : memref<4x8x32xbf16, #tpu.memory_space<vmem>>, vector<1x8x32xbf16>
    %129 = vector.shape_cast %128 : vector<1x8x32xbf16> to vector<8x32xbf16>
    %cst_42 = arith.constant dense<0.000000e+00> : vector<128x32xf32>
    %130 = tpu.matmul %127, %129, %cst_42 {dimension_numbers = #tpu.dot_dimension_numbers<[1], [0], [0], [1], [0, 0, 1, 1], [], []>} : vector<128x8xbf16>, vector<8x32xbf16>, vector<128x32xf32> -> vector<128x32xf32>
    %131 = arith.addf %106, %130 : vector<128x32xf32>
    %c0_43 = arith.constant 0 : index
    %c0_44 = arith.constant 0 : index
    %132 = vector.load %arg6[%c0_43, %c0_44] : memref<1x32xf32, #tpu.memory_space<vmem>>, vector<1x32xf32>
    %133 = vector.broadcast %132 : vector<1x32xf32> to vector<128x32xf32>
    %134 = arith.addf %131, %133 : vector<128x32xf32>
    %135 = vector.shape_cast %134 : vector<128x32xf32> to vector<16x8x32xf32>
    %136 = arith.addf %0, %135 : vector<16x8x32xf32>
    %c0_45 = arith.constant 0 : index
    %c0_46 = arith.constant 0 : index
    %c0_47 = arith.constant 0 : index
    %137 = vector.load %arg7[%c0_45, %c0_46, %c0_47] : memref<16x8x32xf32, #tpu.memory_space<vmem>>, vector<16x8x32xf32>
    tpu.vector_store %arg7[%c0_45, %c0_46, %c0_47], %136 {strides = array<i32>} : memref<16x8x32xf32, #tpu.memory_space<vmem>>, vector<16x8x32xf32>,
    return
  }
  func.func @transform_0(%arg0: i32) -> (i32, i32, i32) {
    %c0_i32 = arith.constant 0 : i32
    %c0_i32_0 = arith.constant 0 : i32
    %c0_i32_1 = arith.constant 0 : i32
    return %arg0, %c0_i32, %c0_i32_0 : i32, i32, i32
  }
  func.func @transform_1(%arg0: i32) -> (i32, i32) {
    %c0_i32 = arith.constant 0 : i32
    %c0_i32_0 = arith.constant 0 : i32
    %c0_i32_1 = arith.constant 0 : i32
    return %c0_i32, %c0_i32_0 : i32, i32
  }
  func.func @transform_2(%arg0: i32) -> (i32, i32) {
    %c0_i32 = arith.constant 0 : i32
    %c0_i32_0 = arith.constant 0 : i32
    %c0_i32_1 = arith.constant 0 : i32
    return %c0_i32, %c0_i32_0 : i32, i32
  }
  func.func @transform_3(%arg0: i32) -> (i32, i32) {
    %c0_i32 = arith.constant 0 : i32
    %c0_i32_0 = arith.constant 0 : i32
    %c0_i32_1 = arith.constant 0 : i32
    return %c0_i32, %c0_i32_0 : i32, i32
  }
  func.func @transform_4(%arg0: i32) -> (i32, i32, i32) {
    %c0_i32 = arith.constant 0 : i32
    %c0_i32_0 = arith.constant 0 : i32
    %c0_i32_1 = arith.constant 0 : i32
    %c0_i32_2 = arith.constant 0 : i32
    return %c0_i32, %c0_i32_0, %c0_i32_1 : i32, i32, i32
  }
  func.func @transform_5(%arg0: i32) -> (i32, i32) {
    %c0_i32 = arith.constant 0 : i32
    %c0_i32_0 = arith.constant 0 : i32
    %c0_i32_1 = arith.constant 0 : i32
    return %c0_i32, %c0_i32_0 : i32, i32
  }
  func.func @transform_6(%arg0: i32) -> (i32, i32, i32) {
    %c0_i32 = arith.constant 0 : i32
    %c0_i32_0 = arith.constant 0 : i32
    %c0_i32_1 = arith.constant 0 : i32
    return %arg0, %c0_i32, %c0_i32_0 : i32, i32, i32
  }
}

</mosaic_0001>

<bundles_post_ra>
// kernel: tpu_custom_call.1
= control target key start
LH: loop header
LB: loop body
LE: loop exit
PB: predicated region body
PF: predicated region fallthrough
CT: control target
= control target key end

     0   :  { %11 = vsyncpa [#allocation3], 0  ;;  %s13090_s0 = inlined_call_operand.hbm [shape: f32[32,8,32], index: 0, kind: input, shape index: {}]   ;;  %s13091_s1 = inlined_call_operand.hbm [shape: f32[8,32], index: 1, kind: input, shape index: {}]   ;;  %s13092_s2 = inlined_call_operand.hbm [shape: bf16[32,96], index: 2, kind: input, shape index: {}]   ;;  %s13093_s3 = inlined_call_operand.vmem [shape: f32[1,96], index: 3, kind: input, shape index: {}]   ;;  %s13094_s4 = inlined_call_operand.hbm [shape: bf16[4,8,32], index: 4, kind: input, shape index: {}]   ;;  %s13095_s5 = inlined_call_operand.vmem [shape: f32[1,32], index: 5, kind: input, shape index: {}]   ;;  %s13096_s6 = inlined_call_operand.hbm [shape: f32[32,8,32], index: 6, kind: output, shape index: {}]  }
   0x1   :  { %13 = vsyncpa [#allocation3 + $0x1], 0 }
   0x2   :  { %14 = vsyncpa [#allocation6], 0 }
   0x3   :  { %15 = vsyncpa [#allocation9], 0 }
   0x4   :  { %16 = vsyncpa [#allocation4], 0 }
   0x5   :  { %18 = vsyncpa [#allocation4 + $0x1], 0  ;;  %s10601_s21 = smov 0   ;;  %s10603_s22 = smov 0  }
   0x6   :  { %s10605_s23 = smov 0   ;;  %s10607_s24 = smov 0  }
   0x7 LB: > { %s10622_s25 = sadd.s32 4294967295, %s10540_s24   ;;  %s8506_s26 = sadd.s32 4294967294, %s10540_s24   ;;  %s10540_s24 = sphi %s10607_s24, %s13136_s24   ;;  %s10536_s23 = sphi %s10605_s23, %s13135_s23   ;;  %s10532_s22 = sphi %s10603_s22, %s13134_s22   ;;  %s10528_s21 = sphi %s10601_s21, %s13133_s21  }
   0x8   : > { %p44_p0 = scmp.ne.s32.totalorder %s10532_s22, %s10528_s21  ;;  %p13097_p1 = scmp.eq.s32.totalorder %s10622_s25, 0 }
   0x9   : > { %p179_p3 = scmp.eq.s32.totalorder %s8506_s26, 1  ;;  %p8507_p5 = scmp.ge.s32.totalorder %s10540_s24, 1 }
   0xa   : > { %p10631_p4 = por %p13097_p1, %p44_p0  ;;  %p186_p7 = scmp.lt.s32.totalorder %s10540_s24, 3 }
   0xb   : > { %p10636_p6 = por %p179_p3, %p44_p0  ;;  %s10542_s30 = smov [#allocation5]  }
   0xc   : > { %s13104_s27 = scalar_select %p10631_p4, 1, 0 }
   0xd   : > { %s13105_s28 = scalar_select %p10636_p6, 1, 0 }
   0xe   : > { %p10641_p8 = pnand %p8507_p5, %p186_p7  ;;  %s199_s7 = sshll.u32 %s10542_s30, 4  ;;  %s200_s7 = int_to_ptr.vmem [resolvable:$true] %s199_s7 }
   0xf   : > { %s10543_s8 = smov [#allocation7]   ;;  %s10544_s11 = smov [#allocation8]  }
  0x10   : > { %s13106_s29 = scalar_select %p10641_p8, 1, 0 }
  0x11   : > { %p9966_p10 = pneg %p10641_p8  ;;  %s209_s9 = sshll.u32 %s10543_s8, 4  ;;  %s10654_s9 = int_to_ptr.vmem [resolvable:$true] %s209_s9 }
  0x12   : > { %s10656_s12 = sshll.u32 %s10544_s11, 4  ;;  %s10352_s15 = scalar_lea.hbm %s13091_s1, 128  ;;  %s226_s12 = int_to_ptr.vmem [resolvable:$true] %s10656_s12 }
  0x13   : > { %p10650_p11 = pnand %p9966_p10, %p13097_p1  ;;  %p10353_p12 = scmp.ne.s32.totalorder %s13091_s1, %s10352_s15 }
  0x14   : > { %p10359_p5 = scmp.lt.u32.totalorder %s10352_s15, %s13091_s1 }
  0x15   : > { %p10666_p13 = pneg %p10650_p11 }
  0x17   : > { %p10355_p0 = pnand %p10666_p13, %p10353_p12 }
  0x19   : > { %p10356_p3 = pneg %p10355_p0 }
  0x1b   : > { %p10361_p7 = pnand %p10359_p5, %p10356_p3 }
  0x1d   : > { %10364 = shalt.err (!%p10361_p7)
}
  0x1e   : > { %s10365_s26 = scalar_lea.vmem %s200_s7, 128  ;;  %p10373_p2 = scmp.lt.s32.totalorder %s200_s7, %s200_s7 }
  0x1f   : > { %p10366_p10 = scmp.ne.s32.totalorder %s200_s7, %s10365_s26  ;;  %p10374_p6 = scmp.lt.s32.totalorder %s10365_s26, %s10365_s26 }
  0x21   : > { %p10368_p9 = pnand %p10366_p10, %p10666_p13  ;;  %p10375_p4 = por %p10374_p6, %p10373_p2 }
  0x23   : > { %p10369_p1 = pneg %p10368_p9 }
  0x25   : > { %p10376_p8 = pnand %p10375_p4, %p10369_p1 }
  0x27   : > { %10379 = shalt.err (!%p10376_p8)
}
  0x28   : > { %9969 = dma.hbm_to_vmem [thread:$0]  (!%p10650_p11), %s13091_s1, 128, %s200_s7, [#allocation6]  }
  0x29   : > { %s10380_s14 = scalar_lea.hbm %s13092_s2, 256 }
  0x2a   : > { %p10381_p9 = scmp.ne.s32.totalorder %s13092_s2, %s10380_s14  ;;  %p10387_p1 = scmp.lt.u32.totalorder %s10380_s14, %s13092_s2 }
  0x2c   : > { %p10383_p12 = pnand %p10381_p9, %p10666_p13 }
  0x2e   : > { %p10384_p2 = pneg %p10383_p12 }
  0x30   : > { %p10389_p4 = pnand %p10387_p1, %p10384_p2 }
  0x32   : > { %10392 = shalt.err (!%p10389_p4)
}
  0x33   : > { %s10393_s7 = scalar_lea.vmem %s10654_s9, 256  ;;  %p10401_p3 = scmp.lt.s32.totalorder %s10654_s9, %s10654_s9 }
  0x34   : > { %p10394_p6 = scmp.ne.s32.totalorder %s10654_s9, %s10393_s7  ;;  %p10402_p5 = scmp.lt.s32.totalorder %s10393_s7, %s10393_s7 }
  0x36   : > { %p10396_p8 = pnand %p10394_p6, %p10666_p13  ;;  %p10403_p7 = por %p10402_p5, %p10401_p3 }
  0x38   : > { %p10397_p0 = pneg %p10396_p8 }
  0x3a   : > { %p10404_p10 = pnand %p10403_p7, %p10397_p0 }
  0x3c   : > { %10407 = shalt.err (!%p10404_p10)
}
  0x3d   : > { %s10545_s20 = smov 64   ;;  %s10546_s26 = smov 4  }
  0x3e   : > { %9972 = dma.hbm_to_vmem [thread:$0]  (!%p10650_p11), %s13092_s2, 256, %s10654_s9, [#allocation6], %s10545_s20, %s10545_s20, %s10546_s26  }
  0x3f   : > { %s10408_s14 = scalar_lea.hbm %s13094_s4, 256 }
  0x40   : > { %p10409_p9 = scmp.ne.s32.totalorder %s13094_s4, %s10408_s14  ;;  %p10415_p1 = scmp.lt.u32.totalorder %s10408_s14, %s13094_s4 }
  0x42   : > { %p10411_p12 = pnand %p10409_p9, %p10666_p13 }
  0x44   : > { %p10412_p2 = pneg %p10411_p12 }
  0x46   : > { %p10417_p4 = pnand %p10415_p1, %p10412_p2 }
  0x48   : > { %10420 = shalt.err (!%p10417_p4)
}
  0x49   : > { %s10421_s7 = scalar_lea.vmem %s226_s12, 256  ;;  %p10429_p3 = scmp.lt.s32.totalorder %s226_s12, %s226_s12 }
  0x4a   : > { %p10422_p6 = scmp.ne.s32.totalorder %s226_s12, %s10421_s7  ;;  %p10430_p5 = scmp.lt.s32.totalorder %s10421_s7, %s10421_s7 }
  0x4c   : > { %p10424_p8 = pnand %p10422_p6, %p10666_p13  ;;  %p10431_p7 = por %p10430_p5, %p10429_p3 }
  0x4e   : > { %p10425_p0 = pneg %p10424_p8 }
  0x50   : > { %p10432_p10 = pnand %p10431_p7, %p10425_p0 }
  0x52   : > { %10435 = shalt.err (!%p10432_p10)
}
  0x53   : > { %9975 = dma.hbm_to_vmem [thread:$0]  (!%p10650_p11), %s13094_s4, 256, %s226_s12, [#allocation9], %s10545_s20, %s10545_s20, %s10546_s26  }
  0x54   : > { %s10725_s18 = sadd.s32 1, %s10540_s24   ;;  %s31_s10 = sadd.s32 1, %s10536_s23 }
  0x55   : > { %s28_s8 = ssub.s32 %s10540_s24, %s10725_s18  ;;  %p38_p9 = scmp.ne.s32.totalorder %s10536_s23, %s10532_s22 }
  0x56   : > { %p29_p13 = scmp.eq.s32.totalorder %s28_s8, 0  ;;  %p39_p12 = scmp.eq.s32.totalorder %s10540_s24, 0 }
  0x57   : > { %p9987_p2 = scmp.lt.s32.totalorder %s10540_s24, 2  ;;  %p13109_p4 = scmp.eq.s32.totalorder %s10622_s25, 1 }
  0x58   : > { %s10735_s11 = scalar_select %p29_p13, %s10536_s23, %s31_s10  }
  0x59   : > { %p40_p1 = por %p39_p12, %p38_p9  ;;  %p10739_p6 = por %p13109_p4, %p38_p9 }
  0x5a   : > { %s242_s14 = sand.u32 1, %s10536_s23   ;;  %s8714_s15 = sshll.u32 %s10540_s24, 11 }
  0x5b   : > { %s8512_s12 = sshll.u32 %s242_s14, 7  ;;  %s10748_s16 = scalar_lea.hbm %s13090_s0, %s8714_s15 }
  0x5c   : > { %s246_s17 = scalar_lea.vmem [#allocation2], %s8512_s12  ;;  %p10750_p11 = pnand %p9987_p2, %p40_p1 }
  0x5d   : > { %s253_s19 = sshll.u32 %s246_s17, 4  ;;  %s10756_s9 = scalar_lea.sflag [#allocation3], %s242_s14  ;;  %s10754_s19 = int_to_ptr.vmem [resolvable:$true] %s253_s19 }
  0x5e   : > { %s10436_s30 = scalar_lea.hbm %s10748_s16, 2048  ;;  %p10438_p0 = pneg %p10750_p11 }
  0x5f   : > { %p10437_p8 = scmp.ne.s32.totalorder %s10748_s16, %s10436_s30  ;;  %s10441_s15 = scalar_lea.hbm %s13090_s0, 4096 }
  0x60   : > { %p10442_p7 = scmp.lt.u32.totalorder %s10748_s16, %s13090_s0  ;;  %p10443_p10 = scmp.lt.u32.totalorder %s10441_s15, %s10436_s30 }
  0x61   : > { %p10439_p3 = pnand %p10438_p0, %p10437_p8  ;;  %p10445_p9 = scmp.lt.u32.totalorder %s10436_s30, %s10748_s16 }
  0x62   : > { %p10444_p13 = por %p10443_p10, %p10442_p7 }
  0x63   : > { %p10440_p5 = pneg %p10439_p3 }
  0x64   : > { %p10446_p12 = por %p10445_p9, %p10444_p13 }
  0x66   : > { %p10447_p2 = pnand %p10446_p12, %p10440_p5 }
  0x68   : > { %10450 = shalt.err (!%p10447_p2)
}
  0x69   : > { %s10451_s14 = scalar_lea.vmem %s10754_s19, 2048  ;;  %s10547_s26 = smov [#allocation2]  }
  0x6a   : > { %p10452_p1 = scmp.ne.s32.totalorder %s10754_s19, %s10451_s14  ;;  %s10456_s17 = sshll.u32 %s10547_s26, 4  ;;  %s10457_s17 = int_to_ptr.vmem [resolvable:$false] %s10456_s17 }
  0x6b   : > { %s10458_s8 = scalar_lea.vmem %s10457_s17, 4096  ;;  %p10459_p3 = scmp.lt.s32.totalorder %s10754_s19, %s10457_s17 }
  0x6c   : > { %p10454_p4 = pnand %p10452_p1, %p10438_p0  ;;  %p10460_p7 = scmp.lt.s32.totalorder %s10458_s8, %s10451_s14 }
  0x6e   : > { %p10455_p8 = pneg %p10454_p4  ;;  %p10461_p10 = por %p10460_p7, %p10459_p3 }
  0x70   : > { %p10462_p13 = pnand %p10461_p10, %p10455_p8 }
  0x72   : > { %10465 = shalt.err (!%p10462_p13)
}
  0x73   : > { %s10548_s30 = smov 128   ;;  %s10549_s10 = smov 8  }
  0x74   : > { %9979 = dma.hbm_to_vmem [thread:$0]  (!%p10750_p11), %s10748_s16, 2048, %s10754_s19, %s10756_s9, %s10548_s30, %s10548_s30, %s10549_s10  }
  0x75   : > { %p13112_p0 = scmp.ne.s32.totalorder %s13106_s29, 0 }
  0x77   : > { %265 = sbr.rel (%p13112_p0) target bundleno = 4265 (0x10a9), region = 44 }
  0x7e   : > { %s10787_s15 = sand.u32 1, %s10532_s22   ;;  %p13113_p5 = scmp.ne.s32.totalorder %s13104_s27, 0 }
  0x7f   : > { %s8516_s12 = sshll.u32 %s10787_s15, 7  ;;  %s268_s20 = scalar_lea.sflag [#allocation3], %s10787_s15 }
  0x80   : > { %s10793_s14 = scalar_lea.vmem [#allocation2], %s8516_s12 }
  0x81   : > { %10511 = dma.done.wait (%p13113_p5), %s268_s20, 2048  }
  0x82   : > { %10513 = vsyncadd (%p13113_p5), %s268_s20, 4294965248  ;;  %p13114_p11 = scmp.eq.s32.totalorder %s10622_s25, 0 }
  0x84   : > { %10515 = dma.done.wait (%p13114_p11), [#allocation6], 384   ;;  %p13115_p9 = pmov %p13114_p11 }
  0x86   : > { %10517 = vsyncadd (%p13115_p9), [#allocation6], 4294966912  ;;  %p13116_p12 = pmov %p13115_p9 }
  0x87   : > { %p13117_p2 = pmov %p13115_p9 }
  0x88   : > { %10519 = dma.done.wait (%p13116_p12), [#allocation9], 256  }
  0x89   : > { %10521 = vsyncadd (%p13117_p2), [#allocation9], 4294967040  ;;  %v315_v0 = vld [vmem:[%s10793_s14] sm:$0xff]  ;;  %vm348_vm0 = vcmask 261120   ;;  %v317_v2 = vld [vmem:[%s10793_s14 + $0x10] sm:$0xff]  ;;  %vm10551_vm1 = vmmov 0  }
  0x8a   : > { %v331_v1 = vld [vmem:[#allocation5] sm:$0xff]  ;;  %v316_v5 = vld [vmem:[%s10793_s14 + $0x8] sm:$0xff]  ;;  %v318_v6 = vld [vmem:[%s10793_s14 + $0x18] sm:$0xff]  ;;  %s10552_s16 = smov 96   ;;  %s10553_s19 = smov 64   ;;  %vm760_vm2 = vcmask 64512  }
  0x8b   : > { %v10809_v3 = vadd.f32 %v331_v1, %v315_v0  ;;  %v10811_v4 = vadd.f32 %v331_v1, %v317_v2  ;;  %v10815_v7 = vadd.f32 %v331_v1, %v316_v5  ;;  %v10817_v8 = vadd.f32 %v331_v1, %v318_v6  ;;  %v319_v9 = vld [vmem:[%s10793_s14 + $0x20] sm:$0xff]  ;;  %v320_v10 = vld [vmem:[%s10793_s14 + $0x28] sm:$0xff]  ;;  %v321_v17 = vld [vmem:[%s10793_s14 + $0x30] sm:$0xff]  ;;  %s10554_s7 = smov 88   ;;  %s10555_s9 = smov 120  }
  0x8c   : > { %v10829_v15 = vadd.f32 %v331_v1, %v319_v9  ;;  %v10831_v16 = vadd.f32 %v331_v1, %v320_v10  ;;  %v322_v18 = vld [vmem:[%s10793_s14 + $0x38] sm:$0xff]  ;;  %v10839_v21 = vadd.f32 %v331_v1, %v321_v17  ;;  %v323_v23 = vld [vmem:[%s10793_s14 + $0x40] sm:$0xff]  ;;  %v324_v24 = vld [vmem:[%s10793_s14 + $0x48] sm:$0xff]  ;;  %vm1724_vm3 = vcmask 1043456   ;;  %s10556_s26 = smov 56   ;;  %s10557_s17 = smov 112  }
  0x8d   : > { %v349_v11 = vsel %vm348_vm0, %v10809_v3, 0.0  ;;  %v355_v12 = vsel %vm348_vm0, %v10811_v4, 0.0  ;;  %v352_v13 = vsel %vm348_vm0, %v10815_v7, 0.0  ;;  %v358_v14 = vsel %vm348_vm0, %v10817_v8, 0.0  ;;  %v325_v29 = vld [vmem:[%s10793_s14 + $0x50] sm:$0xff]  ;;  %v326_v30 = vld [vmem:[%s10793_s14 + $0x58] sm:$0xff] }
  0x8e   : > { %350 = vadd.xlane.f32.xlu0 %v349_v11  ;;  %356 = vadd.xlane.f32.xlu1 %v355_v12  ;;  %v361_v19 = vsel %vm348_vm0, %v10829_v15, 0.0  ;;  %v364_v20 = vsel %vm348_vm0, %v10831_v16, 0.0  ;;  %v10841_v22 = vadd.f32 %v331_v1, %v322_v18  ;;  %v367_v25 = vsel %vm348_vm0, %v10839_v21, 0.0  ;;  %v327_v35 = vld [vmem:[%s10793_s14 + $0x60] sm:$0xff]  ;;  %v328_v36 = vld [vmem:[%s10793_s14 + $0x68] sm:$0xff]  ;;  %v329_v41 = vld [vmem:[%s10793_s14 + $0x70] sm:$0xff] }
  0x8f   : > { %v10849_v27 = vadd.f32 %v331_v1, %v323_v23  ;;  %v10851_v28 = vadd.f32 %v331_v1, %v324_v24  ;;  %v10859_v33 = vadd.f32 %v331_v1, %v325_v29  ;;  %v10861_v34 = vadd.f32 %v331_v1, %v326_v30  ;;  %v330_v42 = vld [vmem:[%s10793_s14 + $0x78] sm:$0xff]  ;;  %s10558_s8 = smov 80   ;;  %s10559_s30 = smov 48  }
  0x90   : > { %v370_v26 = vsel %vm348_vm0, %v10841_v22, 0.0  ;;  %v10869_v39 = vadd.f32 %v331_v1, %v327_v35  ;;  %v10871_v40 = vadd.f32 %v331_v1, %v328_v36  ;;  %v10879_v45 = vadd.f32 %v331_v1, %v329_v41  ;;  %s10560_s10 = smov 72   ;;  %s10561_s20 = smov 104  }
  0x91   : > { %v373_v31 = vsel %vm348_vm0, %v10849_v27, 0.0  ;;  %v376_v32 = vsel %vm348_vm0, %v10851_v28, 0.0  ;;  %v379_v37 = vsel %vm348_vm0, %v10859_v33, 0.0  ;;  %v382_v38 = vsel %vm348_vm0, %v10861_v34, 0.0  ;;  %s10562_s27 = smov 40  }
  0x92   : > { %353 = vadd.xlane.f32.xlu0 %v352_v13  ;;  %359 = vadd.xlane.f32.xlu1 %v358_v14  ;;  %v385_v43 = vsel %vm348_vm0, %v10869_v39, 0.0  ;;  %v388_v44 = vsel %vm348_vm0, %v10871_v40, 0.0  ;;  %v10881_v46 = vadd.f32 %v331_v1, %v330_v42  ;;  %v391_v47 = vsel %vm348_vm0, %v10879_v45, 0.0 }
  0x94   : > { %v394_v48 = vsel %vm348_vm0, %v10881_v46, 0.0 }
  0x96   : > { %362 = vadd.xlane.f32.xlu0 %v361_v19  ;;  %365 = vadd.xlane.f32.xlu1 %v364_v20 }
  0x9a   : > { %368 = vadd.xlane.f32.xlu0 %v367_v25  ;;  %371 = vadd.xlane.f32.xlu1 %v370_v26 }
  0x9e   : > { %374 = vadd.xlane.f32.xlu0 %v373_v31  ;;  %377 = vadd.xlane.f32.xlu1 %v376_v32 }
  0xa2   : > { %380 = vadd.xlane.f32.xlu0 %v379_v37  ;;  %383 = vadd.xlane.f32.xlu1 %v382_v38 }
  0xa6   : > { %386 = vadd.xlane.f32.xlu0 %v385_v43  ;;  %389 = vadd.xlane.f32.xlu1 %v388_v44 }
  0xaa   : > { %392 = vadd.xlane.f32.xlu0 %v391_v47  ;;  %395 = vadd.xlane.f32.xlu1 %v394_v48 }
 0x11b   : > { %v351_v49 = vpop.xlane.xlu0 %350  ;;  %v357_v50 = vpop.xlane.xlu1 %356 }
 0x11c   : > { %v398_v51 = vmul.f32 0.03125, %v351_v49  ;;  %v400_v52 = vmul.f32 0.03125, %v357_v50 }
 0x11e   : > { %v10888_v53 = vsub.f32 %v10809_v3, %v398_v51  ;;  %v10891_v54 = vsub.f32 %v10811_v4, %v400_v52 }
 0x11f   : > { %v354_v55 = vpop.xlane.xlu0 %353  ;;  %v360_v56 = vpop.xlane.xlu1 %359 }
 0x120   : > { %v399_v57 = vmul.f32 0.03125, %v354_v55  ;;  %v401_v58 = vmul.f32 0.03125, %v360_v56  ;;  %v430_v59 = vmul.f32 %v10888_v53, %v10888_v53  ;;  %v432_v60 = vmul.f32 %v10891_v54, %v10891_v54 }
 0x122   : > { %v10898_v61 = vsub.f32 %v10815_v7, %v399_v57  ;;  %v10901_v62 = vsub.f32 %v10817_v8, %v401_v58  ;;  %v446_v63 = vsel %vm348_vm0, %v430_v59, 0.0  ;;  %v452_v2 = vsel %vm348_vm0, %v432_v60, 0.0 }
 0x123   : > { %447 = vadd.xlane.f32.xlu0 %v446_v63  ;;  %v363_v0 = vpop.xlane.xlu0 %362  ;;  %v366_v1 = vpop.xlane.xlu1 %365 }
 0x124   : > { %v402_v3 = vmul.f32 0.03125, %v363_v0  ;;  %v403_v4 = vmul.f32 0.03125, %v366_v1  ;;  %v431_v5 = vmul.f32 %v10898_v61, %v10898_v61  ;;  %v433_v6 = vmul.f32 %v10901_v62, %v10901_v62 }
 0x126   : > { %v10910_v7 = vsub.f32 %v10829_v15, %v402_v3  ;;  %v10913_v8 = vsub.f32 %v10831_v16, %v403_v4  ;;  %v449_v9 = vsel %vm348_vm0, %v431_v5, 0.0  ;;  %v455_v12 = vsel %vm348_vm0, %v433_v6, 0.0  ;;  %v10047_v6 = vld [vmem:[#allocation7 + $0x8] sm:$0xff]  }
 0x127   : > { %453 = vadd.xlane.f32.xlu0 %v452_v2  ;;  %450 = vadd.xlane.f32.xlu1 %v449_v9  ;;  %v369_v10 = vpop.xlane.xlu0 %368  ;;  %v372_v11 = vpop.xlane.xlu1 %371 }
 0x128   : > { %v404_v13 = vmul.f32 0.03125, %v369_v10  ;;  %v405_v14 = vmul.f32 0.03125, %v372_v11  ;;  %v434_v17 = vmul.f32 %v10910_v7, %v10910_v7  ;;  %v435_v15 = vmul.f32 %v10913_v8, %v10913_v8 }
 0x12a   : > { %v10922_v18 = vsub.f32 %v10839_v21, %v404_v13  ;;  %v10925_v16 = vsub.f32 %v10841_v22, %v405_v14  ;;  %v458_v19 = vsel %vm348_vm0, %v434_v17, 0.0  ;;  %v461_v24 = vsel %vm348_vm0, %v435_v15, 0.0 }
 0x12b   : > { %456 = vadd.xlane.f32.xlu1 %v455_v12  ;;  %459 = vadd.xlane.f32.xlu0 %v458_v19  ;;  %v375_v20 = vpop.xlane.xlu0 %374  ;;  %v378_v23 = vpop.xlane.xlu1 %377 }
 0x12c   : > { %v406_v25 = vmul.f32 0.03125, %v375_v20  ;;  %v407_v26 = vmul.f32 0.03125, %v378_v23  ;;  %v436_v29 = vmul.f32 %v10922_v18, %v10922_v18  ;;  %v437_v21 = vmul.f32 %v10925_v16, %v10925_v16 }
 0x12e   : > { %v10934_v30 = vsub.f32 %v10849_v27, %v406_v25  ;;  %v10937_v22 = vsub.f32 %v10851_v28, %v407_v26  ;;  %v464_v31 = vsel %vm348_vm0, %v436_v29, 0.0  ;;  %v467_v36 = vsel %vm348_vm0, %v437_v21, 0.0 }
 0x12f   : > { %462 = vadd.xlane.f32.xlu1 %v461_v24  ;;  %465 = vadd.xlane.f32.xlu0 %v464_v31  ;;  %v381_v32 = vpop.xlane.xlu0 %380  ;;  %v384_v35 = vpop.xlane.xlu1 %383 }
 0x130   : > { %v408_v37 = vmul.f32 0.03125, %v381_v32  ;;  %v409_v38 = vmul.f32 0.03125, %v384_v35  ;;  %v438_v41 = vmul.f32 %v10934_v30, %v10934_v30  ;;  %v439_v27 = vmul.f32 %v10937_v22, %v10937_v22 }
 0x132   : > { %v10946_v42 = vsub.f32 %v10859_v33, %v408_v37  ;;  %v10949_v28 = vsub.f32 %v10861_v34, %v409_v38  ;;  %v470_v43 = vsel %vm348_vm0, %v438_v41, 0.0  ;;  %v473_v48 = vsel %vm348_vm0, %v439_v27, 0.0 }
 0x133   : > { %468 = vadd.xlane.f32.xlu1 %v467_v36  ;;  %471 = vadd.xlane.f32.xlu0 %v470_v43  ;;  %v387_v44 = vpop.xlane.xlu0 %386  ;;  %v390_v47 = vpop.xlane.xlu1 %389 }
 0x134   : > { %v410_v49 = vmul.f32 0.03125, %v387_v44  ;;  %v411_v50 = vmul.f32 0.03125, %v390_v47  ;;  %v440_v51 = vmul.f32 %v10946_v42, %v10946_v42  ;;  %v441_v33 = vmul.f32 %v10949_v28, %v10949_v28 }
 0x136   : > { %v10958_v52 = vsub.f32 %v10869_v39, %v410_v49  ;;  %v10961_v34 = vsub.f32 %v10871_v40, %v411_v50  ;;  %v476_v55 = vsel %vm348_vm0, %v440_v51, 0.0  ;;  %v479_v58 = vsel %vm348_vm0, %v441_v33, 0.0 }
 0x137   : > { %474 = vadd.xlane.f32.xlu1 %v473_v48  ;;  %477 = vadd.xlane.f32.xlu0 %v476_v55  ;;  %v393_v56 = vpop.xlane.xlu0 %392  ;;  %v396_v57 = vpop.xlane.xlu1 %395 }
 0x138   : > { %v412_v59 = vmul.f32 0.03125, %v393_v56  ;;  %v413_v60 = vmul.f32 0.03125, %v396_v57  ;;  %v442_v63 = vmul.f32 %v10958_v52, %v10958_v52  ;;  %v443_v39 = vmul.f32 %v10961_v34, %v10961_v34 }
 0x13a   : > { %v10970_v0 = vsub.f32 %v10879_v45, %v412_v59  ;;  %v10973_v40 = vsub.f32 %v10881_v46, %v413_v60  ;;  %v482_v1 = vsel %vm348_vm0, %v442_v63, 0.0  ;;  %v485_v2 = vsel %vm348_vm0, %v443_v39, 0.0  ;;  %v10046_v46 = vld [vmem:[#allocation7] sm:$0xff]  }
 0x13b   : > { %480 = vadd.xlane.f32.xlu1 %v479_v58  ;;  %483 = vadd.xlane.f32.xlu0 %v482_v1 }
 0x13c   : > { %v444_v3 = vmul.f32 %v10970_v0, %v10970_v0  ;;  %v445_v4 = vmul.f32 %v10973_v40, %v10973_v40  ;;  %9034 = vmatprep.subr.bf16.mxu0 %v10046_v46  ;;  %9894 = vmatprep.subr.bf16.mxu1 %v10046_v46 }
 0x13d   : > { %9035 = vmatpush3.bf16.msra.mxu0 %v10046_v46  ;;  %9896 = vmatpush3.bf16.msra.mxu1 %v10046_v46 }
 0x13e   : > { %v488_v5 = vsel %vm348_vm0, %v444_v3, 0.0  ;;  %v491_v45 = vsel %vm348_vm0, %v445_v4, 0.0  ;;  %9036 = vmatprep.subr.bf16.mxu0 %v10047_v6  ;;  %9895 = vmatprep.subr.bf16.mxu1 %v10047_v6 }
 0x13f   : > { %486 = vadd.xlane.f32.xlu1 %v485_v2  ;;  %489 = vadd.xlane.f32.xlu0 %v488_v5 }
 0x141   : > { %9037 = vmatpush3.bf16.msra.mxu0 %v10047_v6  ;;  %9897 = vmatpush3.bf16.msra.mxu1 %v10047_v6 }
 0x143   : > { %492 = vadd.xlane.f32.xlu1 %v491_v45 }
 0x1b0   : > { %v448_v9 = vpop.xlane.xlu0 %447 }
 0x1b1   : > { %v494_v10 = vmul.f32 0.03125, %v448_v9 }
 0x1b3   : > { %v510_v11 = vadd.f32 1e-05, %v494_v10 }
 0x1b4   : > { %v451_v12 = vpop.xlane.xlu1 %450  ;;  %v454_v13 = vpop.xlane.xlu0 %453 }
 0x1b5   : > { %v495_v14 = vmul.f32 0.03125, %v451_v12  ;;  %v496_v17 = vmul.f32 0.03125, %v454_v13  ;;  %10048 = vrsqrt.f32 %v510_v11 }
 0x1b7   : > { %v511_v15 = vadd.f32 1e-05, %v495_v14  ;;  %v512_v19 = vadd.f32 1e-05, %v496_v17 }
 0x1b8   : > { %v457_v20 = vpop.xlane.xlu1 %456  ;;  %v460_v23 = vpop.xlane.xlu0 %459 }
 0x1b9   : > { %10050 = vrsqrt.f32 %v511_v15  ;;  %v497_v24 = vmul.f32 0.03125, %v457_v20  ;;  %v498_v25 = vmul.f32 0.03125, %v460_v23 }
 0x1ba   : > { %10052 = vrsqrt.f32 %v512_v19 }
 0x1bb   : > { %v513_v26 = vadd.f32 1e-05, %v497_v24  ;;  %v514_v29 = vadd.f32 1e-05, %v498_v25 }
 0x1bc   : > { %v463_v21 = vpop.xlane.xlu1 %462  ;;  %v466_v31 = vpop.xlane.xlu0 %465 }
 0x1bd   : > { %10054 = vrsqrt.f32 %v513_v26  ;;  %v499_v32 = vmul.f32 0.03125, %v463_v21  ;;  %v500_v35 = vmul.f32 0.03125, %v466_v31 }
 0x1be   : > { %10056 = vrsqrt.f32 %v514_v29 }
 0x1bf   : > { %v515_v36 = vadd.f32 1e-05, %v499_v32  ;;  %v516_v37 = vadd.f32 1e-05, %v500_v35  ;;  %v10049_v27 = vpop.eup %10048 }
 0x1c0   : > { %v469_v38 = vpop.xlane.xlu1 %468  ;;  %v472_v41 = vpop.xlane.xlu0 %471  ;;  %v542_v33 = vmul.f32 %v10049_v27, %v10888_v53 }
 0x1c1   : > { %10058 = vrsqrt.f32 %v515_v36  ;;  %v501_v43 = vmul.f32 0.03125, %v469_v38  ;;  %v502_v44 = vmul.f32 0.03125, %v472_v41 }
 0x1c2   : > { %10060 = vrsqrt.f32 %v516_v37 }
 0x1c3   : > { %v10051_v47 = vpop.eup %10050  ;;  %v517_v48 = vadd.f32 1e-05, %v501_v43  ;;  %v518_v49 = vadd.f32 1e-05, %v502_v44 }
 0x1c4   : > { %v475_v50 = vpop.xlane.xlu1 %474  ;;  %v478_v51 = vpop.xlane.xlu0 %477  ;;  %v543_v55 = vmul.f32 %v10051_v47, %v10898_v61 }
 0x1c5   : > { %v10053_v56 = vpop.eup %10052  ;;  %10062 = vrsqrt.f32 %v517_v48  ;;  %v503_v57 = vmul.f32 0.03125, %v475_v50  ;;  %v504_v58 = vmul.f32 0.03125, %v478_v51 }
 0x1c6   : > { %v558_v59 = vpack.c.bf16 %v543_v55, %v542_v33  ;;  %10064 = vrsqrt.f32 %v518_v49  ;;  %v544_v3 = vmul.f32 %v10053_v56, %v10891_v54 }
 0x1c7   : > { %v10055_v60 = vpop.eup %10054  ;;  %v519_v63 = vadd.f32 1e-05, %v503_v57  ;;  %v520_v39 = vadd.f32 1e-05, %v504_v58 }
 0x1c8   : > { %v481_v1 = vpop.xlane.xlu1 %480  ;;  %9038 = vmatprep.mubr.msk.bf16.mxu0 %vm348_vm0, %v558_v59  ;;  %v484_v2 = vpop.xlane.xlu0 %483  ;;  %v545_v4 = vmul.f32 %v10055_v60, %v10901_v62 }
 0x1c9   : > { %v10057_v53 = vpop.eup %10056  ;;  %10066 = vrsqrt.f32 %v519_v63  ;;  %v505_v61 = vmul.f32 0.03125, %v481_v1  ;;  %v506_v5 = vmul.f32 0.03125, %v484_v2 }
 0x1ca   : > { %v559_v45 = vpack.c.bf16 %v545_v4, %v544_v3  ;;  %10068 = vrsqrt.f32 %v520_v39  ;;  %v546_v12 = vmul.f32 %v10057_v53, %v10910_v7 }
 0x1cb   : > { %v10059_v46 = vpop.eup %10058  ;;  %v521_v6 = vadd.f32 1e-05, %v505_v61  ;;  %v522_v9 = vadd.f32 1e-05, %v506_v5 }
 0x1cc   : > { %v487_v10 = vpop.xlane.xlu1 %486  ;;  %9039 = vmatmul.mubr.msk.bf16.vlgmr.msra.gmra.mrb[0].mxu0 %vm348_vm0, %v559_v45  ;;  %v490_v11 = vpop.xlane.xlu0 %489  ;;  %v547_v13 = vmul.f32 %v10059_v46, %v10913_v8 }
 0x1cd   : > { %v10061_v54 = vpop.eup %10060  ;;  %10070 = vrsqrt.f32 %v521_v6  ;;  %v507_v62 = vmul.f32 0.03125, %v487_v10  ;;  %v508_v14 = vmul.f32 0.03125, %v490_v11 }
 0x1ce   : > { %v560_v17 = vpack.c.bf16 %v547_v13, %v546_v12  ;;  %10072 = vrsqrt.f32 %v522_v9  ;;  %v548_v24 = vmul.f32 %v10061_v54, %v10922_v18 }
 0x1cf   : > { %v10063_v15 = vpop.eup %10062  ;;  %v523_v19 = vadd.f32 1e-05, %v507_v62  ;;  %v524_v20 = vadd.f32 1e-05, %v508_v14 }
 0x1d0   : > { %v493_v23 = vpop.xlane.xlu1 %492  ;;  %9042 = vmatprep.mubr.msk.bf16.mxu0 %vm348_vm0, %v560_v17  ;;  %v549_v25 = vmul.f32 %v10063_v15, %v10925_v16  ;;  %v10065_v26 = vpop.eup %10064 }
 0x1d1   : > { %10074 = vrsqrt.f32 %v523_v19  ;;  %v509_v7 = vmul.f32 0.03125, %v493_v23  ;;  %v550_v31 = vmul.f32 %v10065_v26, %v10934_v30 }
 0x1d2   : > { %v561_v8 = vpack.c.bf16 %v549_v25, %v548_v24  ;;  %10076 = vrsqrt.f32 %v524_v20 }
 0x1d3   : > { %v10067_v29 = vpop.eup %10066  ;;  %v525_v21 = vadd.f32 1e-05, %v509_v7 }
 0x1d4   : > { %9043 = vmatmul.mubr.msk.bf16.gmra.mrb[4].mxu0 %vm348_vm0, %v561_v8  ;;  %v551_v32 = vmul.f32 %v10067_v29, %v10937_v22  ;;  %v10069_v35 = vpop.eup %10068 }
 0x1d5   : > { %10078 = vrsqrt.f32 %v525_v21  ;;  %v552_v18 = vmul.f32 %v10069_v35, %v10946_v42 }
 0x1d6   : > { %v562_v36 = vpack.c.bf16 %v551_v32, %v550_v31 }
 0x1d7   : > { %v10071_v37 = vpop.eup %10070 }
 0x1d8   : > { %9046 = vmatprep.mubr.msk.bf16.mxu1 %vm348_vm0, %v562_v36  ;;  %v553_v16 = vmul.f32 %v10071_v37, %v10949_v28  ;;  %v10073_v38 = vpop.eup %10072  ;;  %v13100_v28 = vmov 0.0  }
 0x1d9   : > { %v554_v43 = vmul.f32 %v10073_v38, %v10958_v52  ;;  %9054 = vmatprep.subr.bf16.mxu1 %v13100_v28  ;;  %9078 = vmatprep.subr.bf16.mxu0 %v13100_v28  ;;  %v11012_v52 = vld [vmem:[%s13093_s3] ss:$0 sm:$0xff] }
 0x1da   : > { %v563_v41 = vpack.c.bf16 %v553_v16, %v552_v18  ;;  %9080 = vmatprep.mubr.msk.bf16.mxu0 %vm10551_vm1, %v13100_v28 }
 0x1db   : > { %v10075_v27 = vpop.eup %10074 }
 0x1dc   : > { %9047 = vmatmul.mubr.msk.bf16.vlgmr.msra.gmra.mrb[0].mxu1 %vm348_vm0, %v563_v41  ;;  %v555_v30 = vmul.f32 %v10075_v27, %v10961_v34  ;;  %v10077_v22 = vpop.eup %10076 }
 0x1dd   : > { %v556_v48 = vmul.f32 %v10077_v22, %v10970_v0 }
 0x1de   : > { %v564_v44 = vpack.c.bf16 %v555_v30, %v554_v43 }
 0x1df   : > { %v10079_v47 = vpop.eup %10078 }
 0x1e0   : > { %9050 = vmatprep.mubr.msk.bf16.mxu1 %vm348_vm0, %v564_v44  ;;  %v557_v42 = vmul.f32 %v10079_v47, %v10973_v40 }
 0x1e2   : > { %v565_v49 = vpack.c.bf16 %v557_v42, %v556_v48 }
 0x1e4   : > { %9051 = vmatmul.mubr.msk.bf16.gmra.mrb[4].mxu1 %vm348_vm0, %v565_v49 }
 0x1e5   : > { %9056 = vmatprep.mubr.msk.bf16.mxu1 %vm10551_vm1, %v13100_v28 }
 0x29f   : > { %v9040_v34 = vpop.f32.mrb[0].mxu0 }
 0x2a0   : > { %v647_v0 = vpop.f32.mrb[1].mxu0  ;;  %v656_v56 = vadd.f32 %v9040_v34, %v11012_v52 }
 0x2a1   : > { %v648_v40 = vadd.f32 %v11012_v52, %v647_v0  ;;  %v9041_v50 = vpop.f32.mrb[2].mxu0 }
 0x2a2   : > { %v650_v51 = vpop.f32.mrb[3].mxu0  ;;  %v11029_v60 = vpack.c.bf16 %v656_v56, %v656_v56  ;;  %v659_v63 = vadd.f32 %v9041_v50, %v11012_v52 }
 0x2a3   : > { %v11019_v33 = vpack.c.bf16 %v648_v40, %v648_v40  ;;  %v651_v55 = vadd.f32 %v11012_v52, %v650_v51 }
 0x2a4   : > { %v11038_v53 = vpack.c.bf16 %v659_v63, %v659_v63 }
 0x2a5   : > { %v11023_v57 = vpack.c.bf16 %v651_v55, %v651_v55  ;;  %758 = vrot.lane.b32.xlu0 %v11019_v33, %s10552_s16 }
 0x2a7   : > { %807 = vrot.lane.b32.xlu1 %v11023_v57, %s10552_s16  ;;  %v9044_v58 = vpop.f32.mrb[4].mxu0 }
 0x2a8   : > { %v663_v59 = vpop.f32.mrb[5].mxu0  ;;  %v672_v3 = vadd.f32 %v9044_v58, %v11012_v52 }
 0x2a9   : > { %v664_v39 = vadd.f32 %v11012_v52, %v663_v59  ;;  %v9045_v1 = vpop.f32.mrb[6].mxu0 }
 0x2aa   : > { %v666_v2 = vpop.f32.mrb[7].mxu0  ;;  %v11043_v5 = vpack.c.bf16 %v672_v3, %v672_v3  ;;  %v675_v6 = vadd.f32 %v9045_v1, %v11012_v52 }
 0x2ab   : > { %v11034_v4 = vpack.c.bf16 %v664_v39, %v664_v39  ;;  %855 = vrot.lane.b32.xlu1 %v11029_v60, %s10552_s16  ;;  %v667_v61 = vadd.f32 %v11012_v52, %v666_v2 }
 0x2ac   : > { %v11058_v62 = vpack.c.bf16 %v675_v6, %v675_v6 }
 0x2ad   : > { %951 = vrot.lane.b32.xlu0 %v11034_v4, %s10552_s16  ;;  %v11048_v9 = vpack.c.bf16 %v667_v61, %v667_v61 }
 0x2af   : > { %903 = vrot.lane.b32.xlu1 %v11038_v53, %s10552_s16  ;;  %v9048_v45 = vpop.f32.mrb[0].mxu1 }
 0x2b0   : > { %v679_v46 = vpop.f32.mrb[1].mxu1  ;;  %v688_v13 = vadd.f32 %v9048_v45, %v11012_v52 }
 0x2b1   : > { %v680_v10 = vadd.f32 %v11012_v52, %v679_v46  ;;  %1047 = vrot.lane.b32.xlu0 %v11043_v5, %s10552_s16  ;;  %v9049_v11 = vpop.f32.mrb[2].mxu1 }
 0x2b2   : > { %v682_v12 = vpop.f32.mrb[3].mxu1  ;;  %v11063_v17 = vpack.c.bf16 %v688_v13, %v688_v13  ;;  %v691_v20 = vadd.f32 %v9049_v11, %v11012_v52 }
 0x2b3   : > { %v11054_v54 = vpack.c.bf16 %v680_v10, %v680_v10  ;;  %999 = vrot.lane.b32.xlu1 %v11048_v9, %s10552_s16  ;;  %v683_v14 = vadd.f32 %v11012_v52, %v682_v12 }
 0x2b4   : > { %v11078_v29 = vpack.c.bf16 %v691_v20, %v691_v20 }
 0x2b5   : > { %1143 = vrot.lane.b32.xlu0 %v11054_v54, %s10552_s16  ;;  %v11068_v23 = vpack.c.bf16 %v683_v14, %v683_v14 }
 0x2b7   : > { %1095 = vrot.lane.b32.xlu1 %v11058_v62, %s10552_s16  ;;  %v9052_v15 = vpop.f32.mrb[4].mxu1 }
 0x2b8   : > { %v695_v19 = vpop.f32.mrb[5].mxu1  ;;  %v704_v7 = vadd.f32 %v9052_v15, %v11012_v52 }
 0x2b9   : > { %v696_v24 = vadd.f32 %v11012_v52, %v695_v19  ;;  %1239 = vrot.lane.b32.xlu0 %v11063_v17, %s10552_s16  ;;  %v9053_v25 = vpop.f32.mrb[6].mxu1 }
 0x2ba   : > { %v698_v26 = vpop.f32.mrb[7].mxu1  ;;  %v11083_v31 = vpack.c.bf16 %v704_v7, %v704_v7  ;;  %v707_v32 = vadd.f32 %v9053_v25, %v11012_v52 }
 0x2bb   : > { %v11074_v8 = vpack.c.bf16 %v696_v24, %v696_v24  ;;  %1191 = vrot.lane.b32.xlu1 %v11068_v23, %s10552_s16  ;;  %v699_v21 = vadd.f32 %v11012_v52, %v698_v26 }
 0x2bc   : > { %v11094_v36 = vpack.c.bf16 %v707_v32, %v707_v32 }
 0x2bd   : > { %1335 = vrot.lane.b32.xlu0 %v11074_v8, %s10552_s16  ;;  %v11088_v35 = vpack.c.bf16 %v699_v21, %v699_v21 }
 0x2bf   : > { %1287 = vrot.lane.b32.xlu1 %v11078_v29, %s10552_s16 }
 0x2c1   : > { %1431 = vrot.lane.b32.xlu0 %v11083_v31, %s10552_s16 }
 0x2c3   : > { %1383 = vrot.lane.b32.xlu1 %v11088_v35, %s10552_s16 }
 0x2c5   : > { %1719 = vrot.lane.b32.xlu0 %v11019_v33, %s10553_s19 }
 0x2c7   : > { %1479 = vrot.lane.b32.xlu1 %v11094_v36, %s10552_s16 }
 0x2c9   : > { %1816 = vrot.lane.b32.xlu0 %v11029_v60, %s10553_s19 }
 0x2cb   : > { %1768 = vrot.lane.b32.xlu1 %v11023_v57, %s10553_s19 }
 0x2cd   : > { %1912 = vrot.lane.b32.xlu0 %v11034_v4, %s10553_s19 }
 0x2cf   : > { %1864 = vrot.lane.b32.xlu1 %v11038_v53, %s10553_s19 }
 0x2d1   : > { %2008 = vrot.lane.b32.xlu0 %v11043_v5, %s10553_s19 }
 0x2d3   : > { %2056 = vrot.lane.b32.xlu1 %v11058_v62, %s10553_s19 }
 0x2d5   : > { %2104 = vrot.lane.b32.xlu0 %v11054_v54, %s10553_s19 }
 0x2d7   : > { %2152 = vrot.lane.b32.xlu1 %v11068_v23, %s10553_s19 }
 0x2db   : > { %2200 = vrot.lane.b32.xlu1 %v11063_v17, %s10553_s19 }
 0x2df   : > { %1960 = vrot.lane.b32.xlu1 %v11048_v9, %s10553_s19 }
 0x317   : > { %v759_v37 = vpop.permute.xlu0 %758 }
 0x318   : > { %v765_v18 = vsel %vm760_vm2, %v759_v37, 0 }
 0x319   : > { %9055 = vmatpush3.bf16.xpose.msra.mxu1 %v765_v18  ;;  %v808_v16 = vpop.permute.xlu1 %807 }
 0x31a   : > { %9060 = vmatprep.subr.bf16.mxu1 %v13100_v28  ;;  %v813_v41 = vsel %vm760_vm2, %v808_v16, 0 }
 0x31d   : > { %v856_v43 = vpop.permute.xlu1 %855 }
 0x31e   : > { %v861_v22 = vsel %vm760_vm2, %v856_v43, 0 }
 0x31f   : > { %v952_v38 = vpop.permute.xlu0 %951 }
 0x320   : > { %v957_v27 = vsel %vm760_vm2, %v952_v38, 0  ;;  %9057 = vmatmul.mubr.msk.bf16.vlgmr.msra.gmra.mrb[8].mxu1 %vm760_vm2, %v11019_v33 }
 0x321   : > { %9061 = vmatpush3.bf16.xpose.msra.mxu1 %v813_v41  ;;  %9079 = vmatpush3.bf16.xpose.msra.mxu0 %v957_v27  ;;  %v904_v47 = vpop.permute.xlu1 %903 }
 0x322   : > { %9062 = vmatprep.mubr.msk.bf16.mxu1 %vm10551_vm1, %v13100_v28  ;;  %9066 = vmatprep.subr.bf16.mxu1 %v13100_v28  ;;  %v909_v42 = vsel %vm760_vm2, %v904_v47, 0 }
 0x323   : > { %9090 = vmatprep.subr.bf16.mxu0 %v13100_v28  ;;  %v1048_v30 = vpop.permute.xlu0 %1047 }
 0x324   : > { %v1053_v44 = vsel %vm760_vm2, %v1048_v30, 0 }
 0x325   : > { %v1000_v52 = vpop.permute.xlu1 %999 }
 0x326   : > { %v1005_v0 = vsel %vm760_vm2, %v1000_v52, 0 }
 0x327   : > { %v1144_v48 = vpop.permute.xlu0 %1143 }
 0x328   : > { %9063 = vmatmul.mubr.msk.bf16.vlgmr.msra.gmra.mrb[12].mxu1 %vm760_vm2, %v11023_v57  ;;  %9081 = vmatmul.mubr.msk.bf16.vlgmr.msra.gmra.mrb[8].mxu0 %vm760_vm2, %v11034_v4  ;;  %v1149_v49 = vsel %vm760_vm2, %v1144_v48, 0 }
 0x329   : > { %9067 = vmatpush3.bf16.xpose.msra.mxu1 %v861_v22  ;;  %9091 = vmatpush3.bf16.xpose.msra.mxu0 %v1053_v44  ;;  %v1096_v50 = vpop.permute.xlu1 %1095 }
 0x32a   : > { %9068 = vmatprep.mubr.msk.bf16.mxu1 %vm10551_vm1, %v13100_v28  ;;  %9092 = vmatprep.mubr.msk.bf16.mxu0 %vm10551_vm1, %v13100_v28  ;;  %v1101_v55 = vsel %vm760_vm2, %v1096_v50, 0 }
 0x32b   : > { %9072 = vmatprep.subr.bf16.mxu1 %v13100_v28  ;;  %9102 = vmatprep.subr.bf16.mxu0 %v13100_v28  ;;  %v1240_v34 = vpop.permute.xlu0 %1239 }
 0x32c   : > { %v1245_v40 = vsel %vm760_vm2, %v1240_v34, 0 }
 0x32d   : > { %v1192_v58 = vpop.permute.xlu1 %1191 }
 0x32e   : > { %v1197_v63 = vsel %vm760_vm2, %v1192_v58, 0 }
 0x32f   : > { %v1336_v51 = vpop.permute.xlu0 %1335 }
 0x330   : > { %9069 = vmatmul.mubr.msk.bf16.vlgmr.msra.gmra.mrb[16].mxu1 %vm760_vm2, %v11029_v60  ;;  %9093 = vmatmul.mubr.msk.bf16.vlgmr.msra.gmra.mrb[12].mxu0 %vm760_vm2, %v11043_v5  ;;  %v1341_v56 = vsel %vm760_vm2, %v1336_v51, 0 }
 0x331   : > { %9073 = vmatpush3.bf16.xpose.msra.mxu1 %v909_v42  ;;  %9103 = vmatpush3.bf16.xpose.msra.mxu0 %v1149_v49  ;;  %v1288_v1 = vpop.permute.xlu1 %1287 }
 0x332   : > { %9074 = vmatprep.mubr.msk.bf16.mxu1 %vm10551_vm1, %v13100_v28  ;;  %9104 = vmatprep.mubr.msk.bf16.mxu0 %vm10551_vm1, %v13100_v28  ;;  %v1293_v3 = vsel %vm760_vm2, %v1288_v1, 0 }
 0x333   : > { %9084 = vmatprep.subr.bf16.mxu1 %v13100_v28  ;;  %9114 = vmatprep.subr.bf16.mxu0 %v13100_v28  ;;  %v1432_v59 = vpop.permute.xlu0 %1431 }
 0x334   : > { %v1437_v39 = vsel %vm760_vm2, %v1432_v59, 0 }
 0x335   : > { %v1384_v45 = vpop.permute.xlu1 %1383 }
 0x336   : > { %v1389_v46 = vsel %vm760_vm2, %v1384_v45, 0 }
 0x337   : > { %v1720_v2 = vpop.permute.xlu0 %1719 }
 0x338   : > { %9075 = vmatmul.mubr.msk.bf16.vlgmr.msra.gmra.mrb[20].mxu1 %vm760_vm2, %v11038_v53  ;;  %9105 = vmatmul.mubr.msk.bf16.vlgmr.msra.gmra.mrb[16].mxu0 %vm760_vm2, %v11054_v54  ;;  %v1726_v61 = vsel %vm1724_vm3, %v1720_v2, 0 }
 0x339   : > { %9085 = vmatpush3.bf16.xpose.msra.mxu1 %v1005_v0  ;;  %9115 = vmatpush3.bf16.xpose.msra.mxu0 %v1245_v40  ;;  %v1480_v6 = vpop.permute.xlu1 %1479 }
 0x33a   : > { %9086 = vmatprep.mubr.msk.bf16.mxu1 %vm10551_vm1, %v13100_v28  ;;  %9116 = vmatprep.mubr.msk.bf16.mxu0 %vm10551_vm1, %v13100_v28  ;;  %v1485_v10 = vsel %vm760_vm2, %v1480_v6, 0 }
 0x33b   : > { %9096 = vmatprep.subr.bf16.mxu1 %v13100_v28  ;;  %9126 = vmatprep.subr.bf16.mxu0 %v13100_v28 }
 0x33d   : > { %v1769_v11 = vpop.permute.xlu1 %1768 }
 0x33e   : > { %v1774_v12 = vsel %vm1724_vm3, %v1769_v11, 0 }
 0x340   : > { %9087 = vmatmul.mubr.msk.bf16.vlgmr.msra.gmra.mrb[24].mxu1 %vm760_vm2, %v11048_v9  ;;  %9117 = vmatmul.mubr.msk.bf16.vlgmr.msra.gmra.mrb[20].mxu0 %vm760_vm2, %v11063_v17 }
 0x341   : > { %9097 = vmatpush3.bf16.xpose.msra.mxu1 %v1101_v55  ;;  %9127 = vmatpush3.bf16.xpose.msra.mxu0 %v1341_v56 }
 0x342   : > { %9098 = vmatprep.mubr.msk.bf16.mxu1 %vm10551_vm1, %v13100_v28  ;;  %9128 = vmatprep.mubr.msk.bf16.mxu0 %vm10551_vm1, %v13100_v28 }
 0x343   : > { %9108 = vmatprep.subr.bf16.mxu1 %v13100_v28  ;;  %9138 = vmatprep.subr.bf16.mxu0 %v13100_v28 }
 0x348   : > { %9099 = vmatmul.mubr.msk.bf16.vlgmr.msra.gmra.mrb[28].mxu1 %vm760_vm2, %v11058_v62  ;;  %9129 = vmatmul.mubr.msk.bf16.vlgmr.msra.gmra.mrb[24].mxu0 %vm760_vm2, %v11074_v8 }
 0x349   : > { %9109 = vmatpush3.bf16.xpose.msra.mxu1 %v1197_v63  ;;  %9139 = vmatpush3.bf16.xpose.msra.mxu0 %v1437_v39 }
 0x34a   : > { %9110 = vmatprep.mubr.msk.bf16.mxu1 %vm10551_vm1, %v13100_v28  ;;  %9140 = vmatprep.mubr.msk.bf16.mxu0 %vm10551_vm1, %v13100_v28 }
 0x34b   : > { %9120 = vmatprep.subr.bf16.mxu1 %v13100_v28  ;;  %9150 = vmatprep.subr.bf16.mxu0 %v13100_v28 }
 0x350   : > { %9111 = vmatmul.mubr.msk.bf16.vlgmr.msra.gmra.mrb[32].mxu1 %vm760_vm2, %v11068_v23  ;;  %9141 = vmatmul.mubr.msk.bf16.vlgmr.msra.gmra.mrb[28].mxu0 %vm760_vm2, %v11083_v31 }
 0x351   : > { %9121 = vmatpush3.bf16.xpose.msra.mxu1 %v1293_v3  ;;  %9151 = vmatpush3.bf16.msra.mxu0 %v1726_v61 }
 0x352   : > { %9122 = vmatprep.mubr.msk.bf16.mxu1 %vm10551_vm1, %v13100_v28  ;;  %9132 = vmatprep.subr.bf16.mxu1 %v13100_v28 }
 0x353   : > { %9152 = vmatprep.mubr.msk.bf16.mxu0 %vm10551_vm1, %v13100_v28  ;;  %9162 = vmatprep.subr.bf16.mxu0 %v13100_v28 }
 0x358   : > { %9123 = vmatmul.mubr.msk.bf16.vlgmr.msra.gmra.mrb[36].mxu1 %vm760_vm2, %v11078_v29 }
 0x359   : > { %9133 = vmatpush3.bf16.xpose.msra.mxu1 %v1389_v46  ;;  %9134 = vmatprep.mubr.msk.bf16.mxu1 %vm10551_vm1, %v13100_v28 }
 0x35a   : > { %9144 = vmatprep.subr.bf16.mxu1 %v13100_v28 }
 0x360   : > { %9135 = vmatmul.mubr.msk.bf16.vlgmr.msra.gmra.mrb[40].mxu1 %vm760_vm2, %v11088_v35 }
 0x361   : > { %9145 = vmatpush3.bf16.xpose.msra.mxu1 %v1485_v10  ;;  %9146 = vmatprep.mubr.msk.bf16.mxu1 %vm10551_vm1, %v13100_v28 }
 0x362   : > { %9156 = vmatprep.subr.bf16.mxu1 %v13100_v28 }
 0x368   : > { %9147 = vmatmul.mubr.msk.bf16.vlgmr.msra.gmra.mrb[44].mxu1 %vm760_vm2, %v11094_v36 }
 0x369   : > { %9157 = vmatpush3.bf16.msra.mxu1 %v1774_v12  ;;  %9158 = vmatprep.mubr.msk.bf16.mxu1 %vm10551_vm1, %v13100_v28 }
 0x36a   : > { %9168 = vmatprep.subr.bf16.mxu1 %v13100_v28 }
 0x3f3   : > { %v11220_v13 = vpop.f32.mrb[8].mxu1 }
 0x3f4   : > { %v9058_v14 = vpop.f32.mrb[9].mxu1  ;;  %v1527_v15 = vsel %vm760_vm2, %v11220_v13, -inf }
 0x3f5   : > { %1528 = vmax.xlane.f32.xlu0 %v1527_v15  ;;  %v804_v19 = vpop.f32.mrb[10].mxu1 }
 0x3f6   : > { %v9059_v20 = vpop.f32.mrb[11].mxu1 }
 0x3fb   : > { %v11224_v24 = vpop.f32.mrb[12].mxu1  ;;  %v11226_v25 = vpop.f32.mrb[8].mxu0 }
 0x3fc   : > { %v9064_v26 = vpop.f32.mrb[13].mxu1  ;;  %v9082_v7 = vpop.f32.mrb[9].mxu0  ;;  %v1530_v21 = vsel %vm760_vm2, %v11224_v24, -inf  ;;  %v1539_v32 = vsel %vm760_vm2, %v11226_v25, -inf }
 0x3fd   : > { %1531 = vmax.xlane.f32.xlu1 %v1530_v21  ;;  %v852_v37 = vpop.f32.mrb[14].mxu1  ;;  %1540 = vmax.xlane.f32.xlu0 %v1539_v32  ;;  %v996_v18 = vpop.f32.mrb[10].mxu0 }
 0x3fe   : > { %v9065_v16 = vpop.f32.mrb[15].mxu1  ;;  %v9083_v38 = vpop.f32.mrb[11].mxu0 }
 0x403   : > { %v11232_v41 = vpop.f32.mrb[16].mxu1  ;;  %v11234_v27 = vpop.f32.mrb[12].mxu0 }
 0x404   : > { %v9070_v43 = vpop.f32.mrb[17].mxu1  ;;  %v9094_v30 = vpop.f32.mrb[13].mxu0  ;;  %v1533_v22 = vsel %vm760_vm2, %v11232_v41, -inf  ;;  %v1545_v49 = vsel %vm760_vm2, %v11234_v27, -inf }
 0x405   : > { %v900_v44 = vpop.f32.mrb[18].mxu1  ;;  %1534 = vmax.xlane.f32.xlu0 %v1533_v22  ;;  %v1092_v47 = vpop.f32.mrb[14].mxu0 }
 0x406   : > { %v9071_v48 = vpop.f32.mrb[19].mxu1  ;;  %v9095_v42 = vpop.f32.mrb[15].mxu0 }
 0x409   : > { %1546 = vmax.xlane.f32.xlu0 %v1545_v49 }
 0x40b   : > { %v11240_v52 = vpop.f32.mrb[20].mxu1  ;;  %v11242_v34 = vpop.f32.mrb[16].mxu0 }
 0x40c   : > { %v9076_v0 = vpop.f32.mrb[21].mxu1  ;;  %v9106_v40 = vpop.f32.mrb[17].mxu0  ;;  %v1536_v50 = vsel %vm760_vm2, %v11240_v52, -inf  ;;  %v1551_v59 = vsel %vm760_vm2, %v11242_v34, -inf }
 0x40d   : > { %v948_v51 = vpop.f32.mrb[22].mxu1  ;;  %1537 = vmax.xlane.f32.xlu0 %v1536_v50  ;;  %v1188_v55 = vpop.f32.mrb[18].mxu0 }
 0x40e   : > { %v9077_v56 = vpop.f32.mrb[23].mxu1  ;;  %v9107_v58 = vpop.f32.mrb[19].mxu0 }
 0x411   : > { %1552 = vmax.xlane.f32.xlu0 %v1551_v59 }
 0x413   : > { %v11248_v63 = vpop.f32.mrb[24].mxu1  ;;  %v11250_v39 = vpop.f32.mrb[20].mxu0 }
 0x414   : > { %v9088_v1 = vpop.f32.mrb[25].mxu1  ;;  %v9118_v2 = vpop.f32.mrb[21].mxu0  ;;  %v1542_v3 = vsel %vm760_vm2, %v11248_v63, -inf  ;;  %v1557_v61 = vsel %vm760_vm2, %v11250_v39, -inf }
 0x415   : > { %1543 = vmax.xlane.f32.xlu1 %v1542_v3  ;;  %v1044_v45 = vpop.f32.mrb[26].mxu1  ;;  %1558 = vmax.xlane.f32.xlu0 %v1557_v61  ;;  %v1284_v46 = vpop.f32.mrb[22].mxu0 }
 0x416   : > { %v9089_v6 = vpop.f32.mrb[27].mxu1  ;;  %v9119_v10 = vpop.f32.mrb[23].mxu0 }
 0x417   : > { %v11288_v46 = vpop.permute.xlu0 %1816  ;;  %v11290_v6 = vpop.permute.xlu1 %1864 }
 0x41b   : > { %v11256_v11 = vpop.f32.mrb[28].mxu1  ;;  %v11258_v12 = vpop.f32.mrb[24].mxu0 }
 0x41c   : > { %v9100_v14 = vpop.f32.mrb[29].mxu1  ;;  %v9130_v15 = vpop.f32.mrb[25].mxu0  ;;  %v1548_v19 = vsel %vm760_vm2, %v11256_v11, -inf  ;;  %v1563_v20 = vsel %vm760_vm2, %v11258_v12, -inf }
 0x41d   : > { %1549 = vmax.xlane.f32.xlu1 %v1548_v19  ;;  %v1140_v26 = vpop.f32.mrb[30].mxu1  ;;  %1564 = vmax.xlane.f32.xlu0 %v1563_v20  ;;  %v1380_v7 = vpop.f32.mrb[26].mxu0 }
 0x41e   : > { %v9101_v21 = vpop.f32.mrb[31].mxu1  ;;  %v9131_v32 = vpop.f32.mrb[27].mxu0 }
 0x41f   : > { %v11292_v10 = vpop.permute.xlu0 %1912  ;;  %v11294_v14 = vpop.permute.xlu1 %2056 }
 0x423   : > { %v11264_v37 = vpop.f32.mrb[32].mxu1  ;;  %v11266_v18 = vpop.f32.mrb[28].mxu0 }
 0x424   : > { %v9112_v16 = vpop.f32.mrb[33].mxu1  ;;  %v9142_v38 = vpop.f32.mrb[29].mxu0  ;;  %v1554_v43 = vsel %vm760_vm2, %v11264_v37, -inf  ;;  %v1569_v30 = vsel %vm760_vm2, %v11266_v18, -inf }
 0x425   : > { %1555 = vmax.xlane.f32.xlu1 %v1554_v43  ;;  %v1236_v22 = vpop.f32.mrb[34].mxu1  ;;  %1570 = vmax.xlane.f32.xlu0 %v1569_v30  ;;  %v1476_v44 = vpop.f32.mrb[30].mxu0 }
 0x426   : > { %v9113_v47 = vpop.f32.mrb[35].mxu1  ;;  %v9143_v48 = vpop.f32.mrb[31].mxu0 }
 0x427   : > { %v11296_v15 = vpop.permute.xlu0 %2008  ;;  %v11298_v19 = vpop.permute.xlu1 %2152 }
 0x42b   : > { %v11272_v42 = vpop.f32.mrb[36].mxu1  ;;  %v11300_v20 = vpop.permute.xlu0 %2104 }
 0x42c   : > { %v9124_v49 = vpop.f32.mrb[37].mxu1  ;;  %v1560_v3 = vsel %vm760_vm2, %v11272_v42, -inf  ;;  %v11302_v26 = vpop.permute.xlu1 %2200 }
 0x42d   : > { %v1332_v0 = vpop.f32.mrb[38].mxu1 }
 0x42e   : > { %v9125_v40 = vpop.f32.mrb[39].mxu1 }
 0x430   : > { %v11305_v16 = vpop.permute.xlu1 %1960 }
 0x433   : > { %v11274_v50 = vpop.f32.mrb[40].mxu1 }
 0x434   : > { %v9136_v51 = vpop.f32.mrb[41].mxu1  ;;  %v1566_v61 = vsel %vm760_vm2, %v11274_v50, -inf }
 0x435   : > { %v1428_v55 = vpop.f32.mrb[42].mxu1 }
 0x436   : > { %2248 = vrot.lane.b32.xlu1 %v11078_v29, %s10553_s19  ;;  %v9137_v56 = vpop.f32.mrb[43].mxu1 }
 0x43b   : > { %v11278_v58 = vpop.f32.mrb[44].mxu1  ;;  %2296 = vrot.lane.b32.xlu0 %v11074_v8, %s10553_s19 }
 0x43c   : > { %v9148_v59 = vpop.f32.mrb[45].mxu1  ;;  %v1572_v45 = vsel %vm760_vm2, %v11278_v58, -inf }
 0x43d   : > { %v1524_v1 = vpop.f32.mrb[46].mxu1 }
 0x43e   : > { %v9149_v2 = vpop.f32.mrb[47].mxu1 }
 0x45a   : > { %1561 = vmax.xlane.f32.xlu1 %v1560_v3 }
 0x45e   : > { %1567 = vmax.xlane.f32.xlu1 %v1566_v61 }
 0x462   : > { %1573 = vmax.xlane.f32.xlu1 %v1572_v45 }
 0x482   : > { %v1529_v7 = vpop.xlane.xlu0 %1528 }
 0x483   : > { %v1575_v21 = vsub.f32 %v11220_v13, %v1529_v7 }
 0x485   : > { %v1591_v32 = vmul.f32 1.442695, %v1575_v21 }
 0x487   : > { %10080 = vpow2.f32 %v1591_v32 }
 0x48a   : > { %v1532_v38 = vpop.xlane.xlu1 %1531  ;;  %v1541_v43 = vpop.xlane.xlu0 %1540 }
 0x48b   : > { %v1576_v30 = vsub.f32 %v11224_v24, %v1532_v38  ;;  %v1579_v22 = vsub.f32 %v11226_v25, %v1541_v43 }
 0x48d   : > { %v1593_v44 = vmul.f32 1.442695, %v1576_v30  ;;  %v1599_v47 = vmul.f32 1.442695, %v1579_v22 }
 0x48f   : > { %10082 = vpow2.f32 %v1593_v44 }
 0x490   : > { %10084 = vpow2.f32 %v1599_v47 }
 0x491   : > { %v11309_v48 = vpop.eup %10080 }
 0x492   : > { %v1535_v49 = vpop.xlane.xlu0 %1534  ;;  %v1623_v13 = vsel %vm760_vm2, %v11309_v48, 0.0 }
 0x493   : > { %v1577_v0 = vsub.f32 %v11232_v41, %v1535_v49  ;;  %1624 = vadd.xlane.f32.xlu0 %v1623_v13 }
 0x495   : > { %v1595_v40 = vmul.f32 1.442695, %v1577_v0 }
 0x496   : > { %v1547_v51 = vpop.xlane.xlu0 %1546 }
 0x497   : > { %10086 = vpow2.f32 %v1595_v40  ;;  %v1581_v24 = vsub.f32 %v11234_v27, %v1547_v51 }
 0x499   : > { %v11315_v55 = vpop.eup %10082  ;;  %v1603_v25 = vmul.f32 1.442695, %v1581_v24 }
 0x49a   : > { %v11317_v56 = vpop.eup %10084  ;;  %v1538_v59 = vpop.xlane.xlu0 %1537  ;;  %v1626_v1 = vsel %vm760_vm2, %v11315_v55, 0.0 }
 0x49b   : > { %10088 = vpow2.f32 %v1603_v25  ;;  %v1578_v2 = vsub.f32 %v11240_v52, %v1538_v59  ;;  %1627 = vadd.xlane.f32.xlu1 %v1626_v1  ;;  %v1635_v41 = vsel %vm760_vm2, %v11317_v56, 0.0 }
 0x49c   : > { %1636 = vadd.xlane.f32.xlu0 %v1635_v41 }
 0x49d   : > { %v1597_v3 = vmul.f32 1.442695, %v1578_v2 }
 0x49e   : > { %v1553_v61 = vpop.xlane.xlu0 %1552 }
 0x49f   : > { %10090 = vpow2.f32 %v1597_v3  ;;  %v1583_v27 = vsub.f32 %v11242_v34, %v1553_v61 }
 0x4a1   : > { %v11325_v45 = vpop.eup %10086  ;;  %v1607_v7 = vmul.f32 1.442695, %v1583_v27 }
 0x4a2   : > { %v1544_v21 = vpop.xlane.xlu1 %1543  ;;  %v1559_v32 = vpop.xlane.xlu0 %1558  ;;  %v1629_v38 = vsel %vm760_vm2, %v11325_v45, 0.0 }
 0x4a3   : > { %10092 = vpow2.f32 %v1607_v7  ;;  %v1580_v52 = vsub.f32 %v11248_v63, %v1544_v21  ;;  %v1585_v43 = vsub.f32 %v11250_v39, %v1559_v32  ;;  %1630 = vadd.xlane.f32.xlu0 %v1629_v38 }
 0x4a5   : > { %v11331_v30 = vpop.eup %10088  ;;  %v1601_v22 = vmul.f32 1.442695, %v1580_v52  ;;  %v1611_v44 = vmul.f32 1.442695, %v1585_v43 }
 0x4a6   : > { %v1641_v34 = vsel %vm760_vm2, %v11331_v30, 0.0 }
 0x4a7   : > { %10094 = vpow2.f32 %v1601_v22  ;;  %1642 = vadd.xlane.f32.xlu0 %v1641_v34 }
 0x4a8   : > { %10096 = vpow2.f32 %v1611_v44 }
 0x4a9   : > { %v11335_v47 = vpop.eup %10090 }
 0x4aa   : > { %v1550_v49 = vpop.xlane.xlu1 %1549  ;;  %v1632_v13 = vsel %vm760_vm2, %v11335_v47, 0.0 }
 0x4ab   : > { %v1582_v63 = vsub.f32 %v11256_v11, %v1550_v49  ;;  %1633 = vadd.xlane.f32.xlu1 %v1632_v13 }
 0x4ad   : > { %v11340_v39 = vpop.eup %10092  ;;  %v1605_v0 = vmul.f32 1.442695, %v1582_v63 }
 0x4ae   : > { %v1647_v40 = vsel %vm760_vm2, %v11340_v39, 0.0 }
 0x4af   : > { %10098 = vpow2.f32 %v1605_v0  ;;  %1648 = vadd.xlane.f32.xlu1 %v1647_v40 }
 0x4b1   : > { %v11344_v51 = vpop.eup %10094 }
 0x4b2   : > { %v1556_v24 = vpop.xlane.xlu1 %1555  ;;  %v1638_v25 = vsel %vm760_vm2, %v11344_v51, 0.0  ;;  %v11348_v59 = vpop.eup %10096 }
 0x4b3   : > { %v1584_v1 = vsub.f32 %v11264_v37, %v1556_v24  ;;  %1639 = vadd.xlane.f32.xlu1 %v1638_v25  ;;  %v1653_v2 = vsel %vm760_vm2, %v11348_v59, 0.0  ;;  %v1565_v37 = vpop.xlane.xlu0 %1564 }
 0x4b4   : > { %v1587_v7 = vsub.f32 %v11258_v12, %v1565_v37 }
 0x4b5   : > { %v1609_v11 = vmul.f32 1.442695, %v1584_v1 }
 0x4b6   : > { %v1615_v32 = vmul.f32 1.442695, %v1587_v7  ;;  %v11365_v43 = vpop.permute.xlu1 %2248 }
 0x4b7   : > { %10100 = vpow2.f32 %v1609_v11  ;;  %1654 = vadd.xlane.f32.xlu1 %v1653_v2  ;;  %v1571_v21 = vpop.xlane.xlu0 %1570 }
 0x4b8   : > { %v1589_v38 = vsub.f32 %v11266_v18, %v1571_v21  ;;  %10102 = vpow2.f32 %v1615_v32 }
 0x4b9   : > { %v11353_v41 = vpop.eup %10098 }
 0x4ba   : > { %v1644_v3 = vsel %vm760_vm2, %v11353_v41, 0.0  ;;  %v1619_v52 = vmul.f32 1.442695, %v1589_v38 }
 0x4bb   : > { %1645 = vadd.xlane.f32.xlu1 %v1644_v3  ;;  %v11400_v2 = vpop.permute.xlu0 %2296 }
 0x4bc   : > { %10104 = vpow2.f32 %v1619_v52  ;;  %v1822_v52 = vsel %vm1724_vm3, %v11288_v46, 0 }
 0x4c1   : > { %v11357_v61 = vpop.eup %10100 }
 0x4c2   : > { %v1650_v27 = vsel %vm760_vm2, %v11357_v61, 0.0  ;;  %v11368_v13 = vpop.eup %10102 }
 0x4c3   : > { %1651 = vadd.xlane.f32.xlu0 %v1650_v27  ;;  %v1659_v0 = vsel %vm760_vm2, %v11368_v13, 0.0 }
 0x4c6   : > { %v11373_v18 = vpop.eup %10104 }
 0x4c7   : > { %v1665_v40 = vsel %vm760_vm2, %v11373_v18, 0.0 }
 0x4cc   : > { %2344 = vrot.lane.b32.xlu1 %v11088_v35, %s10553_s19 }
 0x4e7   : > { %v1562_v22 = vpop.xlane.xlu1 %1561 }
 0x4e8   : > { %v1586_v44 = vsub.f32 %v11272_v42, %v1562_v22 }
 0x4ea   : > { %v1613_v34 = vmul.f32 1.442695, %v1586_v44 }
 0x4eb   : > { %v1568_v49 = vpop.xlane.xlu1 %1567 }
 0x4ec   : > { %10106 = vpow2.f32 %v1613_v34  ;;  %v1588_v63 = vsub.f32 %v11274_v50, %v1568_v49  ;;  %v1870_v49 = vsel %vm1724_vm3, %v11290_v6, 0 }
 0x4ee   : > { %v1617_v12 = vmul.f32 1.442695, %v1588_v63 }
 0x4ef   : > { %v1574_v1 = vpop.xlane.xlu1 %1573 }
 0x4f0   : > { %10108 = vpow2.f32 %v1617_v12  ;;  %1660 = vadd.xlane.f32.xlu1 %v1659_v0  ;;  %v1590_v11 = vsub.f32 %v11278_v58, %v1574_v1 }
 0x4f2   : > { %v1621_v3 = vmul.f32 1.442695, %v1590_v11 }
 0x4f4   : > { %1666 = vadd.xlane.f32.xlu1 %v1665_v40 }
 0x4f6   : > { %v11377_v42 = vpop.eup %10106 }
 0x4f7   : > { %v1656_v24 = vsel %vm760_vm2, %v11377_v42, 0.0 }
 0x4f8   : > { %1657 = vadd.xlane.f32.xlu0 %v1656_v24 }
 0x4fa   : > { %v11381_v25 = vpop.eup %10108 }
 0x4fb   : > { %v1662_v50 = vsel %vm760_vm2, %v11381_v25, 0.0 }
 0x4fc   : > { %1663 = vadd.xlane.f32.xlu0 %v1662_v50  ;;  %v1918_v50 = vsel %vm1724_vm3, %v11292_v10, 0 }
 0x505   : > { %2440 = vrot.lane.b32.xlu1 %v11094_v36, %s10553_s19 }
 0x509   : > { %2549 = vrot.lane.b32.xlu1 %v11023_v57, %s10554_s7 }
 0x50d   : > { %2547 = vrot.lane.b32.xlu1 %v11023_v57, %s10555_s9 }
 0x511   : > { %2649 = vrot.lane.b32.xlu1 %v11038_v53, %s10554_s7 }
 0x512   : > { %2392 = vrot.lane.b32.xlu0 %v11083_v31, %s10553_s19  ;;  %s12979_s19 = scalar_lea.vmem [#allocation10], %s8516_s12  ;;  %s8731_s12 = sshll.u32 %s10622_s25, 11 }
 0x515   : > { %2647 = vrot.lane.b32.xlu1 %v11038_v53, %s10555_s9 }
 0x519   : > { %2749 = vrot.lane.b32.xlu1 %v11048_v9, %s10554_s7 }
 0x51d   : > { %2747 = vrot.lane.b32.xlu1 %v11048_v9, %s10555_s9 }
 0x520   : > { %v1625_v27 = vpop.xlane.xlu0 %1624 }
 0x521   : > { %10110 = vrcp.f32 %v1625_v27  ;;  %2849 = vrot.lane.b32.xlu1 %v11058_v62, %s10554_s7 }
 0x522   : > { %10112 = vpow2.f32 %v1621_v3 }
 0x525   : > { %2847 = vrot.lane.b32.xlu1 %v11058_v62, %s10555_s9 }
 0x528   : > { %v1628_v37 = vpop.xlane.xlu1 %1627 }
 0x529   : > { %10114 = vrcp.f32 %v1628_v37  ;;  %2949 = vrot.lane.b32.xlu1 %v11068_v23, %s10554_s7  ;;  %v1637_v7 = vpop.xlane.xlu0 %1636 }
 0x52b   : > { %v10111_v58 = vpop.eup %10110 }
 0x52c   : > { %v1687_v21 = vmul.f32 %v10111_v58, %v11309_v48  ;;  %v11411_v32 = vpop.eup %10112 }
 0x52d   : > { %2947 = vrot.lane.b32.xlu1 %v11068_v23, %s10555_s9  ;;  %v1668_v44 = vsel %vm760_vm2, %v11411_v32, 0.0 }
 0x52e   : > { %v1703_v38 = vpack.c.bf16 %v1687_v21, %v1687_v21 }
 0x530   : > { %9153 = vmatmul.mubr.msk.bf16.vlgmr.msra.gmra.mrb[32].mxu0 %vm760_vm2, %v1703_v38  ;;  %v1631_v22 = vpop.xlane.xlu0 %1630 }
 0x531   : > { %9163 = vmatpush3.bf16.msra.mxu0 %v1822_v52  ;;  %10116 = vrcp.f32 %v1631_v22  ;;  %1669 = vadd.xlane.f32.xlu0 %v1668_v44  ;;  %v2062_v22 = vsel %vm1724_vm3, %v11294_v14, 0  ;;  %v2110_v44 = vsel %vm1724_vm3, %v11300_v20, 0 }
 0x532   : > { %3049 = vrot.lane.b32.xlu1 %v11078_v29, %s10554_s7  ;;  %9164 = vmatprep.mubr.msk.bf16.mxu0 %vm10551_vm1, %v13100_v28  ;;  %10118 = vrcp.f32 %v1637_v7  ;;  %v2014_v7 = vsel %vm1724_vm3, %v11296_v15, 0 }
 0x533   : > { %v10115_v48 = vpop.eup %10114  ;;  %9174 = vmatprep.subr.bf16.mxu0 %v13100_v28 }
 0x534   : > { %v1688_v46 = vmul.f32 %v10115_v48, %v11315_v55  ;;  %v1643_v12 = vpop.xlane.xlu0 %1642 }
 0x536   : > { %3047 = vrot.lane.b32.xlu1 %v11078_v29, %s10555_s9  ;;  %v1704_v34 = vpack.c.bf16 %v1688_v46, %v1688_v46 }
 0x538   : > { %9159 = vmatmul.mubr.msk.bf16.vlgmr.msra.gmra.mrb[48].mxu1 %vm760_vm2, %v1704_v34  ;;  %v1634_v63 = vpop.xlane.xlu1 %1633 }
 0x539   : > { %9169 = vmatpush3.bf16.msra.mxu1 %v1870_v49  ;;  %10120 = vrcp.f32 %v1634_v63  ;;  %9170 = vmatprep.mubr.msk.bf16.mxu1 %vm10551_vm1, %v13100_v28  ;;  %v2206_v63 = vsel %vm1724_vm3, %v11302_v26, 0 }
 0x53a   : > { %3149 = vrot.lane.b32.xlu1 %v11088_v35, %s10554_s7  ;;  %9180 = vmatprep.subr.bf16.mxu1 %v13100_v28  ;;  %10122 = vrcp.f32 %v1643_v12 }
 0x53b   : > { %v10117_v55 = vpop.eup %10116 }
 0x53c   : > { %v1649_v0 = vpop.xlane.xlu1 %1648  ;;  %v1689_v40 = vmul.f32 %v10117_v55, %v11325_v45  ;;  %v10119_v24 = vpop.eup %10118 }
 0x53d   : > { %v1691_v45 = vmul.f32 %v10119_v24, %v11317_v56  ;;  %v1966_v56 = vsel %vm1724_vm3, %v11305_v16, 0 }
 0x53e   : > { %3147 = vrot.lane.b32.xlu1 %v11088_v35, %s10555_s9  ;;  %v1705_v6 = vpack.c.bf16 %v1689_v40, %v1689_v40 }
 0x53f   : > { %v1707_v37 = vpack.c.bf16 %v1691_v45, %v1691_v45 }
 0x540   : > { %v1640_v1 = vpop.xlane.xlu1 %1639  ;;  %9165 = vmatmul.mubr.msk.bf16.vlgmr.msra.gmra.mrb[36].mxu0 %vm760_vm2, %v1705_v6 }
 0x541   : > { %10124 = vrcp.f32 %v1640_v1  ;;  %9175 = vmatpush3.bf16.msra.mxu0 %v1918_v50  ;;  %9176 = vmatprep.mubr.msk.bf16.mxu0 %vm10551_vm1, %v13100_v28 }
 0x542   : > { %3249 = vrot.lane.b32.xlu1 %v11094_v36, %s10554_s7  ;;  %9186 = vmatprep.subr.bf16.mxu0 %v13100_v28  ;;  %10126 = vrcp.f32 %v1649_v0  ;;  %v2254_v0 = vsel %vm1724_vm3, %v11365_v43, 0 }
 0x543   : > { %v10121_v11 = vpop.eup %10120 }
 0x544   : > { %v1655_v3 = vpop.xlane.xlu1 %1654  ;;  %v1690_v27 = vmul.f32 %v10121_v11, %v11335_v47  ;;  %v10123_v58 = vpop.eup %10122 }
 0x545   : > { %v1693_v15 = vmul.f32 %v10123_v58, %v11331_v30 }
 0x546   : > { %3247 = vrot.lane.b32.xlu1 %v11094_v36, %s10555_s9  ;;  %v1706_v10 = vpack.c.bf16 %v1690_v27, %v1690_v27 }
 0x547   : > { %2499 = vrot.lane.b32.xlu0 %v11019_v33, %s10554_s7  ;;  %v1709_v52 = vpack.c.bf16 %v1693_v15, %v1693_v15 }
 0x548   : > { %9171 = vmatmul.mubr.msk.bf16.vlgmr.msra.gmra.mrb[52].mxu1 %vm760_vm2, %v1706_v10  ;;  %v1646_v21 = vpop.xlane.xlu1 %1645  ;;  %9177 = vmatmul.mubr.msk.bf16.vlgmr.msra.gmra.mrb[40].mxu0 %vm760_vm2, %v1707_v37 }
 0x549   : > { %9181 = vmatpush3.bf16.msra.mxu1 %v1966_v56  ;;  %10128 = vrcp.f32 %v1646_v21  ;;  %9187 = vmatpush3.bf16.msra.mxu0 %v2014_v7 }
 0x54a   : > { %3537 = vrot.lane.b32.xlu1 %v11023_v57, %s10556_s26  ;;  %9182 = vmatprep.mubr.msk.bf16.mxu1 %vm10551_vm1, %v13100_v28  ;;  %10130 = vrcp.f32 %v1655_v3 }
 0x54b   : > { %v10125_v47 = vpop.eup %10124  ;;  %2497 = vrot.lane.b32.xlu0 %v11019_v33, %s10555_s9  ;;  %9188 = vmatprep.mubr.msk.bf16.mxu0 %vm10551_vm1, %v13100_v28 }
 0x54c   : > { %9192 = vmatprep.subr.bf16.mxu1 %v13100_v28  ;;  %9198 = vmatprep.subr.bf16.mxu0 %v13100_v28  ;;  %v1692_v16 = vmul.f32 %v10125_v47, %v11344_v51  ;;  %v10127_v30 = vpop.eup %10126 }
 0x54d   : > { %v1695_v48 = vmul.f32 %v10127_v30, %v11340_v39  ;;  %v2158_v39 = vsel %vm1724_vm3, %v11298_v19, 0 }
 0x54e   : > { %3633 = vrot.lane.b32.xlu1 %v11038_v53, %s10556_s26  ;;  %v1708_v38 = vpack.c.bf16 %v1692_v16, %v1692_v16 }
 0x54f   : > { %2599 = vrot.lane.b32.xlu0 %v11029_v60, %s10554_s7  ;;  %v1711_v34 = vpack.c.bf16 %v1695_v48, %v1695_v48 }
 0x550   : > { %9183 = vmatmul.mubr.msk.bf16.vlgmr.msra.gmra.mrb[56].mxu1 %vm760_vm2, %v1708_v38  ;;  %9189 = vmatmul.mubr.msk.bf16.vlgmr.msra.gmra.mrb[44].mxu0 %vm760_vm2, %v1709_v52  ;;  %v1652_v51 = vpop.xlane.xlu0 %1651 }
 0x551   : > { %9193 = vmatpush3.bf16.msra.mxu1 %v2062_v22  ;;  %9199 = vmatpush3.bf16.msra.mxu0 %v2110_v44  ;;  %10132 = vrcp.f32 %v1652_v51 }
 0x552   : > { %3729 = vrot.lane.b32.xlu1 %v11048_v9, %s10556_s26  ;;  %9194 = vmatprep.mubr.msk.bf16.mxu1 %vm10551_vm1, %v13100_v28 }
 0x553   : > { %v10129_v14 = vpop.eup %10128  ;;  %2597 = vrot.lane.b32.xlu0 %v11029_v60, %s10555_s9  ;;  %9200 = vmatprep.mubr.msk.bf16.mxu0 %vm10551_vm1, %v13100_v28 }
 0x554   : > { %9204 = vmatprep.subr.bf16.mxu1 %v13100_v28  ;;  %9210 = vmatprep.subr.bf16.mxu0 %v13100_v28  ;;  %v1694_v20 = vmul.f32 %v10129_v14, %v11353_v41  ;;  %v10131_v49 = vpop.eup %10130 }
 0x555   : > { %v1697_v41 = vmul.f32 %v10131_v49, %v11348_v59  ;;  %v2302_v59 = vsel %vm1724_vm3, %v11400_v2, 0 }
 0x556   : > { %3825 = vrot.lane.b32.xlu1 %v11058_v62, %s10556_s26  ;;  %v1710_v46 = vpack.c.bf16 %v1694_v20, %v1694_v20 }
 0x557   : > { %2699 = vrot.lane.b32.xlu0 %v11034_v4, %s10554_s7  ;;  %v1713_v55 = vpack.c.bf16 %v1697_v41, %v1697_v41 }
 0x558   : > { %9195 = vmatmul.mubr.msk.bf16.vlgmr.msra.gmra.mrb[60].mxu1 %vm760_vm2, %v1710_v46  ;;  %9201 = vmatmul.mubr.msk.bf16.vlgmr.msra.gmra.mrb[48].mxu0 %vm760_vm2, %v1711_v34 }
 0x559   : > { %9205 = vmatpush3.bf16.msra.mxu1 %v2158_v39  ;;  %9211 = vmatpush3.bf16.msra.mxu0 %v2206_v63 }
 0x55a   : > { %9206 = vmatprep.mubr.msk.bf16.mxu1 %vm10551_vm1, %v13100_v28  ;;  %9212 = vmatprep.mubr.msk.bf16.mxu0 %vm10551_vm1, %v13100_v28 }
 0x55b   : > { %v10133_v12 = vpop.eup %10132  ;;  %2697 = vrot.lane.b32.xlu0 %v11034_v4, %s10555_s9  ;;  %9216 = vmatprep.subr.bf16.mxu1 %v13100_v28 }
 0x55c   : > { %9222 = vmatprep.subr.bf16.mxu0 %v13100_v28  ;;  %v1696_v19 = vmul.f32 %v10133_v12, %v11357_v61  ;;  %v2345_v61 = vpop.permute.xlu1 %2344 }
 0x55d   : > { %v2350_v56 = vsel %vm1724_vm3, %v2345_v61, 0 }
 0x55e   : > { %v1712_v26 = vpack.c.bf16 %v1696_v19, %v1696_v19 }
 0x55f   : > { %2799 = vrot.lane.b32.xlu0 %v11043_v5, %s10554_s7 }
 0x560   : > { %9207 = vmatmul.mubr.msk.bf16.vlgmr.msra.gmra.mrb[64].mxu1 %vm760_vm2, %v1712_v26  ;;  %9213 = vmatmul.mubr.msk.bf16.vlgmr.msra.gmra.mrb[52].mxu0 %vm760_vm2, %v1713_v55 }
 0x561   : > { %9217 = vmatpush3.bf16.msra.mxu1 %v2254_v0  ;;  %9223 = vmatpush3.bf16.msra.mxu0 %v2302_v59 }
 0x562   : > { %9224 = vmatprep.mubr.msk.bf16.mxu0 %vm10551_vm1, %v13100_v28  ;;  %9234 = vmatprep.subr.bf16.mxu0 %v13100_v28 }
 0x563   : > { %2797 = vrot.lane.b32.xlu0 %v11043_v5, %s10555_s9  ;;  %9218 = vmatprep.mubr.msk.bf16.mxu1 %vm10551_vm1, %v13100_v28 }
 0x564   : > { %9228 = vmatprep.subr.bf16.mxu1 %v13100_v28 }
 0x567   : > { %2899 = vrot.lane.b32.xlu0 %v11054_v54, %s10554_s7 }
 0x56b   : > { %2897 = vrot.lane.b32.xlu0 %v11054_v54, %s10555_s9 }
 0x56f   : > { %2999 = vrot.lane.b32.xlu0 %v11063_v17, %s10554_s7 }
 0x573   : > { %2997 = vrot.lane.b32.xlu0 %v11063_v17, %s10555_s9 }
 0x577   : > { %3099 = vrot.lane.b32.xlu0 %v11074_v8, %s10554_s7 }
 0x57b   : > { %3097 = vrot.lane.b32.xlu0 %v11074_v8, %s10555_s9 }
 0x57d   : > { %v1661_v43 = vpop.xlane.xlu1 %1660 }
 0x57e   : > { %10134 = vrcp.f32 %v1661_v43 }
 0x57f   : > { %3199 = vrot.lane.b32.xlu0 %v11083_v31, %s10554_s7  ;;  %s8404_s7 = sshll.u32 %s12979_s19, 4  ;;  %s13039_s7 = int_to_ptr.vmem [resolvable:$true] %s8404_s7 }
 0x581   : > { %v1667_v2 = vpop.xlane.xlu1 %1666 }
 0x582   : > { %10136 = vrcp.f32 %v1667_v2 }
 0x583   : > { %3197 = vrot.lane.b32.xlu0 %v11083_v31, %s10555_s9 }
 0x585   : > { %v1658_v40 = vpop.xlane.xlu0 %1657 }
 0x586   : > { %10138 = vrcp.f32 %v1658_v40 }
 0x587   : > { %3489 = vrot.lane.b32.xlu0 %v11019_v33, %s10556_s26 }
 0x588   : > { %v10135_v6 = vpop.eup %10134 }
 0x589   : > { %v1664_v24 = vpop.xlane.xlu0 %1663  ;;  %v1699_v50 = vmul.f32 %v10135_v6, %v11368_v13 }
 0x58a   : > { %10140 = vrcp.f32 %v1664_v24 }
 0x58b   : > { %3585 = vrot.lane.b32.xlu0 %v11029_v60, %s10556_s26  ;;  %v1715_v1 = vpack.c.bf16 %v1699_v50, %v1699_v50 }
 0x58c   : > { %v10137_v45 = vpop.eup %10136 }
 0x58d   : > { %9225 = vmatmul.mubr.msk.bf16.vlgmr.msra.gmra.mrb[56].mxu0 %vm760_vm2, %v1715_v1  ;;  %v2393_v11 = vpop.permute.xlu0 %2392  ;;  %v1701_v13 = vmul.f32 %v10137_v45, %v11373_v18 }
 0x58e   : > { %v2398_v3 = vsel %vm1724_vm3, %v2393_v11, 0  ;;  %9236 = vmatprep.mubr.msk.bf16.mxu0 %vm10551_vm1, %v13100_v28 }
 0x58f   : > { %3681 = vrot.lane.b32.xlu0 %v11034_v4, %s10556_s26  ;;  %9235 = vmatpush3.bf16.msra.mxu0 %v2398_v3  ;;  %v1717_v58 = vpack.c.bf16 %v1701_v13, %v1701_v13 }
 0x590   : > { %v10139_v27 = vpop.eup %10138  ;;  %9246 = vmatprep.subr.bf16.mxu0 %v13100_v28 }
 0x591   : > { %v1698_v10 = vmul.f32 %v10139_v27, %v11377_v42  ;;  %v2441_v42 = vpop.permute.xlu1 %2440 }
 0x592   : > { %v2446_v15 = vsel %vm1724_vm3, %v2441_v42, 0 }
 0x593   : > { %3777 = vrot.lane.b32.xlu0 %v11043_v5, %s10556_s26  ;;  %v1714_v37 = vpack.c.bf16 %v1698_v10, %v1698_v10 }
 0x594   : > { %v10141_v7 = vpop.eup %10140 }
 0x595   : > { %9219 = vmatmul.mubr.msk.bf16.vlgmr.msra.gmra.mrb[68].mxu1 %vm760_vm2, %v1714_v37  ;;  %9237 = vmatmul.mubr.msk.bf16.vlgmr.msra.gmra.mrb[60].mxu0 %vm760_vm2, %v1717_v58  ;;  %v1700_v18 = vmul.f32 %v10141_v7, %v11381_v25  ;;  %v2550_v47 = vpop.permute.xlu1 %2549 }
 0x596   : > { %9229 = vmatpush3.bf16.msra.mxu1 %v2350_v56  ;;  %9230 = vmatprep.mubr.msk.bf16.mxu1 %vm10551_vm1, %v13100_v28  ;;  %v2555_v39 = vsel %vm760_vm2, %v2550_v47, 0 }
 0x597   : > { %9240 = vmatprep.subr.bf16.mxu1 %v13100_v28  ;;  %9248 = vmatprep.mubr.msk.bf16.mxu0 %vm10551_vm1, %v13100_v28  ;;  %v1716_v21 = vpack.c.bf16 %v1700_v18, %v1700_v18 }
 0x599   : > { %v2548_v16 = vpop.permute.xlu1 %2547 }
 0x59d   : > { %9231 = vmatmul.mubr.msk.bf16.vlgmr.msra.gmra.mrb[72].mxu1 %vm760_vm2, %v1716_v21  ;;  %v2650_v38 = vpop.permute.xlu1 %2649 }
 0x59e   : > { %9241 = vmatpush3.bf16.msra.mxu1 %v2446_v15  ;;  %9242 = vmatprep.mubr.msk.bf16.mxu1 %vm10551_vm1, %v13100_v28  ;;  %v2655_v26 = vsel %vm760_vm2, %v2650_v38, 0 }
 0x59f   : > { %9252 = vmatprep.subr.bf16.mxu1 %v13100_v28 }
 0x5a1   : > { %v2648_v52 = vpop.permute.xlu1 %2647 }
 0x5a5   : > { %v2750_v22 = vpop.permute.xlu1 %2749 }
 0x5a6   : > { %v2755_v43 = vsel %vm760_vm2, %v2750_v22, 0 }
 0x5a9   : > { %v2748_v14 = vpop.permute.xlu1 %2747 }
 0x5ad   : > { %v2850_v41 = vpop.permute.xlu1 %2849 }
 0x5ae   : > { %v2855_v50 = vsel %vm760_vm2, %v2850_v41, 0 }
 0x5b1   : > { %v2848_v19 = vpop.permute.xlu1 %2847 }
 0x5b5   : > { %v2950_v59 = vpop.permute.xlu1 %2949 }
 0x5b6   : > { %v2955_v27 = vsel %vm760_vm2, %v2950_v59, 0 }
 0x5b9   : > { %v2948_v40 = vpop.permute.xlu1 %2947 }
 0x5bd   : > { %v3050_v45 = vpop.permute.xlu1 %3049 }
 0x5be   : > { %v1670_v25 = vpop.xlane.xlu0 %1669  ;;  %v3055_v56 = vsel %vm760_vm2, %v3050_v45, 0 }
 0x5bf   : > { %10142 = vrcp.f32 %v1670_v25 }
 0x5c1   : > { %v3048_v13 = vpop.permute.xlu1 %3047 }
 0x5c2   : > { %v2500_v30 = vpop.permute.xlu0 %2499 }
 0x5c3   : > { %v2505_v44 = vsel %vm760_vm2, %v2500_v30, 0 }
 0x5c4   : > { %9247 = vmatpush3.bf16.xpose.msra.mxu0 %v2505_v44 }
 0x5c5   : > { %9258 = vmatprep.subr.bf16.mxu0 %v13100_v28  ;;  %v3150_v58 = vpop.permute.xlu1 %3149 }
 0x5c6   : > { %v2498_v51 = vpop.permute.xlu0 %2497  ;;  %v3155_v47 = vsel %vm760_vm2, %v3150_v58, 0 }
 0x5c9   : > { %v10143_v48 = vpop.eup %10142  ;;  %v3148_v42 = vpop.permute.xlu1 %3147 }
 0x5ca   : > { %v2600_v20 = vpop.permute.xlu0 %2599  ;;  %v1702_v46 = vmul.f32 %v10143_v48, %v11411_v32 }
 0x5cb   : > { %v2605_v34 = vsel %vm760_vm2, %v2600_v20, 0  ;;  %9249 = vmatmul.mubr.msk.bf16.vlgmr.msra.gmra.mrb[64].mxu0 %vm760_vm2, %v2498_v51 }
 0x5cc   : > { %9259 = vmatpush3.bf16.xpose.msra.mxu0 %v2605_v34  ;;  %v1718_v49 = vpack.c.bf16 %v1702_v46, %v1702_v46  ;;  %9260 = vmatprep.mubr.msk.bf16.mxu0 %vm10551_vm1, %v13100_v28 }
 0x5cd   : > { %9270 = vmatprep.subr.bf16.mxu0 %v13100_v28  ;;  %v3250_v38 = vpop.permute.xlu1 %3249 }
 0x5ce   : > { %9243 = vmatmul.mubr.msk.bf16.vlgmr.msra.gmra.mrb[76].mxu1 %vm760_vm2, %v1718_v49  ;;  %v2598_v63 = vpop.permute.xlu0 %2597  ;;  %v3255_v48 = vsel %vm760_vm2, %v3250_v38, 0 }
 0x5cf   : > { %9253 = vmatpush3.bf16.xpose.msra.mxu1 %v2555_v39  ;;  %9254 = vmatprep.mubr.msk.bf16.mxu1 %vm10551_vm1, %v13100_v28 }
 0x5d0   : > { %9264 = vmatprep.subr.bf16.mxu1 %v13100_v28 }
 0x5d1   : > { %v3248_v44 = vpop.permute.xlu1 %3247 }
 0x5d2   : > { %v2700_v32 = vpop.permute.xlu0 %2699 }
 0x5d3   : > { %v2705_v12 = vsel %vm760_vm2, %v2700_v32, 0  ;;  %9261 = vmatmul.mubr.msk.bf16.vlgmr.msra.gmra.mrb[68].mxu0 %vm760_vm2, %v2598_v63 }
 0x5d4   : > { %9271 = vmatpush3.bf16.xpose.msra.mxu0 %v2705_v12  ;;  %9272 = vmatprep.mubr.msk.bf16.mxu0 %vm10551_vm1, %v13100_v28 }
 0x5d5   : > { %9282 = vmatprep.subr.bf16.mxu0 %v13100_v28  ;;  %v3538_v20 = vpop.permute.xlu1 %3537 }
 0x5d6   : > { %9255 = vmatmul.mubr.msk.bf16.vlgmr.msra.gmra.mrb[80].mxu1 %vm760_vm2, %v2548_v16  ;;  %v2698_v55 = vpop.permute.xlu0 %2697  ;;  %v3543_v63 = vsel %vm1724_vm3, %v3538_v20, 0 }
 0x5d7   : > { %9265 = vmatpush3.bf16.xpose.msra.mxu1 %v2655_v26  ;;  %9266 = vmatprep.mubr.msk.bf16.mxu1 %vm10551_vm1, %v13100_v28 }
 0x5d8   : > { %9276 = vmatprep.subr.bf16.mxu1 %v13100_v28 }
 0x5da   : > { %v2800_v0 = vpop.permute.xlu0 %2799 }
 0x5db   : > { %v2805_v61 = vsel %vm760_vm2, %v2800_v0, 0  ;;  %9273 = vmatmul.mubr.msk.bf16.vlgmr.msra.gmra.mrb[72].mxu0 %vm760_vm2, %v2698_v55 }
 0x5dc   : > { %9283 = vmatpush3.bf16.xpose.msra.mxu0 %v2805_v61  ;;  %9284 = vmatprep.mubr.msk.bf16.mxu0 %vm10551_vm1, %v13100_v28 }
 0x5dd   : > { %9294 = vmatprep.subr.bf16.mxu0 %v13100_v28 }
 0x5de   : > { %9267 = vmatmul.mubr.msk.bf16.vlgmr.msra.gmra.mrb[84].mxu1 %vm760_vm2, %v2648_v52  ;;  %v2798_v2 = vpop.permute.xlu0 %2797 }
 0x5df   : > { %9277 = vmatpush3.bf16.xpose.msra.mxu1 %v2755_v43  ;;  %9278 = vmatprep.mubr.msk.bf16.mxu1 %vm10551_vm1, %v13100_v28 }
 0x5e0   : > { %9288 = vmatprep.subr.bf16.mxu1 %v13100_v28 }
 0x5e2   : > { %v2900_v6 = vpop.permute.xlu0 %2899 }
 0x5e3   : > { %v2905_v24 = vsel %vm760_vm2, %v2900_v6, 0  ;;  %9285 = vmatmul.mubr.msk.bf16.vlgmr.msra.gmra.mrb[76].mxu0 %vm760_vm2, %v2798_v2 }
 0x5e4   : > { %9295 = vmatpush3.bf16.xpose.msra.mxu0 %v2905_v24  ;;  %9296 = vmatprep.mubr.msk.bf16.mxu0 %vm10551_vm1, %v13100_v28 }
 0x5e5   : > { %9306 = vmatprep.subr.bf16.mxu0 %v13100_v28 }
 0x5e6   : > { %9279 = vmatmul.mubr.msk.bf16.vlgmr.msra.gmra.mrb[88].mxu1 %vm760_vm2, %v2748_v14  ;;  %v2898_v1 = vpop.permute.xlu0 %2897 }
 0x5e7   : > { %9289 = vmatpush3.bf16.xpose.msra.mxu1 %v2855_v50  ;;  %9290 = vmatprep.mubr.msk.bf16.mxu1 %vm10551_vm1, %v13100_v28 }
 0x5e8   : > { %9300 = vmatprep.subr.bf16.mxu1 %v13100_v28 }
 0x5ea   : > { %v3000_v11 = vpop.permute.xlu0 %2999 }
 0x5eb   : > { %v3005_v3 = vsel %vm760_vm2, %v3000_v11, 0  ;;  %9297 = vmatmul.mubr.msk.bf16.vlgmr.msra.gmra.mrb[80].mxu0 %vm760_vm2, %v2898_v1 }
 0x5ec   : > { %9307 = vmatpush3.bf16.xpose.msra.mxu0 %v3005_v3  ;;  %9308 = vmatprep.mubr.msk.bf16.mxu0 %vm10551_vm1, %v13100_v28 }
 0x5ed   : > { %9318 = vmatprep.subr.bf16.mxu0 %v13100_v28 }
 0x5ee   : > { %9291 = vmatmul.mubr.msk.bf16.vlgmr.msra.gmra.mrb[92].mxu1 %vm760_vm2, %v2848_v19  ;;  %v2998_v10 = vpop.permute.xlu0 %2997 }
 0x5ef   : > { %9301 = vmatpush3.bf16.xpose.msra.mxu1 %v2955_v27  ;;  %9302 = vmatprep.mubr.msk.bf16.mxu1 %vm10551_vm1, %v13100_v28 }
 0x5f0   : > { %9312 = vmatprep.subr.bf16.mxu1 %v13100_v28 }
 0x5f2   : > { %v3100_v37 = vpop.permute.xlu0 %3099 }
 0x5f3   : > { %v3105_v7 = vsel %vm760_vm2, %v3100_v37, 0  ;;  %9309 = vmatmul.mubr.msk.bf16.vlgmr.msra.gmra.mrb[84].mxu0 %vm760_vm2, %v2998_v10 }
 0x5f4   : > { %9319 = vmatpush3.bf16.xpose.msra.mxu0 %v3105_v7  ;;  %9320 = vmatprep.mubr.msk.bf16.mxu0 %vm10551_vm1, %v13100_v28 }
 0x5f5   : > { %9330 = vmatprep.subr.bf16.mxu0 %v13100_v28 }
 0x5f6   : > { %9303 = vmatmul.mubr.msk.bf16.vlgmr.msra.gmra.mrb[96].mxu1 %vm760_vm2, %v2948_v40  ;;  %v3098_v18 = vpop.permute.xlu0 %3097 }
 0x5f7   : > { %9313 = vmatpush3.bf16.xpose.msra.mxu1 %v3055_v56  ;;  %9314 = vmatprep.mubr.msk.bf16.mxu1 %vm10551_vm1, %v13100_v28 }
 0x5f8   : > { %9324 = vmatprep.subr.bf16.mxu1 %v13100_v28 }
 0x5fa   : > { %v3200_v21 = vpop.permute.xlu0 %3199 }
 0x5fb   : > { %v3205_v15 = vsel %vm760_vm2, %v3200_v21, 0  ;;  %9321 = vmatmul.mubr.msk.bf16.vlgmr.msra.gmra.mrb[88].mxu0 %vm760_vm2, %v3098_v18 }
 0x5fc   : > { %9331 = vmatpush3.bf16.xpose.msra.mxu0 %v3205_v15  ;;  %9332 = vmatprep.mubr.msk.bf16.mxu0 %vm10551_vm1, %v13100_v28 }
 0x5fd   : > { %9342 = vmatprep.subr.bf16.mxu0 %v13100_v28 }
 0x5fe   : > { %9315 = vmatmul.mubr.msk.bf16.vlgmr.msra.gmra.mrb[100].mxu1 %vm760_vm2, %v3048_v13  ;;  %v3198_v16 = vpop.permute.xlu0 %3197 }
 0x5ff   : > { %9325 = vmatpush3.bf16.xpose.msra.mxu1 %v3155_v47  ;;  %9326 = vmatprep.mubr.msk.bf16.mxu1 %vm10551_vm1, %v13100_v28 }
 0x600   : > { %9336 = vmatprep.subr.bf16.mxu1 %v13100_v28 }
 0x602   : > { %v3490_v52 = vpop.permute.xlu0 %3489 }
 0x603   : > { %v3495_v25 = vsel %vm1724_vm3, %v3490_v52, 0  ;;  %v11649_v30 = vpop.f32.mrb[32].mxu0  ;;  %9333 = vmatmul.mubr.msk.bf16.vlgmr.msra.gmra.mrb[92].mxu0 %vm760_vm2, %v3198_v16 }
 0x604   : > { %v9154_v22 = vpop.f32.mrb[33].mxu0  ;;  %9343 = vmatpush3.bf16.msra.mxu0 %v3495_v25  ;;  %9344 = vmatprep.mubr.msk.bf16.mxu0 %vm10551_vm1, %v13100_v28 }
 0x605   : > { %v1765_v51 = vpop.f32.mrb[34].mxu0  ;;  %9354 = vmatprep.subr.bf16.mxu0 %v13100_v28 }
 0x606   : > { %v9155_v14 = vpop.f32.mrb[35].mxu0  ;;  %9327 = vmatmul.mubr.msk.bf16.vlgmr.msra.gmra.mrb[104].mxu1 %vm760_vm2, %v3148_v42 }
 0x607   : > { %9337 = vmatpush3.bf16.xpose.msra.mxu1 %v3255_v48  ;;  %9338 = vmatprep.mubr.msk.bf16.mxu1 %vm10551_vm1, %v13100_v28 }
 0x608   : > { %9348 = vmatprep.subr.bf16.mxu1 %v13100_v28 }
 0x60b   : > { %v11660_v46 = vpop.f32.mrb[48].mxu1 }
 0x60c   : > { %v9160_v49 = vpop.f32.mrb[49].mxu1 }
 0x60d   : > { %v1813_v39 = vpop.f32.mrb[50].mxu1 }
 0x60e   : > { %v9161_v41 = vpop.f32.mrb[51].mxu1  ;;  %9339 = vmatmul.mubr.msk.bf16.vlgmr.msra.gmra.mrb[108].mxu1 %vm760_vm2, %v3248_v44 }
 0x60f   : > { %9349 = vmatpush3.bf16.msra.mxu1 %v3543_v63  ;;  %9350 = vmatprep.mubr.msk.bf16.mxu1 %vm10551_vm1, %v13100_v28 }
 0x610   : > { %9360 = vmatprep.subr.bf16.mxu1 %v13100_v28 }
 0x613   : > { %v11669_v32 = vpop.f32.mrb[36].mxu0 }
 0x614   : > { %v9166_v12 = vpop.f32.mrb[37].mxu0 }
 0x615   : > { %v1861_v19 = vpop.f32.mrb[38].mxu0 }
 0x616   : > { %v9167_v26 = vpop.f32.mrb[39].mxu0 }
 0x61b   : > { %v11671_v55 = vpop.f32.mrb[52].mxu1  ;;  %v11673_v0 = vpop.f32.mrb[40].mxu0 }
 0x61c   : > { %v9172_v61 = vpop.f32.mrb[53].mxu1  ;;  %v9178_v43 = vpop.f32.mrb[41].mxu0 }
 0x61d   : > { %v1909_v2 = vpop.f32.mrb[54].mxu1  ;;  %v1957_v40 = vpop.f32.mrb[42].mxu0 }
 0x61e   : > { %v9173_v6 = vpop.f32.mrb[55].mxu1  ;;  %v9179_v24 = vpop.f32.mrb[43].mxu0 }
 0x623   : > { %v11677_v50 = vpop.f32.mrb[56].mxu1  ;;  %v11679_v1 = vpop.f32.mrb[44].mxu0 }
 0x624   : > { %v9184_v11 = vpop.f32.mrb[57].mxu1  ;;  %v9190_v3 = vpop.f32.mrb[45].mxu0 }
 0x625   : > { %v2005_v13 = vpop.f32.mrb[58].mxu1  ;;  %v2053_v27 = vpop.f32.mrb[46].mxu0 }
 0x626   : > { %v9185_v10 = vpop.f32.mrb[59].mxu1  ;;  %v9191_v37 = vpop.f32.mrb[47].mxu0 }
 0x62b   : > { %v11683_v58 = vpop.f32.mrb[60].mxu1  ;;  %v11685_v7 = vpop.f32.mrb[48].mxu0 }
 0x62c   : > { %v9196_v18 = vpop.f32.mrb[61].mxu1  ;;  %v9202_v42 = vpop.f32.mrb[49].mxu0 }
 0x62d   : > { %v2101_v21 = vpop.f32.mrb[62].mxu1  ;;  %v2149_v15 = vpop.f32.mrb[50].mxu0 }
 0x62e   : > { %v9197_v47 = vpop.f32.mrb[63].mxu1  ;;  %v9203_v16 = vpop.f32.mrb[51].mxu0 }
 0x633   : > { %v11689_v38 = vpop.f32.mrb[64].mxu1  ;;  %v11691_v52 = vpop.f32.mrb[52].mxu0 }
 0x634   : > { %v9208_v22 = vpop.f32.mrb[65].mxu1  ;;  %v9214_v44 = vpop.f32.mrb[53].mxu0 }
 0x635   : > { %v2197_v51 = vpop.f32.mrb[66].mxu1  ;;  %v2245_v48 = vpop.f32.mrb[54].mxu0 }
 0x636   : > { %v9209_v14 = vpop.f32.mrb[67].mxu1  ;;  %v9215_v20 = vpop.f32.mrb[55].mxu0 }
 0x660   : > { %v11695_v49 = vpop.f32.mrb[56].mxu0 }
 0x661   : > { %v9226_v39 = vpop.f32.mrb[57].mxu0 }
 0x662   : > { %v2341_v63 = vpop.f32.mrb[58].mxu0 }
 0x663   : > { %v9227_v41 = vpop.f32.mrb[59].mxu0 }
 0x668   : > { %v11697_v12 = vpop.f32.mrb[68].mxu1  ;;  %v11699_v19 = vpop.f32.mrb[60].mxu0 }
 0x669   : > { %13118 = vst [vmem:[#allocation15_spill] sm:$0xff] %v11699_v19  ;;  %v9220_v61 = vpop.f32.mrb[69].mxu1  ;;  %v9238_v43 = vpop.f32.mrb[61].mxu0 }
 0x66a   : > { %v2293_v2 = vpop.f32.mrb[70].mxu1  ;;  %v2437_v40 = vpop.f32.mrb[62].mxu0 }
 0x66b   : > { %v9221_v6 = vpop.f32.mrb[71].mxu1  ;;  %v9239_v24 = vpop.f32.mrb[63].mxu0 }
 0x670   : > { %v11703_v11 = vpop.f32.mrb[72].mxu1 }
 0x671   : > { %v9232_v13 = vpop.f32.mrb[73].mxu1 }
 0x672   : > { %v2389_v27 = vpop.f32.mrb[74].mxu1 }
 0x673   : > { %v9233_v10 = vpop.f32.mrb[75].mxu1 }
 0x69e   : > { %v11707_v37 = vpop.f32.mrb[64].mxu0 }
 0x69f   : > { %v9250_v18 = vpop.f32.mrb[65].mxu0  ;;  %v3297_v42 = vsel %vm760_vm2, %v11707_v37, -inf }
 0x6a0   : > { %3298 = vmax.xlane.f32.xlu0 %v3297_v42  ;;  %v2544_v21 = vpop.f32.mrb[66].mxu0 }
 0x6a1   : > { %v11711_v15 = vpop.f32.mrb[76].mxu1  ;;  %v9251_v47 = vpop.f32.mrb[67].mxu0 }
 0x6a2   : > { %13119 = vst [vmem:[#allocation16_spill] sm:$0xff] %v11711_v15  ;;  %v9244_v22 = vpop.f32.mrb[77].mxu1 }
 0x6a3   : > { %v2485_v44 = vpop.f32.mrb[78].mxu1 }
 0x6a4   : > { %v9245_v51 = vpop.f32.mrb[79].mxu1 }
 0x6a6   : > { %v11715_v48 = vpop.f32.mrb[68].mxu0 }
 0x6a7   : > { %v9262_v14 = vpop.f32.mrb[69].mxu0  ;;  %v3303_v20 = vsel %vm760_vm2, %v11715_v48, -inf }
 0x6a8   : > { %3304 = vmax.xlane.f32.xlu0 %v3303_v20  ;;  %v2644_v39 = vpop.f32.mrb[70].mxu0 }
 0x6a9   : > { %v11719_v63 = vpop.f32.mrb[80].mxu1  ;;  %v9263_v41 = vpop.f32.mrb[71].mxu0 }
 0x6aa   : > { %v9256_v61 = vpop.f32.mrb[81].mxu1  ;;  %v3300_v43 = vsel %vm760_vm2, %v11719_v63, -inf }
 0x6ab   : > { %3301 = vmax.xlane.f32.xlu1 %v3300_v43  ;;  %v2594_v2 = vpop.f32.mrb[82].mxu1 }
 0x6ac   : > { %v9257_v40 = vpop.f32.mrb[83].mxu1 }
 0x6ae   : > { %v11723_v6 = vpop.f32.mrb[72].mxu0 }
 0x6af   : > { %v9274_v24 = vpop.f32.mrb[73].mxu0  ;;  %v3309_v44 = vsel %vm760_vm2, %v11723_v6, -inf }
 0x6b0   : > { %v2744_v13 = vpop.f32.mrb[74].mxu0 }
 0x6b1   : > { %v11725_v27 = vpop.f32.mrb[84].mxu1  ;;  %v9275_v10 = vpop.f32.mrb[75].mxu0 }
 0x6b2   : > { %v9268_v18 = vpop.f32.mrb[85].mxu1  ;;  %v3306_v42 = vsel %vm760_vm2, %v11725_v27, -inf }
 0x6b3   : > { %v2694_v21 = vpop.f32.mrb[86].mxu1  ;;  %3307 = vmax.xlane.f32.xlu0 %v3306_v42 }
 0x6b4   : > { %v9269_v47 = vpop.f32.mrb[87].mxu1 }
 0x6b6   : > { %v11729_v22 = vpop.f32.mrb[76].mxu0 }
 0x6b7   : > { %3310 = vmax.xlane.f32.xlu0 %v3309_v44  ;;  %v9286_v51 = vpop.f32.mrb[77].mxu0  ;;  %v3315_v43 = vsel %vm760_vm2, %v11729_v22, -inf }
 0x6b8   : > { %v2844_v14 = vpop.f32.mrb[78].mxu0 }
 0x6b9   : > { %v11733_v20 = vpop.f32.mrb[88].mxu1  ;;  %v9287_v39 = vpop.f32.mrb[79].mxu0 }
 0x6ba   : > { %v9280_v41 = vpop.f32.mrb[89].mxu1  ;;  %v3312_v61 = vsel %vm760_vm2, %v11733_v20, -inf }
 0x6bb   : > { %3313 = vmax.xlane.f32.xlu1 %v3312_v61  ;;  %v2794_v2 = vpop.f32.mrb[90].mxu1  ;;  %3316 = vmax.xlane.f32.xlu0 %v3315_v43 }
 0x6bc   : > { %v9281_v40 = vpop.f32.mrb[91].mxu1 }
 0x6be   : > { %v11739_v24 = vpop.f32.mrb[80].mxu0 }
 0x6bf   : > { %v9298_v13 = vpop.f32.mrb[81].mxu0  ;;  %v3321_v10 = vsel %vm760_vm2, %v11739_v24, -inf }
 0x6c0   : > { %3322 = vmax.xlane.f32.xlu0 %v3321_v10  ;;  %v2944_v18 = vpop.f32.mrb[82].mxu0 }
 0x6c1   : > { %v11743_v42 = vpop.f32.mrb[92].mxu1  ;;  %v9299_v21 = vpop.f32.mrb[83].mxu0 }
 0x6c2   : > { %v9292_v47 = vpop.f32.mrb[93].mxu1  ;;  %v3318_v44 = vsel %vm760_vm2, %v11743_v42, -inf }
 0x6c3   : > { %3319 = vmax.xlane.f32.xlu1 %v3318_v44  ;;  %v2894_v51 = vpop.f32.mrb[94].mxu1 }
 0x6c4   : > { %v9293_v14 = vpop.f32.mrb[95].mxu1 }
 0x6c6   : > { %v11747_v39 = vpop.f32.mrb[84].mxu0 }
 0x6c7   : > { %v9310_v41 = vpop.f32.mrb[85].mxu0  ;;  %v3327_v61 = vsel %vm760_vm2, %v11747_v39, -inf }
 0x6c8   : > { %3328 = vmax.xlane.f32.xlu0 %v3327_v61  ;;  %v3044_v43 = vpop.f32.mrb[86].mxu0 }
 0x6c9   : > { %v11751_v2 = vpop.f32.mrb[96].mxu1  ;;  %v9311_v40 = vpop.f32.mrb[87].mxu0 }
 0x6ca   : > { %v9304_v13 = vpop.f32.mrb[97].mxu1  ;;  %v3324_v10 = vsel %vm760_vm2, %v11751_v2, -inf }
 0x6cb   : > { %3325 = vmax.xlane.f32.xlu1 %v3324_v10  ;;  %v2994_v18 = vpop.f32.mrb[98].mxu1 }
 0x6cc   : > { %v9305_v21 = vpop.f32.mrb[99].mxu1 }
 0x6ce   : > { %v11755_v47 = vpop.f32.mrb[88].mxu0 }
 0x6cf   : > { %v9322_v44 = vpop.f32.mrb[89].mxu0  ;;  %v3333_v51 = vsel %vm760_vm2, %v11755_v47, -inf }
 0x6d0   : > { %3334 = vmax.xlane.f32.xlu0 %v3333_v51  ;;  %v3144_v14 = vpop.f32.mrb[90].mxu0 }
 0x6d1   : > { %v11759_v41 = vpop.f32.mrb[100].mxu1  ;;  %v9323_v61 = vpop.f32.mrb[91].mxu0 }
 0x6d2   : > { %v9316_v43 = vpop.f32.mrb[101].mxu1  ;;  %v3330_v40 = vsel %vm760_vm2, %v11759_v41, -inf }
 0x6d3   : > { %3331 = vmax.xlane.f32.xlu1 %v3330_v40  ;;  %v3094_v13 = vpop.f32.mrb[102].mxu1 }
 0x6d4   : > { %v9317_v10 = vpop.f32.mrb[103].mxu1 }
 0x6d6   : > { %v11763_v18 = vpop.f32.mrb[92].mxu0 }
 0x6d7   : > { %v9334_v21 = vpop.f32.mrb[93].mxu0  ;;  %v3339_v44 = vsel %vm760_vm2, %v11763_v18, -inf }
 0x6d8   : > { %3340 = vmax.xlane.f32.xlu0 %v3339_v44  ;;  %v3244_v16 = vpop.f32.mrb[94].mxu0  ;;  %v11787_v44 = vpop.permute.xlu1 %3633 }
 0x6d9   : > { %v11767_v51 = vpop.f32.mrb[104].mxu1  ;;  %v9335_v14 = vpop.f32.mrb[95].mxu0 }
 0x6da   : > { %v9328_v3 = vpop.f32.mrb[105].mxu1  ;;  %v3336_v61 = vsel %vm760_vm2, %v11767_v51, -inf  ;;  %v11783_v16 = vpop.permute.xlu0 %3585 }
 0x6db   : > { %3337 = vmax.xlane.f32.xlu1 %v3336_v61  ;;  %v3194_v43 = vpop.f32.mrb[106].mxu1 }
 0x6dc   : > { %v9329_v40 = vpop.f32.mrb[107].mxu1  ;;  %v11791_v43 = vpop.permute.xlu1 %3729 }
 0x6e1   : > { %v11771_v13 = vpop.f32.mrb[108].mxu1 }
 0x6e2   : > { %v9340_v10 = vpop.f32.mrb[109].mxu1  ;;  %v3342_v3 = vsel %vm760_vm2, %v11771_v13, -inf }
 0x6e3   : > { %v3294_v26 = vpop.f32.mrb[110].mxu1 }
 0x6e4   : > { %v9341_v21 = vpop.f32.mrb[111].mxu1  ;;  %v11785_v26 = vpop.permute.xlu0 %3681 }
 0x6e5   : > { %v11794_v21 = vpop.permute.xlu1 %3825 }
 0x6e8   : > { %v11789_v14 = vpop.permute.xlu0 %3777 }
 0x6ec   : > { %3921 = vrot.lane.b32.xlu1 %v11068_v23, %s10556_s26 }
 0x6ee   : > { %3873 = vrot.lane.b32.xlu0 %v11054_v54, %s10556_s26 }
 0x6f0   : > { %3969 = vrot.lane.b32.xlu1 %v11063_v17, %s10556_s26 }
 0x6f4   : > { %4017 = vrot.lane.b32.xlu1 %v11078_v29, %s10556_s26 }
 0x718   : > { %3343 = vmax.xlane.f32.xlu1 %v3342_v3 }
 0x72d   : > { %v3299_v61 = vpop.xlane.xlu0 %3298 }
 0x72e   : > { %v3345_v40 = vsub.f32 %v11707_v37, %v3299_v61 }
 0x730   : > { %v3361_v10 = vmul.f32 1.442695, %v3345_v40 }
 0x732   : > { %10144 = vpow2.f32 %v3361_v10 }
 0x735   : > { %v3305_v25 = vpop.xlane.xlu0 %3304 }
 0x736   : > { %v3347_v3 = vsub.f32 %v11715_v48, %v3305_v25 }
 0x738   : > { %v3365_v56 = vmul.f32 1.442695, %v3347_v3  ;;  %v3302_v45 = vpop.xlane.xlu1 %3301 }
 0x739   : > { %v3346_v59 = vsub.f32 %v11719_v63, %v3302_v45 }
 0x73a   : > { %10146 = vpow2.f32 %v3365_v56 }
 0x73b   : > { %v3363_v34 = vmul.f32 1.442695, %v3346_v59 }
 0x73c   : > { %v11798_v28 = vpop.eup %10144 }
 0x73d   : > { %10148 = vpow2.f32 %v3363_v34  ;;  %v3393_v19 = vsel %vm760_vm2, %v11798_v28, 0.0 }
 0x73e   : > { %3394 = vadd.xlane.f32.xlu0 %v3393_v19 }
 0x740   : > { %v3308_v37 = vpop.xlane.xlu0 %3307 }
 0x741   : > { %v3348_v61 = vsub.f32 %v11725_v27, %v3308_v37 }
 0x743   : > { %v3367_v40 = vmul.f32 1.442695, %v3348_v61 }
 0x744   : > { %v11803_v10 = vpop.eup %10146  ;;  %v3311_v25 = vpop.xlane.xlu0 %3310 }
 0x745   : > { %10150 = vpow2.f32 %v3367_v40  ;;  %v3349_v48 = vsub.f32 %v11723_v6, %v3311_v25  ;;  %v3399_v59 = vsel %vm760_vm2, %v11803_v10, 0.0 }
 0x746   : > { %3400 = vadd.xlane.f32.xlu0 %v3399_v59 }
 0x747   : > { %v11808_v45 = vpop.eup %10148  ;;  %v3369_v34 = vmul.f32 1.442695, %v3349_v48 }
 0x748   : > { %v3314_v56 = vpop.xlane.xlu1 %3313  ;;  %v3317_v63 = vpop.xlane.xlu0 %3316  ;;  %v3396_v19 = vsel %vm760_vm2, %v11808_v45, 0.0 }
 0x749   : > { %10152 = vpow2.f32 %v3369_v34  ;;  %v3350_v27 = vsub.f32 %v11733_v20, %v3314_v56  ;;  %v3351_v3 = vsub.f32 %v11729_v22, %v3317_v63  ;;  %3397 = vadd.xlane.f32.xlu1 %v3396_v19 }
 0x74b   : > { %v3371_v37 = vmul.f32 1.442695, %v3350_v27  ;;  %v3373_v6 = vmul.f32 1.442695, %v3351_v3 }
 0x74d   : > { %10154 = vpow2.f32 %v3371_v37  ;;  %v3323_v61 = vpop.xlane.xlu0 %3322 }
 0x74e   : > { %10156 = vpow2.f32 %v3373_v6  ;;  %v3353_v25 = vsub.f32 %v11739_v24, %v3323_v61 }
 0x74f   : > { %v11814_v40 = vpop.eup %10150 }
 0x750   : > { %v3320_v48 = vpop.xlane.xlu1 %3319  ;;  %v3402_v59 = vsel %vm760_vm2, %v11814_v40, 0.0  ;;  %v3377_v22 = vmul.f32 1.442695, %v3353_v25 }
 0x751   : > { %v3352_v34 = vsub.f32 %v11743_v42, %v3320_v48  ;;  %3403 = vadd.xlane.f32.xlu1 %v3402_v59 }
 0x753   : > { %v11820_v20 = vpop.eup %10152  ;;  %v3375_v56 = vmul.f32 1.442695, %v3352_v34 }
 0x754   : > { %v3405_v63 = vsel %vm760_vm2, %v11820_v20, 0.0 }
 0x755   : > { %10158 = vpow2.f32 %v3375_v56  ;;  %3406 = vadd.xlane.f32.xlu0 %v3405_v63  ;;  %v3329_v19 = vpop.xlane.xlu0 %3328 }
 0x756   : > { %v3355_v27 = vsub.f32 %v11747_v39, %v3329_v19  ;;  %10160 = vpow2.f32 %v3377_v22 }
 0x757   : > { %v11825_v24 = vpop.eup %10154 }
 0x758   : > { %v11827_v3 = vpop.eup %10156  ;;  %v3381_v37 = vmul.f32 1.442695, %v3355_v27  ;;  %v3326_v42 = vpop.xlane.xlu1 %3325  ;;  %v3408_v6 = vsel %vm760_vm2, %v11825_v24, 0.0 }
 0x759   : > { %v3354_v61 = vsub.f32 %v11751_v2, %v3326_v42  ;;  %3409 = vadd.xlane.f32.xlu1 %v3408_v6  ;;  %v3411_v25 = vsel %vm760_vm2, %v11827_v3, 0.0 }
 0x75a   : > { %3412 = vadd.xlane.f32.xlu0 %v3411_v25  ;;  %10162 = vpow2.f32 %v3381_v37 }
 0x75b   : > { %v3379_v48 = vmul.f32 1.442695, %v3354_v61 }
 0x75d   : > { %10164 = vpow2.f32 %v3379_v48  ;;  %v3335_v61 = vpop.xlane.xlu0 %3334 }
 0x75e   : > { %v3357_v25 = vsub.f32 %v11755_v47, %v3335_v61 }
 0x75f   : > { %v11834_v39 = vpop.eup %10158 }
 0x760   : > { %v3332_v59 = vpop.xlane.xlu1 %3331  ;;  %v3414_v34 = vsel %vm760_vm2, %v11834_v39, 0.0  ;;  %v11838_v22 = vpop.eup %10160 }
 0x761   : > { %v3356_v56 = vsub.f32 %v11759_v41, %v3332_v59  ;;  %3415 = vadd.xlane.f32.xlu1 %v3414_v34  ;;  %v3417_v63 = vsel %vm760_vm2, %v11838_v22, 0.0  ;;  %v3385_v59 = vmul.f32 1.442695, %v3357_v25 }
 0x763   : > { %v3383_v2 = vmul.f32 1.442695, %v3356_v56 }
 0x764   : > { %v11843_v19 = vpop.eup %10162 }
 0x765   : > { %10166 = vpow2.f32 %v3383_v2  ;;  %3418 = vadd.xlane.f32.xlu1 %v3417_v63  ;;  %v3423_v42 = vsel %vm760_vm2, %v11843_v19, 0.0  ;;  %v3341_v48 = vpop.xlane.xlu0 %3340 }
 0x766   : > { %v3359_v34 = vsub.f32 %v11763_v18, %v3341_v48  ;;  %10168 = vpow2.f32 %v3385_v59 }
 0x767   : > { %v11845_v27 = vpop.eup %10164 }
 0x768   : > { %v3420_v37 = vsel %vm760_vm2, %v11845_v27, 0.0  ;;  %v3338_v56 = vpop.xlane.xlu1 %3337  ;;  %v3389_v2 = vmul.f32 1.442695, %v3359_v34 }
 0x769   : > { %3421 = vadd.xlane.f32.xlu0 %v3420_v37  ;;  %3424 = vadd.xlane.f32.xlu1 %v3423_v42  ;;  %v3358_v63 = vsub.f32 %v11767_v51, %v3338_v56 }
 0x76a   : > { %10170 = vpow2.f32 %v3389_v2 }
 0x76b   : > { %v3387_v37 = vmul.f32 1.442695, %v3358_v63 }
 0x76c   : > { %v11862_v42 = vpop.permute.xlu1 %3921 }
 0x76d   : > { %10172 = vpow2.f32 %v3387_v37 }
 0x76f   : > { %v11851_v41 = vpop.eup %10166 }
 0x770   : > { %v3426_v6 = vsel %vm760_vm2, %v11851_v41, 0.0  ;;  %v11866_v15 = vpop.permute.xlu1 %3969 }
 0x771   : > { %3427 = vadd.xlane.f32.xlu0 %v3426_v6  ;;  %v11864_v6 = vpop.eup %10168 }
 0x772   : > { %v3429_v47 = vsel %vm760_vm2, %v11864_v6, 0.0 }
 0x774   : > { %v11870_v61 = vpop.eup %10170  ;;  %v11872_v18 = vpop.permute.xlu1 %4017 }
 0x775   : > { %v3435_v51 = vsel %vm760_vm2, %v11870_v61, 0.0 }
 0x777   : > { %v11876_v25 = vpop.eup %10172 }
 0x778   : > { %v3432_v59 = vsel %vm760_vm2, %v11876_v25, 0.0 }
 0x77a   : > { %4113 = vrot.lane.b32.xlu1 %v11088_v35, %s10556_s26 }
 0x787   : > { %4065 = vrot.lane.b32.xlu0 %v11074_v8, %s10556_s26 }
 0x79e   : > { %3430 = vadd.xlane.f32.xlu1 %v3429_v47 }
 0x7a2   : > { %3436 = vadd.xlane.f32.xlu1 %v3435_v51 }
 0x7a5   : > { %v3344_v48 = vpop.xlane.xlu1 %3343 }
 0x7a6   : > { %v3360_v34 = vsub.f32 %v11771_v13, %v3344_v48  ;;  %3433 = vadd.xlane.f32.xlu0 %v3432_v59  ;;  %v11895_v13 = vpop.permute.xlu0 %3873 }
 0x7a8   : > { %v3391_v56 = vmul.f32 1.442695, %v3360_v34 }
 0x7aa   : > { %10174 = vpow2.f32 %v3391_v56  ;;  %v3591_v56 = vsel %vm1724_vm3, %v11783_v16, 0 }
 0x7b3   : > { %4209 = vrot.lane.b32.xlu1 %v11094_v36, %s10556_s26 }
 0x7b4   : > { %v11883_v2 = vpop.eup %10174 }
 0x7b5   : > { %v3438_v63 = vsel %vm760_vm2, %v11883_v2, 0.0 }
 0x7b6   : > { %3439 = vadd.xlane.f32.xlu0 %v3438_v63  ;;  %v13120_v63 = vmov 0.0  }
 0x7b7   : > { %4515 = vrot.lane.b32.xlu1 %v11019_v33, %s10557_s17 }
 0x7bb   : > { %4565 = vrot.lane.b32.xlu1 %v11023_v57, %s10557_s17 }
 0x7bf   : > { %4615 = vrot.lane.b32.xlu1 %v11029_v60, %s10557_s17 }
 0x7c3   : > { %4665 = vrot.lane.b32.xlu1 %v11038_v53, %s10557_s17 }
 0x7c7   : > { %4715 = vrot.lane.b32.xlu1 %v11034_v4, %s10557_s17 }
 0x7cb   : > { %4765 = vrot.lane.b32.xlu1 %v11048_v9, %s10557_s17  ;;  %v3395_v37 = vpop.xlane.xlu0 %3394 }
 0x7cc   : > { %10176 = vrcp.f32 %v3395_v37  ;;  %4161 = vrot.lane.b32.xlu0 %v11083_v31, %s10556_s26  ;;  %s13037_s26 = scalar_lea.hbm %s13096_s6, %s8731_s12 }
 0x7cf   : > { %4815 = vrot.lane.b32.xlu1 %v11043_v5, %s10557_s17 }
 0x7d0   : > { %4517 = vrot.lane.b32.xlu0 %v11019_v33, %s10558_s8 }
 0x7d3   : > { %4865 = vrot.lane.b32.xlu1 %v11058_v62, %s10557_s17  ;;  %v3401_v47 = vpop.xlane.xlu0 %3400 }
 0x7d4   : > { %10178 = vrcp.f32 %v3401_v47  ;;  %4567 = vrot.lane.b32.xlu0 %v11023_v57, %s10558_s8 }
 0x7d6   : > { %v10177_v51 = vpop.eup %10176  ;;  %v3398_v48 = vpop.xlane.xlu1 %3397 }
 0x7d7   : > { %10180 = vrcp.f32 %v3398_v48  ;;  %4967 = vrot.lane.b32.xlu1 %v11068_v23, %s10558_s8  ;;  %v3457_v59 = vmul.f32 %v10177_v51, %v11798_v28 }
 0x7d8   : > { %4617 = vrot.lane.b32.xlu0 %v11029_v60, %s10558_s8 }
 0x7d9   : > { %v3473_v34 = vpack.c.bf16 %v3457_v59, %v3457_v59 }
 0x7db   : > { %4965 = vrot.lane.b32.xlu1 %v11068_v23, %s10557_s17  ;;  %9345 = vmatmul.mubr.msk.bf16.vlgmr.msra.gmra.mrb[96].mxu0 %vm760_vm2, %v3473_v34  ;;  %v3687_v34 = vsel %vm1724_vm3, %v11785_v26, 0 }
 0x7dc   : > { %9355 = vmatpush3.bf16.msra.mxu0 %v3591_v56  ;;  %4667 = vrot.lane.b32.xlu0 %v11038_v53, %s10558_s8 }
 0x7dd   : > { %9356 = vmatprep.mubr.msk.bf16.mxu0 %vm10551_vm1, %v13120_v63  ;;  %9366 = vmatprep.subr.bf16.mxu0 %v13120_v63 }
 0x7de   : > { %v10179_v28 = vpop.eup %10178  ;;  %v3404_v37 = vpop.xlane.xlu1 %3403 }
 0x7df   : > { %10182 = vrcp.f32 %v3404_v37  ;;  %5067 = vrot.lane.b32.xlu1 %v11078_v29, %s10558_s8  ;;  %v3459_v16 = vmul.f32 %v10179_v28, %v11803_v10 }
 0x7e0   : > { %4717 = vrot.lane.b32.xlu0 %v11034_v4, %s10558_s8 }
 0x7e1   : > { %v10181_v47 = vpop.eup %10180  ;;  %v3475_v51 = vpack.c.bf16 %v3459_v16, %v3459_v16 }
 0x7e2   : > { %v3407_v48 = vpop.xlane.xlu0 %3406  ;;  %v3458_v59 = vmul.f32 %v10181_v47, %v11808_v45  ;;  %v3639_v45 = vsel %vm1724_vm3, %v11787_v44, 0  ;;  %v3735_v47 = vsel %vm1724_vm3, %v11791_v43, 0 }
 0x7e3   : > { %10184 = vrcp.f32 %v3407_v48  ;;  %5065 = vrot.lane.b32.xlu1 %v11078_v29, %s10557_s17  ;;  %9357 = vmatmul.mubr.msk.bf16.vlgmr.msra.gmra.mrb[100].mxu0 %vm760_vm2, %v3475_v51 }
 0x7e4   : > { %9367 = vmatpush3.bf16.msra.mxu0 %v3687_v34  ;;  %4767 = vrot.lane.b32.xlu0 %v11048_v9, %s10558_s8  ;;  %v3474_v10 = vpack.c.bf16 %v3458_v59, %v3458_v59  ;;  %v3783_v34 = vsel %vm1724_vm3, %v11789_v14, 0  ;;  %v3831_v14 = vsel %vm1724_vm3, %v11794_v21, 0  ;;  %v3879_v21 = vsel %vm1724_vm3, %v11895_v13, 0 }
 0x7e5   : > { %9368 = vmatprep.mubr.msk.bf16.mxu0 %vm10551_vm1, %v13120_v63  ;;  %9378 = vmatprep.subr.bf16.mxu0 %v13120_v63  ;;  %v3927_v13 = vsel %vm1724_vm3, %v11862_v42, 0  ;;  %v3975_v42 = vsel %vm1724_vm3, %v11866_v15, 0 }
 0x7e6   : > { %9351 = vmatmul.mubr.msk.bf16.vlgmr.msra.gmra.mrb[112].mxu1 %vm760_vm2, %v3474_v10  ;;  %v3410_v26 = vpop.xlane.xlu1 %3409 }
 0x7e7   : > { %9361 = vmatpush3.bf16.msra.mxu1 %v3639_v45  ;;  %10186 = vrcp.f32 %v3410_v26  ;;  %v3413_v56 = vpop.xlane.xlu0 %3412  ;;  %5167 = vrot.lane.b32.xlu1 %v11088_v35, %s10558_s8 }
 0x7e8   : > { %10188 = vrcp.f32 %v3413_v56  ;;  %4817 = vrot.lane.b32.xlu0 %v11043_v5, %s10558_s8  ;;  %9362 = vmatprep.mubr.msk.bf16.mxu1 %vm10551_vm1, %v13120_v63 }
 0x7e9   : > { %v10183_v28 = vpop.eup %10182  ;;  %9372 = vmatprep.subr.bf16.mxu1 %v13120_v63 }
 0x7ea   : > { %v3460_v44 = vmul.f32 %v10183_v28, %v11814_v40 }
 0x7eb   : > { %5165 = vrot.lane.b32.xlu1 %v11088_v35, %s10557_s17 }
 0x7ec   : > { %4867 = vrot.lane.b32.xlu0 %v11058_v62, %s10558_s8  ;;  %v3476_v37 = vpack.c.bf16 %v3460_v44, %v3460_v44 }
 0x7ed   : > { %v10185_v16 = vpop.eup %10184 }
 0x7ee   : > { %9363 = vmatmul.mubr.msk.bf16.vlgmr.msra.gmra.mrb[116].mxu1 %vm760_vm2, %v3476_v37  ;;  %v3416_v51 = vpop.xlane.xlu1 %3415  ;;  %v3461_v48 = vmul.f32 %v10185_v16, %v11820_v20 }
 0x7ef   : > { %9373 = vmatpush3.bf16.msra.mxu1 %v3735_v47  ;;  %10190 = vrcp.f32 %v3416_v51  ;;  %5267 = vrot.lane.b32.xlu1 %v11094_v36, %s10558_s8 }
 0x7f0   : > { %4917 = vrot.lane.b32.xlu0 %v11054_v54, %s10558_s8  ;;  %v3477_v40 = vpack.c.bf16 %v3461_v48, %v3461_v48  ;;  %9374 = vmatprep.mubr.msk.bf16.mxu1 %vm10551_vm1, %v13120_v63 }
 0x7f1   : > { %v10187_v59 = vpop.eup %10186  ;;  %9384 = vmatprep.subr.bf16.mxu1 %v13120_v63 }
 0x7f2   : > { %v10189_v43 = vpop.eup %10188  ;;  %v3419_v20 = vpop.xlane.xlu1 %3418  ;;  %9369 = vmatmul.mubr.msk.bf16.vlgmr.msra.gmra.mrb[104].mxu0 %vm760_vm2, %v3477_v40  ;;  %v3462_v10 = vmul.f32 %v10187_v59, %v11825_v24 }
 0x7f3   : > { %10192 = vrcp.f32 %v3419_v20  ;;  %9379 = vmatpush3.bf16.msra.mxu0 %v3783_v34  ;;  %5265 = vrot.lane.b32.xlu1 %v11094_v36, %s10557_s17  ;;  %v3463_v26 = vmul.f32 %v10189_v43, %v11827_v3  ;;  %v4023_v34 = vsel %vm1724_vm3, %v11872_v18, 0 }
 0x7f4   : > { %4915 = vrot.lane.b32.xlu0 %v11054_v54, %s10557_s17  ;;  %v3478_v45 = vpack.c.bf16 %v3462_v10, %v3462_v10  ;;  %9380 = vmatprep.mubr.msk.bf16.mxu0 %vm10551_vm1, %v13120_v63 }
 0x7f5   : > { %9390 = vmatprep.subr.bf16.mxu0 %v13120_v63  ;;  %v3479_v3 = vpack.c.bf16 %v3463_v26, %v3463_v26 }
 0x7f6   : > { %9375 = vmatmul.mubr.msk.bf16.vlgmr.msra.gmra.mrb[120].mxu1 %vm760_vm2, %v3478_v45  ;;  %v3425_v24 = vpop.xlane.xlu1 %3424  ;;  %v3422_v56 = vpop.xlane.xlu0 %3421 }
 0x7f7   : > { %9385 = vmatpush3.bf16.msra.mxu1 %v3831_v14  ;;  %10194 = vrcp.f32 %v3425_v24  ;;  %5555 = vrot.lane.b32.xlu1 %v11023_v57, %s10559_s30 }
 0x7f8   : > { %10196 = vrcp.f32 %v3422_v56  ;;  %5017 = vrot.lane.b32.xlu0 %v11063_v17, %s10558_s8  ;;  %9386 = vmatprep.mubr.msk.bf16.mxu1 %vm10551_vm1, %v13120_v63 }
 0x7f9   : > { %v10191_v28 = vpop.eup %10190  ;;  %9396 = vmatprep.subr.bf16.mxu1 %v13120_v63 }
 0x7fa   : > { %9381 = vmatmul.mubr.msk.bf16.vlgmr.msra.gmra.mrb[108].mxu0 %vm760_vm2, %v3479_v3  ;;  %v3464_v44 = vmul.f32 %v10191_v28, %v11834_v39  ;;  %v4114_v10 = vpop.permute.xlu1 %4113 }
 0x7fb   : > { %9391 = vmatpush3.bf16.msra.mxu0 %v3879_v21  ;;  %5651 = vrot.lane.b32.xlu1 %v11038_v53, %s10559_s30  ;;  %v4119_v26 = vsel %vm1724_vm3, %v4114_v10, 0 }
 0x7fc   : > { %5015 = vrot.lane.b32.xlu0 %v11063_v17, %s10557_s17  ;;  %v3480_v37 = vpack.c.bf16 %v3464_v44, %v3464_v44  ;;  %9392 = vmatprep.mubr.msk.bf16.mxu0 %vm10551_vm1, %v13120_v63 }
 0x7fd   : > { %v10193_v16 = vpop.eup %10192  ;;  %9402 = vmatprep.subr.bf16.mxu0 %v13120_v63 }
 0x7fe   : > { %9387 = vmatmul.mubr.msk.bf16.vlgmr.msra.gmra.mrb[124].mxu1 %vm760_vm2, %v3480_v37  ;;  %v3428_v39 = vpop.xlane.xlu0 %3427  ;;  %v3465_v47 = vmul.f32 %v10193_v16, %v11838_v22 }
 0x7ff   : > { %9397 = vmatpush3.bf16.msra.mxu1 %v3927_v13  ;;  %10198 = vrcp.f32 %v3428_v39  ;;  %9398 = vmatprep.mubr.msk.bf16.mxu1 %vm10551_vm1, %v13120_v63 }
 0x800   : > { %5117 = vrot.lane.b32.xlu0 %v11074_v8, %s10558_s8  ;;  %v3481_v51 = vpack.c.bf16 %v3465_v47, %v3465_v47  ;;  %9408 = vmatprep.subr.bf16.mxu1 %v13120_v63 }
 0x801   : > { %v10195_v48 = vpop.eup %10194 }
 0x802   : > { %v10197_v40 = vpop.eup %10196  ;;  %9393 = vmatmul.mubr.msk.bf16.vlgmr.msra.gmra.mrb[112].mxu0 %vm760_vm2, %v3481_v51  ;;  %v3467_v59 = vmul.f32 %v10195_v48, %v11843_v19  ;;  %v4066_v15 = vpop.permute.xlu0 %4065  ;;  %v4266_v48 = vld [vmem:[#allocation8 + $0x4] sm:$0xf] }
 0x803   : > { %9403 = vmatpush3.bf16.msra.mxu0 %v3975_v42  ;;  %v3466_v22 = vmul.f32 %v10197_v40, %v11845_v27  ;;  %9404 = vmatprep.mubr.msk.bf16.mxu0 %vm10551_vm1, %v13120_v63  ;;  %v4071_v19 = vsel %vm1724_vm3, %v4066_v15, 0  ;;  %v4292_v42 = vsel %vm1724_vm3, %v4266_v48, 0 }
 0x804   : > { %5115 = vrot.lane.b32.xlu0 %v11074_v8, %s10557_s17  ;;  %9414 = vmatprep.subr.bf16.mxu0 %v13120_v63  ;;  %v3483_v27 = vpack.c.bf16 %v3467_v59, %v3467_v59 }
 0x805   : > { %v3482_v43 = vpack.c.bf16 %v3466_v22, %v3466_v22 }
 0x807   : > { %9399 = vmatmul.mubr.msk.bf16.vlgmr.msra.gmra.mrb[128].mxu1 %vm760_vm2, %v3482_v43 }
 0x808   : > { %9409 = vmatpush3.bf16.msra.mxu1 %v4023_v34  ;;  %5217 = vrot.lane.b32.xlu0 %v11083_v31, %s10558_s8  ;;  %s10466_s8 = scalar_lea.vmem %s13039_s7, 2048 }
 0x809   : > { %v10199_v20 = vpop.eup %10198  ;;  %9410 = vmatprep.mubr.msk.bf16.mxu1 %vm10551_vm1, %v13120_v63  ;;  %9420 = vmatprep.subr.bf16.mxu1 %v13120_v63  ;;  %p10467_p1 = scmp.ne.s32.totalorder %s13039_s7, %s10466_s8 }
 0x80a   : > { %9405 = vmatmul.mubr.msk.bf16.vlgmr.msra.gmra.mrb[116].mxu0 %vm760_vm2, %v3483_v27  ;;  %v3468_v18 = vmul.f32 %v10199_v20, %v11851_v41 }
 0x80b   : > { %9415 = vmatpush3.bf16.msra.mxu0 %v4071_v19  ;;  %9416 = vmatprep.mubr.msk.bf16.mxu0 %vm10551_vm1, %v13120_v63  ;;  %p10468_p4 = pnand %p10467_p1, %p10739_p6 }
 0x80c   : > { %5215 = vrot.lane.b32.xlu0 %v11083_v31, %s10557_s17  ;;  %v3484_v45 = vpack.c.bf16 %v3468_v18, %v3468_v18  ;;  %9426 = vmatprep.subr.bf16.mxu0 %v13120_v63  ;;  %s8391_s17 = scalar_lea.sflag [#allocation4], %s10787_s15 }
 0x80d   : > { %p10469_p8 = pneg %p10468_p4 }
 0x80f   : > { %9411 = vmatmul.mubr.msk.bf16.vlgmr.msra.gmra.mrb[132].mxu1 %vm760_vm2, %v3484_v45 }
 0x810   : > { %9421 = vmatpush3.bf16.msra.mxu1 %v4119_v26  ;;  %5507 = vrot.lane.b32.xlu0 %v11019_v33, %s10559_s30 }
 0x811   : > { %9422 = vmatprep.mubr.msk.bf16.mxu1 %vm10551_vm1, %v13120_v63  ;;  %9432 = vmatprep.subr.bf16.mxu1 %v13120_v63 }
 0x814   : > { %5603 = vrot.lane.b32.xlu0 %v11029_v60, %s10559_s30 }
 0x82b   : > { %v3431_v41 = vpop.xlane.xlu1 %3430 }
 0x82c   : > { %10200 = vrcp.f32 %v3431_v41 }
 0x82f   : > { %v3437_v56 = vpop.xlane.xlu1 %3436 }
 0x833   : > { %v3434_v14 = vpop.xlane.xlu0 %3433  ;;  %v4210_v37 = vpop.permute.xlu1 %4209 }
 0x834   : > { %10202 = vrcp.f32 %v3434_v14  ;;  %v4215_v39 = vsel %vm1724_vm3, %v4210_v37, 0 }
 0x835   : > { %10204 = vrcp.f32 %v3437_v56 }
 0x836   : > { %v10201_v24 = vpop.eup %10200 }
 0x837   : > { %v3469_v3 = vmul.f32 %v10201_v24, %v11864_v6  ;;  %v4516_v43 = vpop.permute.xlu1 %4515 }
 0x839   : > { %v3485_v28 = vpack.c.bf16 %v3469_v3, %v3469_v3 }
 0x83b   : > { %9417 = vmatmul.mubr.msk.bf16.vlgmr.msra.gmra.mrb[120].mxu0 %vm760_vm2, %v3485_v28  ;;  %v4566_v27 = vpop.permute.xlu1 %4565 }
 0x83c   : > { %9428 = vmatprep.mubr.msk.bf16.mxu0 %vm10551_vm1, %v13120_v63 }
 0x83e   : > { %v10203_v21 = vpop.eup %10202 }
 0x83f   : > { %v3470_v44 = vmul.f32 %v10203_v21, %v11876_v25  ;;  %v10205_v13 = vpop.eup %10204 }
 0x840   : > { %v3471_v6 = vmul.f32 %v10205_v13, %v11870_v61 }
 0x841   : > { %v3486_v16 = vpack.c.bf16 %v3470_v44, %v3470_v44 }
 0x842   : > { %v3487_v40 = vpack.c.bf16 %v3471_v6, %v3471_v6 }
 0x843   : > { %9423 = vmatmul.mubr.msk.bf16.vlgmr.msra.gmra.mrb[136].mxu1 %vm760_vm2, %v3486_v16  ;;  %v3440_v47 = vpop.xlane.xlu0 %3439 }
 0x844   : > { %9433 = vmatpush3.bf16.msra.mxu1 %v4215_v39  ;;  %10206 = vrcp.f32 %v3440_v47  ;;  %9434 = vmatprep.mubr.msk.bf16.mxu1 %vm10551_vm1, %v13120_v63 }
 0x845   : > { %9474 = vmatprep.subr.bf16.mxu1 %v13120_v63 }
 0x847   : > { %v4162_v51 = vpop.permute.xlu0 %4161 }
 0x848   : > { %v4167_v25 = vsel %vm1724_vm3, %v4162_v51, 0 }
 0x849   : > { %9427 = vmatpush3.bf16.msra.mxu0 %v4167_v25 }
 0x84a   : > { %9946 = vmatprep.subr.msk.bf16.mxu0 %vm1724_vm3, %v4266_v48 }
 0x84b   : > { %v4518_v34 = vpop.permute.xlu0 %4517 }
 0x84c   : > { %9429 = vmatmul.mubr.msk.bf16.vlgmr.msra.gmra.mrb[124].mxu0 %vm760_vm2, %v3487_v40  ;;  %v4523_v61 = vsel %vm760_vm2, %v4518_v34, 0 }
 0x84d   : > { %9439 = vmatpush3.bf16.msra.mxu0 %v4292_v42 }
 0x84e   : > { %v10207_v22 = vpop.eup %10206 }
 0x84f   : > { %v3472_v59 = vmul.f32 %v10207_v22, %v11883_v2  ;;  %v4568_v20 = vpop.permute.xlu0 %4567  ;;  %v4616_v2 = vpop.permute.xlu1 %4615  ;;  %v2496_v22 = vld [vmem:[#allocation8] sm:$0xf] }
 0x850   : > { %v4573_v19 = vsel %vm760_vm2, %v4568_v20, 0  ;;  %9947 = vmatprep.subr.msk.bf16.mxu0 %vm1724_vm3, %v2496_v22 }
 0x851   : > { %v3488_v15 = vpack.c.bf16 %v3472_v59, %v3472_v59 }
 0x853   : > { %9435 = vmatmul.mubr.msk.bf16.vlgmr.msra.gmra.mrb[140].mxu1 %vm760_vm2, %v3488_v15  ;;  %v4618_v18 = vpop.permute.xlu0 %4617  ;;  %v4666_v10 = vpop.permute.xlu1 %4665 }
 0x854   : > { %9475 = vmatpush3.bf16.xpose.msra.mxu1 %v4523_v61  ;;  %9476 = vmatprep.mubr.msk.bf16.mxu1 %vm10551_vm1, %v13120_v63  ;;  %v4623_v45 = vsel %vm760_vm2, %v4618_v18, 0 }
 0x855   : > { %9480 = vmatprep.subr.bf16.mxu1 %v13120_v63 }
 0x857   : > { %v4716_v26 = vpop.permute.xlu1 %4715  ;;  %v4668_v41 = vpop.permute.xlu0 %4667 }
 0x858   : > { %v4673_v14 = vsel %vm760_vm2, %v4668_v41, 0 }
 0x85b   : > { %9477 = vmatmul.mubr.msk.bf16.vlgmr.msra.gmra.mrb[144].mxu1 %vm760_vm2, %v4516_v43  ;;  %v4766_v24 = vpop.permute.xlu1 %4765  ;;  %v4718_v56 = vpop.permute.xlu0 %4717 }
 0x85c   : > { %9481 = vmatpush3.bf16.xpose.msra.mxu1 %v4573_v19  ;;  %9482 = vmatprep.mubr.msk.bf16.mxu1 %vm10551_vm1, %v13120_v63  ;;  %v4723_v3 = vsel %vm760_vm2, %v4718_v56, 0 }
 0x85d   : > { %9486 = vmatprep.subr.bf16.mxu1 %v13120_v63 }
 0x85f   : > { %v4816_v28 = vpop.permute.xlu1 %4815  ;;  %v4768_v21 = vpop.permute.xlu0 %4767 }
 0x860   : > { %v4773_v37 = vsel %vm760_vm2, %v4768_v21, 0 }
 0x863   : > { %9483 = vmatmul.mubr.msk.bf16.vlgmr.msra.gmra.mrb[148].mxu1 %vm760_vm2, %v4566_v27  ;;  %v4866_v44 = vpop.permute.xlu1 %4865  ;;  %v4818_v13 = vpop.permute.xlu0 %4817 }
 0x864   : > { %9487 = vmatpush3.bf16.xpose.msra.mxu1 %v4623_v45  ;;  %9488 = vmatprep.mubr.msk.bf16.mxu1 %vm10551_vm1, %v13120_v63  ;;  %v4823_v39 = vsel %vm760_vm2, %v4818_v13, 0 }
 0x865   : > { %9492 = vmatprep.subr.bf16.mxu1 %v13120_v63 }
 0x867   : > { %v4968_v16 = vpop.permute.xlu1 %4967  ;;  %v4868_v6 = vpop.permute.xlu0 %4867 }
 0x868   : > { %v4873_v51 = vsel %vm760_vm2, %v4868_v6, 0  ;;  %v4973_v40 = vsel %vm760_vm2, %v4968_v16, 0 }
 0x86b   : > { %9489 = vmatmul.mubr.msk.bf16.vlgmr.msra.gmra.mrb[152].mxu1 %vm760_vm2, %v4616_v2  ;;  %v4966_v47 = vpop.permute.xlu1 %4965 }
 0x86c   : > { %9493 = vmatpush3.bf16.xpose.msra.mxu1 %v4673_v14  ;;  %9494 = vmatprep.mubr.msk.bf16.mxu1 %vm10551_vm1, %v13120_v63 }
 0x86d   : > { %9498 = vmatprep.subr.bf16.mxu1 %v13120_v63 }
 0x86f   : > { %v5068_v48 = vpop.permute.xlu1 %5067 }
 0x870   : > { %v5073_v59 = vsel %vm760_vm2, %v5068_v48, 0 }
 0x873   : > { %9495 = vmatmul.mubr.msk.bf16.vlgmr.msra.gmra.mrb[156].mxu1 %vm760_vm2, %v4666_v10  ;;  %v5066_v25 = vpop.permute.xlu1 %5065 }
 0x874   : > { %9499 = vmatpush3.bf16.xpose.msra.mxu1 %v4723_v3  ;;  %9500 = vmatprep.mubr.msk.bf16.mxu1 %vm10551_vm1, %v13120_v63 }
 0x875   : > { %9504 = vmatprep.subr.bf16.mxu1 %v13120_v63 }
 0x877   : > { %v5168_v42 = vpop.permute.xlu1 %5167 }
 0x878   : > { %v5173_v34 = vsel %vm760_vm2, %v5168_v42, 0 }
 0x87b   : > { %9501 = vmatmul.mubr.msk.bf16.vlgmr.msra.gmra.mrb[160].mxu1 %vm760_vm2, %v4716_v26  ;;  %v5166_v43 = vpop.permute.xlu1 %5165 }
 0x87c   : > { %9505 = vmatpush3.bf16.xpose.msra.mxu1 %v4773_v37  ;;  %9506 = vmatprep.mubr.msk.bf16.mxu1 %vm10551_vm1, %v13120_v63 }
 0x87d   : > { %9510 = vmatprep.subr.bf16.mxu1 %v13120_v63 }
 0x87f   : > { %v5268_v15 = vpop.permute.xlu1 %5267 }
 0x880   : > { %v5273_v27 = vsel %vm760_vm2, %v5268_v15, 0 }
 0x883   : > { %9507 = vmatmul.mubr.msk.bf16.vlgmr.msra.gmra.mrb[164].mxu1 %vm760_vm2, %v4766_v24  ;;  %v5266_v61 = vpop.permute.xlu1 %5265 }
 0x884   : > { %9511 = vmatpush3.bf16.xpose.msra.mxu1 %v4823_v39  ;;  %9512 = vmatprep.mubr.msk.bf16.mxu1 %vm10551_vm1, %v13120_v63  ;;  %v4416_v39 = vsel %vm1724_vm3, %v2496_v22, 0 }
 0x885   : > { %9516 = vmatprep.subr.bf16.mxu1 %v13120_v63 }
 0x887   : > { %v5556_v2 = vpop.permute.xlu1 %5555 }
 0x888   : > { %v5561_v45 = vsel %vm1724_vm3, %v5556_v2, 0 }
 0x88b   : > { %9513 = vmatmul.mubr.msk.bf16.vlgmr.msra.gmra.mrb[168].mxu1 %vm760_vm2, %v4816_v28 }
 0x88c   : > { %9517 = vmatpush3.bf16.xpose.msra.mxu1 %v4873_v51  ;;  %9518 = vmatprep.mubr.msk.bf16.mxu1 %vm10551_vm1, %v13120_v63 }
 0x88d   : > { %9528 = vmatprep.subr.bf16.mxu1 %v13120_v63 }
 0x893   : > { %9519 = vmatmul.mubr.msk.bf16.vlgmr.msra.gmra.mrb[172].mxu1 %vm760_vm2, %v4866_v44 }
 0x894   : > { %9529 = vmatpush3.bf16.xpose.msra.mxu1 %v4973_v40  ;;  %9530 = vmatprep.mubr.msk.bf16.mxu1 %vm10551_vm1, %v13120_v63 }
 0x895   : > { %9540 = vmatprep.subr.bf16.mxu1 %v13120_v63 }
 0x89b   : > { %9531 = vmatmul.mubr.msk.bf16.vlgmr.msra.gmra.mrb[176].mxu1 %vm760_vm2, %v4966_v47 }
 0x89c   : > { %9541 = vmatpush3.bf16.xpose.msra.mxu1 %v5073_v59  ;;  %9542 = vmatprep.mubr.msk.bf16.mxu1 %vm10551_vm1, %v13120_v63 }
 0x89d   : > { %9552 = vmatprep.subr.bf16.mxu1 %v13120_v63 }
 0x8a3   : > { %9543 = vmatmul.mubr.msk.bf16.vlgmr.msra.gmra.mrb[180].mxu1 %vm760_vm2, %v5066_v25 }
 0x8a4   : > { %9553 = vmatpush3.bf16.xpose.msra.mxu1 %v5173_v34  ;;  %9554 = vmatprep.mubr.msk.bf16.mxu1 %vm10551_vm1, %v13120_v63 }
 0x8a5   : > { %9564 = vmatprep.subr.bf16.mxu1 %v13120_v63 }
 0x8ab   : > { %9555 = vmatmul.mubr.msk.bf16.vlgmr.msra.gmra.mrb[184].mxu1 %vm760_vm2, %v5166_v43 }
 0x8ac   : > { %9565 = vmatpush3.bf16.xpose.msra.mxu1 %v5273_v27  ;;  %9566 = vmatprep.mubr.msk.bf16.mxu1 %vm10551_vm1, %v13120_v63 }
 0x8ad   : > { %9576 = vmatprep.subr.bf16.mxu1 %v13120_v63 }
 0x8ae   : > { %v3531_v20 = vpop.f32.mrb[96].mxu0 }
 0x8af   : > { %v9346_v19 = vpop.f32.mrb[97].mxu0 }
 0x8b0   : > { %v3534_v18 = vpop.f32.mrb[98].mxu0 }
 0x8b1   : > { %v9347_v10 = vpop.f32.mrb[99].mxu0 }
 0x8b3   : > { %9567 = vmatmul.mubr.msk.bf16.vlgmr.msra.gmra.mrb[188].mxu1 %vm760_vm2, %v5266_v61 }
 0x8b4   : > { %9577 = vmatpush3.bf16.msra.mxu1 %v5561_v45  ;;  %9578 = vmatprep.mubr.msk.bf16.mxu1 %vm10551_vm1, %v13120_v63 }
 0x8b5   : > { %9588 = vmatprep.subr.bf16.mxu1 %v13120_v63 }
 0x8b6   : > { %v3627_v26 = vpop.f32.mrb[100].mxu0 }
 0x8b7   : > { %v9358_v41 = vpop.f32.mrb[101].mxu0 }
 0x8b8   : > { %v3630_v14 = vpop.f32.mrb[102].mxu0 }
 0x8b9   : > { %v3579_v24 = vpop.f32.mrb[112].mxu1  ;;  %v9359_v56 = vpop.f32.mrb[103].mxu0 }
 0x8ba   : > { %v4257_v3 = vpack.c.bf16 %v3579_v24, %v3531_v20  ;;  %v9352_v28 = vpop.f32.mrb[113].mxu1 }
 0x8bb   : > { %v3582_v21 = vpop.f32.mrb[114].mxu1 }
 0x8bc   : > { %v9353_v44 = vpop.f32.mrb[115].mxu1  ;;  %9440 = vmatprep.mubr.msk.bf16.mxu0 %vm760_vm2, %v4257_v3 }
 0x8c1   : > { %v3675_v37 = vpop.f32.mrb[116].mxu1 }
 0x8c2   : > { %v4258_v16 = vpack.c.bf16 %v3675_v37, %v3627_v26  ;;  %v9364_v13 = vpop.f32.mrb[117].mxu1 }
 0x8c3   : > { %v3678_v47 = vpop.f32.mrb[118].mxu1 }
 0x8c4   : > { %v9365_v6 = vpop.f32.mrb[119].mxu1  ;;  %9441 = vmatmul.mubr.msk.bf16.vlgmr.msra.gmra.mrb[128].mxu0 %vm760_vm2, %v4258_v16 }
 0x8c5   : > { %v3723_v51 = vpop.f32.mrb[104].mxu0  ;;  %9457 = vmatpush3.bf16.msra.mxu0 %v4416_v39 }
 0x8c6   : > { %v9370_v48 = vpop.f32.mrb[105].mxu0  ;;  %9522 = vmatprep.subr.bf16.mxu0 %v13120_v63 }
 0x8c7   : > { %v3726_v25 = vpop.f32.mrb[106].mxu0 }
 0x8c8   : > { %v9371_v40 = vpop.f32.mrb[107].mxu0 }
 0x8c9   : > { %v3771_v42 = vpop.f32.mrb[120].mxu1 }
 0x8ca   : > { %v4259_v59 = vpack.c.bf16 %v3771_v42, %v3723_v51  ;;  %v9376_v43 = vpop.f32.mrb[121].mxu1 }
 0x8cb   : > { %v3774_v34 = vpop.f32.mrb[122].mxu1 }
 0x8cc   : > { %v9377_v15 = vpop.f32.mrb[123].mxu1  ;;  %9444 = vmatprep.mubr.msk.bf16.mxu0 %vm760_vm2, %v4259_v59 }
 0x8cd   : > { %v3819_v61 = vpop.f32.mrb[108].mxu0 }
 0x8ce   : > { %v9382_v22 = vpop.f32.mrb[109].mxu0 }
 0x8cf   : > { %v3822_v27 = vpop.f32.mrb[110].mxu0 }
 0x8d0   : > { %v9383_v20 = vpop.f32.mrb[111].mxu0 }
 0x8d1   : > { %v3867_v19 = vpop.f32.mrb[124].mxu1 }
 0x8d2   : > { %v4260_v2 = vpack.c.bf16 %v3867_v19, %v3819_v61  ;;  %v9388_v18 = vpop.f32.mrb[125].mxu1 }
 0x8d3   : > { %v3870_v10 = vpop.f32.mrb[126].mxu1 }
 0x8d4   : > { %v9389_v45 = vpop.f32.mrb[127].mxu1  ;;  %9445 = vmatmul.mubr.msk.bf16.gmra.mrb[132].mxu0 %vm760_vm2, %v4260_v2 }
 0x8d5   : > { %v3915_v26 = vpop.f32.mrb[112].mxu0 }
 0x8d6   : > { %v9394_v41 = vpop.f32.mrb[113].mxu0 }
 0x8d7   : > { %v3918_v14 = vpop.f32.mrb[114].mxu0 }
 0x8d8   : > { %v9395_v24 = vpop.f32.mrb[115].mxu0 }
 0x8d9   : > { %v13121_v24 = vpack.c.bf16 %v11660_v46, %v11649_v30  ;;  %v13123_v30 = vpack.c.bf16 %v11677_v50, %v11673_v0  ;;  %v13125_v0 = vpack.c.bf16 %v11689_v38, %v11685_v7  ;;  %v13127_v7 = vpack.c.bf16 %v11703_v11, %v11695_v49 }
 0x8da   : > { %v3963_v56 = vpop.f32.mrb[128].mxu1 }
 0x8db   : > { %v4261_v3 = vpack.c.bf16 %v3963_v56, %v3915_v26  ;;  %v9400_v28 = vpop.f32.mrb[129].mxu1  ;;  %v4918_v56 = vpop.permute.xlu0 %4917 }
 0x8dc   : > { %v3966_v21 = vpop.f32.mrb[130].mxu1 }
 0x8dd   : > { %v9401_v44 = vpop.f32.mrb[131].mxu1  ;;  %9448 = vmatprep.mubr.msk.bf16.mxu0 %vm760_vm2, %v4261_v3  ;;  %v4011_v37 = vpop.f32.mrb[116].mxu0 }
 0x8de   : > { %v9406_v16 = vpop.f32.mrb[117].mxu0 }
 0x8df   : > { %v4014_v13 = vpop.f32.mrb[118].mxu0  ;;  %v13122_v16 = vpack.c.bf16 %v11671_v55, %v11669_v32  ;;  %v13124_v32 = vpack.c.bf16 %v11683_v58, %v11679_v1  ;;  %v4916_v50 = vpop.permute.xlu0 %4915  ;;  %v13126_v1 = vpack.c.bf16 %v11697_v12, %v11691_v52  ;;  %v13129_v52 = vld [vmem:[#allocation15_spill] sm:$0xff] }
 0x8e0   : > { %v9407_v39 = vpop.f32.mrb[119].mxu0 }
 0x8e2   : > { %v4059_v47 = vpop.f32.mrb[132].mxu1 }
 0x8e3   : > { %v4262_v6 = vpack.c.bf16 %v4059_v47, %v4011_v37  ;;  %v9412_v51 = vpop.f32.mrb[133].mxu1  ;;  %v4923_v37 = vsel %vm760_vm2, %v4918_v56, 0 }
 0x8e4   : > { %v4062_v48 = vpop.f32.mrb[134].mxu1 }
 0x8e5   : > { %v9413_v25 = vpop.f32.mrb[135].mxu1  ;;  %9449 = vmatmul.mubr.msk.bf16.gmra.mrb[136].mxu0 %vm760_vm2, %v4262_v6 }
 0x90e   : > { %v4107_v40 = vpop.f32.mrb[120].mxu0 }
 0x90f   : > { %v9418_v42 = vpop.f32.mrb[121].mxu0 }
 0x910   : > { %v4110_v59 = vpop.f32.mrb[122].mxu0  ;;  %v5018_v42 = vpop.permute.xlu0 %5017 }
 0x911   : > { %v9419_v43 = vpop.f32.mrb[123].mxu0 }
 0x916   : > { %v4155_v34 = vpop.f32.mrb[136].mxu1 }
 0x917   : > { %v4263_v15 = vpack.c.bf16 %v4155_v34, %v4107_v40  ;;  %v9424_v61 = vpop.f32.mrb[137].mxu1  ;;  %v5016_v34 = vpop.permute.xlu0 %5015 }
 0x918   : > { %v4158_v22 = vpop.f32.mrb[138].mxu1  ;;  %v13128_v61 = vld [vmem:[#allocation16_spill] sm:$0xff] }
 0x919   : > { %v9425_v27 = vpop.f32.mrb[139].mxu1  ;;  %9452 = vmatprep.mubr.msk.bf16.mxu0 %vm760_vm2, %v4263_v15  ;;  %v13130_v12 = vpack.c.bf16 %v13128_v61, %v13129_v52 }
 0x91b   : > { %v5118_v49 = vpop.permute.xlu0 %5117 }
 0x91f   : > { %v4203_v20 = vpop.f32.mrb[124].mxu0 }
 0x920   : > { %v9430_v19 = vpop.f32.mrb[125].mxu0 }
 0x921   : > { %v4206_v2 = vpop.f32.mrb[126].mxu0 }
 0x922   : > { %v9431_v18 = vpop.f32.mrb[127].mxu0  ;;  %v5023_v2 = vsel %vm760_vm2, %v5018_v42, 0 }
 0x926   : > { %v4251_v10 = vpop.f32.mrb[140].mxu1 }
 0x927   : > { %v4264_v45 = vpack.c.bf16 %v4251_v10, %v4203_v20  ;;  %v9436_v26 = vpop.f32.mrb[141].mxu1  ;;  %v5116_v10 = vpop.permute.xlu0 %5115 }
 0x928   : > { %v4254_v41 = vpop.f32.mrb[142].mxu1 }
 0x929   : > { %v9437_v14 = vpop.f32.mrb[143].mxu1  ;;  %9453 = vmatmul.mubr.msk.bf16.gmra.mrb[140].mxu0 %vm760_vm2, %v4264_v45 }
 0x92a   : > { %9458 = vmatprep.mubr.msk.bf16.mxu0 %vm760_vm2, %v13121_v24  ;;  %v5123_v24 = vsel %vm760_vm2, %v5118_v49, 0 }
 0x92e   : > { %v12141_v3 = vpop.f32.mrb[144].mxu1 }
 0x92f   : > { %v9478_v28 = vpop.f32.mrb[145].mxu1  ;;  %v5315_v21 = vsel %vm760_vm2, %v12141_v3, -inf }
 0x930   : > { %5316 = vmax.xlane.f32.xlu0 %v5315_v21  ;;  %v4562_v44 = vpop.f32.mrb[146].mxu1  ;;  %v5218_v28 = vpop.permute.xlu0 %5217 }
 0x931   : > { %9459 = vmatmul.mubr.msk.bf16.vlgmr.msra.gmra.mrb[128].mxu0 %vm760_vm2, %v13122_v16  ;;  %v9479_v13 = vpop.f32.mrb[147].mxu1 }
 0x932   : > { %9523 = vmatpush3.bf16.xpose.msra.mxu0 %v4923_v37  ;;  %9462 = vmatprep.mubr.msk.bf16.mxu0 %vm760_vm2, %v13123_v30  ;;  %v5223_v30 = vsel %vm760_vm2, %v5218_v28, 0 }
 0x933   : > { %9534 = vmatprep.subr.bf16.mxu0 %v13120_v63 }
 0x934   : > { %v5216_v16 = vpop.permute.xlu0 %5215 }
 0x936   : > { %v12155_v46 = vpop.f32.mrb[148].mxu1 }
 0x937   : > { %v9484_v39 = vpop.f32.mrb[149].mxu1  ;;  %v5318_v47 = vsel %vm760_vm2, %v12155_v46, -inf }
 0x938   : > { %5319 = vmax.xlane.f32.xlu1 %v5318_v47  ;;  %v4612_v6 = vpop.f32.mrb[150].mxu1  ;;  %v5508_v47 = vpop.permute.xlu0 %5507 }
 0x939   : > { %9463 = vmatmul.mubr.msk.bf16.gmra.mrb[132].mxu0 %vm760_vm2, %v13124_v32  ;;  %v9485_v55 = vpop.f32.mrb[151].mxu1 }
 0x93a   : > { %9466 = vmatprep.mubr.msk.bf16.mxu0 %vm760_vm2, %v13125_v0 }
 0x93e   : > { %v12167_v51 = vpop.f32.mrb[152].mxu1 }
 0x93f   : > { %v9490_v48 = vpop.f32.mrb[153].mxu1  ;;  %v5321_v25 = vsel %vm760_vm2, %v12167_v51, -inf }
 0x940   : > { %5322 = vmax.xlane.f32.xlu0 %v5321_v25  ;;  %v4662_v40 = vpop.f32.mrb[154].mxu1 }
 0x941   : > { %9467 = vmatmul.mubr.msk.bf16.gmra.mrb[136].mxu0 %vm760_vm2, %v13126_v1  ;;  %v9491_v58 = vpop.f32.mrb[155].mxu1 }
 0x942   : > { %9470 = vmatprep.mubr.msk.bf16.mxu0 %vm760_vm2, %v13127_v7 }
 0x946   : > { %v12179_v38 = vpop.f32.mrb[156].mxu1 }
 0x947   : > { %v9496_v59 = vpop.f32.mrb[157].mxu1  ;;  %v5324_v43 = vsel %vm760_vm2, %v12179_v38, -inf }
 0x948   : > { %5325 = vmax.xlane.f32.xlu0 %v5324_v43  ;;  %v4712_v15 = vpop.f32.mrb[158].mxu1 }
 0x949   : > { %9471 = vmatmul.mubr.msk.bf16.gmra.mrb[140].mxu0 %vm760_vm2, %v13130_v12  ;;  %v9497_v22 = vpop.f32.mrb[159].mxu1 }
 0x94a   : > { %9524 = vmatprep.mubr.msk.bf16.mxu0 %vm10551_vm1, %v13120_v63 }
 0x94e   : > { %v12189_v11 = vpop.f32.mrb[160].mxu1 }
 0x94f   : > { %v9502_v27 = vpop.f32.mrb[161].mxu1  ;;  %v5327_v20 = vsel %vm760_vm2, %v12189_v11, -inf }
 0x950   : > { %5328 = vmax.xlane.f32.xlu0 %v5327_v20  ;;  %v4762_v19 = vpop.f32.mrb[162].mxu1 }
 0x951   : > { %v9503_v18 = vpop.f32.mrb[163].mxu1  ;;  %9525 = vmatmul.mubr.msk.bf16.vlgmr.msra.gmra.mrb[144].mxu0 %vm760_vm2, %v4916_v50  ;;  %v5513_v50 = vsel %vm1724_vm3, %v5508_v47, 0 }
 0x952   : > { %9535 = vmatpush3.bf16.xpose.msra.mxu0 %v5023_v2  ;;  %9536 = vmatprep.mubr.msk.bf16.mxu0 %vm10551_vm1, %v13120_v63 }
 0x953   : > { %9546 = vmatprep.subr.bf16.mxu0 %v13120_v63 }
 0x956   : > { %v12198_v45 = vpop.f32.mrb[164].mxu1 }
 0x957   : > { %v9508_v26 = vpop.f32.mrb[165].mxu1  ;;  %v5330_v41 = vsel %vm760_vm2, %v12198_v45, -inf }
 0x958   : > { %5331 = vmax.xlane.f32.xlu1 %v5330_v41  ;;  %v4812_v14 = vpop.f32.mrb[166].mxu1 }
 0x959   : > { %v9509_v56 = vpop.f32.mrb[167].mxu1  ;;  %9537 = vmatmul.mubr.msk.bf16.vlgmr.msra.gmra.mrb[148].mxu0 %vm760_vm2, %v5016_v34 }
 0x95a   : > { %9547 = vmatpush3.bf16.xpose.msra.mxu0 %v5123_v24  ;;  %9548 = vmatprep.mubr.msk.bf16.mxu0 %vm10551_vm1, %v13120_v63  ;;  %v12244_v24 = vpop.permute.xlu1 %5651 }
 0x95b   : > { %9558 = vmatprep.subr.bf16.mxu0 %v13120_v63 }
 0x95e   : > { %v12207_v21 = vpop.f32.mrb[168].mxu1 }
 0x95f   : > { %v9514_v44 = vpop.f32.mrb[169].mxu1  ;;  %v5333_v37 = vsel %vm760_vm2, %v12207_v21, -inf }
 0x960   : > { %5334 = vmax.xlane.f32.xlu0 %v5333_v37  ;;  %v4862_v13 = vpop.f32.mrb[170].mxu1 }
 0x961   : > { %v9515_v39 = vpop.f32.mrb[171].mxu1  ;;  %9549 = vmatmul.mubr.msk.bf16.vlgmr.msra.gmra.mrb[152].mxu0 %vm760_vm2, %v5116_v10  ;;  %v12241_v10 = vpop.permute.xlu0 %5603 }
 0x962   : > { %9559 = vmatpush3.bf16.xpose.msra.mxu0 %v5223_v30  ;;  %9560 = vmatprep.mubr.msk.bf16.mxu0 %vm10551_vm1, %v13120_v63 }
 0x963   : > { %9570 = vmatprep.subr.bf16.mxu0 %v13120_v63 }
 0x966   : > { %v12216_v6 = vpop.f32.mrb[172].mxu1 }
 0x967   : > { %v9520_v32 = vpop.f32.mrb[173].mxu1  ;;  %v5336_v55 = vsel %vm760_vm2, %v12216_v6, -inf }
 0x968   : > { %5337 = vmax.xlane.f32.xlu1 %v5336_v55  ;;  %v4912_v0 = vpop.f32.mrb[174].mxu1 }
 0x969   : > { %v9521_v48 = vpop.f32.mrb[175].mxu1  ;;  %9561 = vmatmul.mubr.msk.bf16.vlgmr.msra.gmra.mrb[156].mxu0 %vm760_vm2, %v5216_v16 }
 0x96a   : > { %9571 = vmatpush3.bf16.msra.mxu0 %v5513_v50  ;;  %9572 = vmatprep.mubr.msk.bf16.mxu0 %vm10551_vm1, %v13120_v63 }
 0x96b   : > { %9582 = vmatprep.subr.bf16.mxu0 %v13120_v63 }
 0x96e   : > { %v12225_v25 = vpop.f32.mrb[176].mxu1 }
 0x96f   : > { %v9532_v40 = vpop.f32.mrb[177].mxu1  ;;  %v5342_v1 = vsel %vm760_vm2, %v12225_v25, -inf }
 0x970   : > { %5343 = vmax.xlane.f32.xlu1 %v5342_v1  ;;  %v5012_v58 = vpop.f32.mrb[178].mxu1 }
 0x971   : > { %v9533_v42 = vpop.f32.mrb[179].mxu1 }
 0x976   : > { %v12229_v7 = vpop.f32.mrb[180].mxu1 }
 0x977   : > { %v9544_v59 = vpop.f32.mrb[181].mxu1  ;;  %v5348_v43 = vsel %vm760_vm2, %v12229_v7, -inf }
 0x978   : > { %5349 = vmax.xlane.f32.xlu1 %v5348_v43  ;;  %v5112_v34 = vpop.f32.mrb[182].mxu1 }
 0x979   : > { %v9545_v15 = vpop.f32.mrb[183].mxu1 }
 0x97e   : > { %v12233_v61 = vpop.f32.mrb[184].mxu1 }
 0x97f   : > { %v9556_v52 = vpop.f32.mrb[185].mxu1  ;;  %v5354_v12 = vsel %vm760_vm2, %v12233_v61, -inf }
 0x980   : > { %5355 = vmax.xlane.f32.xlu1 %v5354_v12  ;;  %v5212_v22 = vpop.f32.mrb[186].mxu1 }
 0x981   : > { %v9557_v49 = vpop.f32.mrb[187].mxu1 }
 0x986   : > { %v12237_v27 = vpop.f32.mrb[188].mxu1 }
 0x987   : > { %v9568_v20 = vpop.f32.mrb[189].mxu1  ;;  %v5360_v19 = vsel %vm760_vm2, %v12237_v27, -inf }
 0x988   : > { %5361 = vmax.xlane.f32.xlu1 %v5360_v19  ;;  %v5312_v2 = vpop.f32.mrb[190].mxu1 }
 0x989   : > { %v9569_v18 = vpop.f32.mrb[191].mxu1 }
 0x9bd   : > { %v5317_v26 = vpop.xlane.xlu0 %5316 }
 0x9be   : > { %v5363_v41 = vsub.f32 %v12141_v3, %v5317_v26 }
 0x9c0   : > { %v5379_v14 = vmul.f32 1.442695, %v5363_v41 }
 0x9c2   : > { %10208 = vpow2.f32 %v5379_v14 }
 0x9c5   : > { %v5320_v56 = vpop.xlane.xlu1 %5319 }
 0x9c6   : > { %v5364_v28 = vsub.f32 %v12155_v46, %v5320_v56 }
 0x9c8   : > { %v5381_v44 = vmul.f32 1.442695, %v5364_v28 }
 0x9ca   : > { %10210 = vpow2.f32 %v5381_v44 }
 0x9cc   : > { %v12247_v37 = vpop.eup %10208 }
 0x9cd   : > { %v5323_v16 = vpop.xlane.xlu0 %5322  ;;  %v5411_v13 = vsel %vm760_vm2, %v12247_v37, 0.0 }
 0x9ce   : > { %v5365_v30 = vsub.f32 %v12167_v51, %v5323_v16  ;;  %5412 = vadd.xlane.f32.xlu0 %v5411_v13 }
 0x9d0   : > { %v5383_v39 = vmul.f32 1.442695, %v5365_v30 }
 0x9d2   : > { %10212 = vpow2.f32 %v5383_v39 }
 0x9d4   : > { %v12252_v3 = vpop.eup %10210 }
 0x9d5   : > { %v5326_v47 = vpop.xlane.xlu0 %5325  ;;  %v5414_v32 = vsel %vm760_vm2, %v12252_v3, 0.0 }
 0x9d6   : > { %v5366_v46 = vsub.f32 %v12179_v38, %v5326_v47  ;;  %5415 = vadd.xlane.f32.xlu1 %v5414_v32 }
 0x9d8   : > { %v5385_v55 = vmul.f32 1.442695, %v5366_v46 }
 0x9da   : > { %10214 = vpow2.f32 %v5385_v55 }
 0x9dc   : > { %v12257_v0 = vpop.eup %10212 }
 0x9dd   : > { %v5329_v50 = vpop.xlane.xlu0 %5328  ;;  %v5417_v51 = vsel %vm760_vm2, %v12257_v0, 0.0 }
 0x9de   : > { %v5367_v48 = vsub.f32 %v12189_v11, %v5329_v50  ;;  %5418 = vadd.xlane.f32.xlu0 %v5417_v51 }
 0x9e0   : > { %v5387_v40 = vmul.f32 1.442695, %v5367_v48 }
 0x9e2   : > { %10216 = vpow2.f32 %v5387_v40 }
 0x9e4   : > { %v12262_v1 = vpop.eup %10214 }
 0x9e5   : > { %v5332_v58 = vpop.xlane.xlu1 %5331  ;;  %v5420_v38 = vsel %vm760_vm2, %v12262_v1, 0.0 }
 0x9e6   : > { %v5368_v42 = vsub.f32 %v12198_v45, %v5332_v58  ;;  %5421 = vadd.xlane.f32.xlu1 %v5420_v38 }
 0x9e8   : > { %v5389_v59 = vmul.f32 1.442695, %v5368_v42 }
 0x9ea   : > { %10218 = vpow2.f32 %v5389_v59 }
 0x9ec   : > { %v12267_v43 = vpop.eup %10216 }
 0x9ed   : > { %v5335_v34 = vpop.xlane.xlu0 %5334  ;;  %v5423_v11 = vsel %vm760_vm2, %v12267_v43, 0.0 }
 0x9ee   : > { %v5369_v15 = vsub.f32 %v12207_v21, %v5335_v34  ;;  %5424 = vadd.xlane.f32.xlu0 %v5423_v11 }
 0x9f0   : > { %v5391_v52 = vmul.f32 1.442695, %v5369_v15 }
 0x9f2   : > { %10220 = vpow2.f32 %v5391_v52 }
 0x9f4   : > { %v12272_v12 = vpop.eup %10218 }
 0x9f5   : > { %v5338_v22 = vpop.xlane.xlu1 %5337  ;;  %v5426_v45 = vsel %vm760_vm2, %v12272_v12, 0.0 }
 0x9f6   : > { %v5370_v49 = vsub.f32 %v12216_v6, %v5338_v22  ;;  %5427 = vadd.xlane.f32.xlu1 %v5426_v45 }
 0x9f8   : > { %v5393_v20 = vmul.f32 1.442695, %v5370_v49 }
 0x9fa   : > { %10222 = vpow2.f32 %v5393_v20 }
 0x9fc   : > { %v12277_v19 = vpop.eup %10220 }
 0x9fd   : > { %v5344_v2 = vpop.xlane.xlu1 %5343  ;;  %v5429_v21 = vsel %vm760_vm2, %v12277_v19, 0.0 }
 0x9fe   : > { %v5372_v18 = vsub.f32 %v12225_v25, %v5344_v2  ;;  %5430 = vadd.xlane.f32.xlu0 %v5429_v21 }
 0xa00   : > { %v5397_v26 = vmul.f32 1.442695, %v5372_v18 }
 0xa02   : > { %10224 = vpow2.f32 %v5397_v26 }
 0xa04   : > { %v12282_v41 = vpop.eup %10222 }
 0xa05   : > { %v5350_v14 = vpop.xlane.xlu1 %5349  ;;  %v5432_v6 = vsel %vm760_vm2, %v12282_v41, 0.0 }
 0xa06   : > { %v5374_v56 = vsub.f32 %v12229_v7, %v5350_v14  ;;  %5433 = vadd.xlane.f32.xlu1 %v5432_v6 }
 0xa08   : > { %v5401_v28 = vmul.f32 1.442695, %v5374_v56  ;;  %v5609_v56 = vsel %vm1724_vm3, %v12241_v10, 0  ;;  %v5657_v10 = vsel %vm1724_vm3, %v12244_v24, 0 }
 0xa0a   : > { %10226 = vpow2.f32 %v5401_v28 }
 0xa0c   : > { %v12287_v44 = vpop.eup %10224 }
 0xa0d   : > { %v5438_v16 = vsel %vm760_vm2, %v12287_v44, 0.0  ;;  %v5356_v45 = vpop.xlane.xlu1 %5355 }
 0xa0e   : > { %5439 = vadd.xlane.f32.xlu0 %v5438_v16  ;;  %v5376_v20 = vsub.f32 %v12233_v61, %v5356_v45 }
 0xa10   : > { %v5405_v21 = vmul.f32 1.442695, %v5376_v20 }
 0xa14   : > { %v12291_v25 = vpop.eup %10226 }
 0xa15   : > { %v5444_v13 = vsel %vm760_vm2, %v12291_v25, 0.0  ;;  %v5362_v2 = vpop.xlane.xlu1 %5361 }
 0xa16   : > { %5445 = vadd.xlane.f32.xlu0 %v5444_v13 }
 0xa17   : > { %5747 = vrot.lane.b32.xlu1 %v11048_v9, %s10559_s30 }
 0xa1b   : > { %5843 = vrot.lane.b32.xlu1 %v11058_v62, %s10559_s30 }
 0xa1f   : > { %5939 = vrot.lane.b32.xlu1 %v11068_v23, %s10559_s30 }
 0xa23   : > { %5987 = vrot.lane.b32.xlu1 %v11063_v17, %s10559_s30 }
 0xa24   : > { %v12303_v7 = vpop.f32.mrb[144].mxu0 }
 0xa25   : > { %v9526_v30 = vpop.f32.mrb[145].mxu0  ;;  %v5339_v39 = vsel %vm760_vm2, %v12303_v7, -inf }
 0xa26   : > { %v4962_v47 = vpop.f32.mrb[146].mxu0  ;;  %5340 = vmax.xlane.f32.xlu0 %v5339_v39 }
 0xa27   : > { %v9527_v32 = vpop.f32.mrb[147].mxu0  ;;  %6035 = vrot.lane.b32.xlu1 %v11078_v29, %s10559_s30 }
 0xa2c   : > { %v12309_v46 = vpop.f32.mrb[148].mxu0 }
 0xa2d   : > { %v9538_v55 = vpop.f32.mrb[149].mxu0  ;;  %v5345_v50 = vsel %vm760_vm2, %v12309_v46, -inf }
 0xa2e   : > { %v5062_v51 = vpop.f32.mrb[150].mxu0  ;;  %5346 = vmax.xlane.f32.xlu0 %v5345_v50 }
 0xa2f   : > { %v9539_v48 = vpop.f32.mrb[151].mxu0 }
 0xa34   : > { %v12313_v40 = vpop.f32.mrb[152].mxu0 }
 0xa35   : > { %v9550_v58 = vpop.f32.mrb[153].mxu0  ;;  %v5351_v38 = vsel %vm760_vm2, %v12313_v40, -inf }
 0xa36   : > { %v5162_v42 = vpop.f32.mrb[154].mxu0  ;;  %5352 = vmax.xlane.f32.xlu0 %v5351_v38 }
 0xa37   : > { %v9551_v59 = vpop.f32.mrb[155].mxu0 }
 0xa3c   : > { %v12317_v34 = vpop.f32.mrb[156].mxu0 }
 0xa3d   : > { %v9562_v11 = vpop.f32.mrb[157].mxu0  ;;  %v5357_v15 = vsel %vm760_vm2, %v12317_v34, -inf }
 0xa3e   : > { %v5262_v52 = vpop.f32.mrb[158].mxu0  ;;  %5358 = vmax.xlane.f32.xlu0 %v5357_v15 }
 0xa3f   : > { %v9563_v22 = vpop.f32.mrb[159].mxu0 }
 0xa54   : > { %5699 = vrot.lane.b32.xlu0 %v11034_v4, %s10559_s30 }
 0xa5b   : > { %v5413_v49 = vpop.xlane.xlu0 %5412 }
 0xa5c   : > { %10228 = vrcp.f32 %v5413_v49 }
 0xa63   : > { %v5416_v18 = vpop.xlane.xlu1 %5415 }
 0xa64   : > { %10230 = vrcp.f32 %v5416_v18 }
 0xa65   : > { %10232 = vpow2.f32 %v5405_v21 }
 0xa66   : > { %v10229_v26 = vpop.eup %10228 }
 0xa67   : > { %v5475_v14 = vmul.f32 %v10229_v26, %v12247_v37 }
 0xa69   : > { %v5491_v6 = vpack.c.bf16 %v5475_v14, %v5475_v14 }
 0xa6b   : > { %9573 = vmatmul.mubr.msk.bf16.vlgmr.msra.gmra.mrb[160].mxu0 %vm760_vm2, %v5491_v6  ;;  %v5419_v28 = vpop.xlane.xlu0 %5418 }
 0xa6c   : > { %9583 = vmatpush3.bf16.msra.mxu0 %v5609_v56  ;;  %10234 = vrcp.f32 %v5419_v28  ;;  %9584 = vmatprep.mubr.msk.bf16.mxu0 %vm10551_vm1, %v13120_v63 }
 0xa6d   : > { %9594 = vmatprep.subr.bf16.mxu0 %v13120_v63 }
 0xa6e   : > { %v10231_v61 = vpop.eup %10230 }
 0xa6f   : > { %v12331_v16 = vpop.eup %10232  ;;  %v5476_v13 = vmul.f32 %v10231_v61, %v12252_v3 }
 0xa70   : > { %v5450_v30 = vsel %vm760_vm2, %v12331_v16, 0.0 }
 0xa71   : > { %v5492_v37 = vpack.c.bf16 %v5476_v13, %v5476_v13 }
 0xa73   : > { %9579 = vmatmul.mubr.msk.bf16.vlgmr.msra.gmra.mrb[192].mxu1 %vm760_vm2, %v5492_v37  ;;  %v5422_v39 = vpop.xlane.xlu1 %5421  ;;  %5451 = vadd.xlane.f32.xlu0 %v5450_v30 }
 0xa74   : > { %9589 = vmatpush3.bf16.msra.mxu1 %v5657_v10  ;;  %10236 = vrcp.f32 %v5422_v39  ;;  %9590 = vmatprep.mubr.msk.bf16.mxu1 %vm10551_vm1, %v13120_v63 }
 0xa75   : > { %9600 = vmatprep.subr.bf16.mxu1 %v13120_v63 }
 0xa76   : > { %v10235_v47 = vpop.eup %10234 }
 0xa77   : > { %v5477_v3 = vmul.f32 %v10235_v47, %v12257_v0  ;;  %v5378_v0 = vsub.f32 %v12237_v27, %v5362_v2 }
 0xa79   : > { %v5493_v32 = vpack.c.bf16 %v5477_v3, %v5477_v3  ;;  %v5409_v42 = vmul.f32 1.442695, %v5378_v0 }
 0xa7b   : > { %9585 = vmatmul.mubr.msk.bf16.vlgmr.msra.gmra.mrb[164].mxu0 %vm760_vm2, %v5493_v32  ;;  %v5425_v58 = vpop.xlane.xlu0 %5424 }
 0xa7c   : > { %9596 = vmatprep.mubr.msk.bf16.mxu0 %vm10551_vm1, %v13120_v63 }
 0xa7e   : > { %v10237_v24 = vpop.eup %10236 }
 0xa7f   : > { %v5478_v55 = vmul.f32 %v10237_v24, %v12262_v1 }
 0xa81   : > { %v5494_v50 = vpack.c.bf16 %v5478_v55, %v5478_v55 }
 0xa83   : > { %9591 = vmatmul.mubr.msk.bf16.vlgmr.msra.gmra.mrb[196].mxu1 %vm760_vm2, %v5494_v50  ;;  %v5428_v51 = vpop.xlane.xlu1 %5427 }
 0xa84   : > { %9602 = vmatprep.mubr.msk.bf16.mxu1 %vm10551_vm1, %v13120_v63  ;;  %10238 = vrcp.f32 %v5428_v51 }
 0xa89   : > { %5795 = vrot.lane.b32.xlu0 %v11043_v5, %s10559_s30 }
 0xa8b   : > { %v12354_v59 = vpop.xlane.xlu0 %5430 }
 0xa8e   : > { %v10239_v48 = vpop.eup %10238 }
 0xa8f   : > { %v5480_v1 = vmul.f32 %v10239_v48, %v12272_v12 }
 0xa91   : > { %v5496_v52 = vpack.c.bf16 %v5480_v1, %v5480_v1 }
 0xa93   : > { %v5434_v38 = vpop.xlane.xlu1 %5433 }
 0xa94   : > { %10240 = vrcp.f32 %v5434_v38 }
 0xa95   : > { %10242 = vpow2.f32 %v5409_v42 }
 0xa97   : > { %v5748_v11 = vpop.permute.xlu1 %5747 }
 0xa98   : > { %v5753_v15 = vsel %vm1724_vm3, %v5748_v11, 0 }
 0xa99   : > { %9601 = vmatpush3.bf16.msra.mxu1 %v5753_v15 }
 0xa9a   : > { %9612 = vmatprep.subr.bf16.mxu1 %v13120_v63 }
 0xa9b   : > { %v5844_v22 = vpop.permute.xlu1 %5843  ;;  %v5440_v45 = vpop.xlane.xlu0 %5439 }
 0xa9c   : > { %v5849_v27 = vsel %vm1724_vm3, %v5844_v22, 0  ;;  %10244 = vrcp.f32 %v5440_v45  ;;  %9603 = vmatmul.mubr.msk.bf16.vlgmr.msra.gmra.mrb[200].mxu1 %vm760_vm2, %v5496_v52 }
 0xa9d   : > { %9613 = vmatpush3.bf16.msra.mxu1 %v5849_v27  ;;  %9614 = vmatprep.mubr.msk.bf16.mxu1 %vm10551_vm1, %v13120_v63 }
 0xa9e   : > { %v10241_v12 = vpop.eup %10240  ;;  %9624 = vmatprep.subr.bf16.mxu1 %v13120_v63 }
 0xa9f   : > { %v5940_v49 = vpop.permute.xlu1 %5939  ;;  %v5482_v20 = vmul.f32 %v10241_v12, %v12282_v41  ;;  %v12366_v26 = vpop.eup %10242 }
 0xaa0   : > { %v5945_v14 = vsel %vm1724_vm3, %v5940_v49, 0  ;;  %v5456_v41 = vsel %vm760_vm2, %v12366_v26, 0.0 }
 0xaa1   : > { %v5498_v2 = vpack.c.bf16 %v5482_v20, %v5482_v20 }
 0xaa3   : > { %v12364_v21 = vpop.permute.xlu1 %5987  ;;  %v5446_v18 = vpop.xlane.xlu0 %5445 }
 0xaa4   : > { %10246 = vrcp.f32 %v5446_v18  ;;  %9615 = vmatmul.mubr.msk.bf16.vlgmr.msra.gmra.mrb[204].mxu1 %vm760_vm2, %v5498_v2 }
 0xaa5   : > { %9625 = vmatpush3.bf16.msra.mxu1 %v5945_v14  ;;  %9626 = vmatprep.mubr.msk.bf16.mxu1 %vm10551_vm1, %v13120_v63 }
 0xaa6   : > { %v10245_v6 = vpop.eup %10244  ;;  %9636 = vmatprep.subr.bf16.mxu1 %v13120_v63 }
 0xaa7   : > { %v5484_v56 = vmul.f32 %v10245_v6, %v12287_v44  ;;  %v6036_v28 = vpop.permute.xlu1 %6035 }
 0xaa8   : > { %5457 = vadd.xlane.f32.xlu0 %v5456_v41  ;;  %v6041_v13 = vsel %vm1724_vm3, %v6036_v28, 0 }
 0xaa9   : > { %v5500_v61 = vpack.c.bf16 %v5484_v56, %v5484_v56 }
 0xaac   : > { %9627 = vmatmul.mubr.msk.bf16.vlgmr.msra.gmra.mrb[208].mxu1 %vm760_vm2, %v5500_v61 }
 0xaad   : > { %9637 = vmatpush3.bf16.msra.mxu1 %v6041_v13  ;;  %9638 = vmatprep.mubr.msk.bf16.mxu1 %vm10551_vm1, %v13120_v63 }
 0xaae   : > { %v10247_v37 = vpop.eup %10246  ;;  %9648 = vmatprep.subr.bf16.mxu1 %v13120_v63 }
 0xaaf   : > { %v5486_v30 = vmul.f32 %v10247_v37, %v12291_v25 }
 0xab1   : > { %v5502_v10 = vpack.c.bf16 %v5486_v30, %v5486_v30 }
 0xab3   : > { %v5341_v39 = vpop.xlane.xlu0 %5340 }
 0xab4   : > { %v5371_v44 = vsub.f32 %v12303_v7, %v5341_v39  ;;  %9639 = vmatmul.mubr.msk.bf16.vlgmr.msra.gmra.mrb[212].mxu1 %vm760_vm2, %v5502_v10 }
 0xab5   : > { %9650 = vmatprep.mubr.msk.bf16.mxu1 %vm10551_vm1, %v13120_v63 }
 0xab6   : > { %v5395_v47 = vmul.f32 1.442695, %v5371_v44 }
 0xab8   : > { %10248 = vpow2.f32 %v5395_v47 }
 0xab9   : > { %10250 = vrcp.f32 %v5425_v58 }
 0xabb   : > { %v5347_v25 = vpop.xlane.xlu0 %5346 }
 0xabe   : > { %5891 = vrot.lane.b32.xlu0 %v11054_v54, %s10559_s30 }
 0xac2   : > { %v12388_v3 = vpop.eup %10248  ;;  %6083 = vrot.lane.b32.xlu0 %v11074_v8, %s10559_s30 }
 0xac3   : > { %v5435_v7 = vsel %vm760_vm2, %v12388_v3, 0.0  ;;  %v5353_v32 = vpop.xlane.xlu0 %5352  ;;  %v10251_v24 = vpop.eup %10250 }
 0xac4   : > { %5436 = vadd.xlane.f32.xlu1 %v5435_v7  ;;  %v5479_v50 = vmul.f32 %v10251_v24, %v12267_v43  ;;  %v5373_v43 = vsub.f32 %v12309_v46, %v5347_v25  ;;  %v5375_v38 = vsub.f32 %v12313_v40, %v5353_v32 }
 0xac6   : > { %6179 = vrot.lane.b32.xlu0 %v11083_v31, %s10559_s30  ;;  %v5495_v48 = vpack.c.bf16 %v5479_v50, %v5479_v50  ;;  %v5399_v58 = vmul.f32 1.442695, %v5373_v43  ;;  %v5403_v42 = vmul.f32 1.442695, %v5375_v38 }
 0xac8   : > { %10252 = vpow2.f32 %v5399_v58  ;;  %v5993_v58 = vsel %vm1724_vm3, %v12364_v21, 0 }
 0xac9   : > { %10254 = vpow2.f32 %v5403_v42 }
 0xaca   : > { %6427 = vrot.lane.b32.xlu0 %v11019_v33, %s10560_s10 }
 0xacb   : > { %v5359_v55 = vpop.xlane.xlu0 %5358 }
 0xacc   : > { %v5377_v1 = vsub.f32 %v12317_v34, %v5359_v55 }
 0xace   : > { %6477 = vrot.lane.b32.xlu0 %v11023_v57, %s10560_s10  ;;  %v5407_v11 = vmul.f32 1.442695, %v5377_v1 }
 0xacf   : > { %v5700_v51 = vpop.permute.xlu0 %5699 }
 0xad0   : > { %v5705_v0 = vsel %vm1724_vm3, %v5700_v51, 0  ;;  %10256 = vpow2.f32 %v5407_v11 }
 0xad1   : > { %9595 = vmatpush3.bf16.msra.mxu0 %v5705_v0  ;;  %10258 = vrcp.f32 %v12354_v59 }
 0xad2   : > { %6527 = vrot.lane.b32.xlu0 %v11029_v60, %s10560_s10  ;;  %9606 = vmatprep.subr.bf16.mxu0 %v13120_v63  ;;  %v12429_v46 = vpop.eup %10252 }
 0xad3   : > { %v5441_v40 = vsel %vm760_vm2, %v12429_v46, 0.0  ;;  %v12436_v34 = vpop.eup %10254 }
 0xad4   : > { %9597 = vmatmul.mubr.msk.bf16.vlgmr.msra.gmra.mrb[168].mxu0 %vm760_vm2, %v5495_v48  ;;  %v5447_v15 = vsel %vm760_vm2, %v12436_v34, 0.0 }
 0xad5   : > { %6131 = vrot.lane.b32.xlu1 %v11088_v35, %s10559_s30  ;;  %9608 = vmatprep.mubr.msk.bf16.mxu0 %vm10551_vm1, %v13120_v63 }
 0xad6   : > { %6577 = vrot.lane.b32.xlu0 %v11038_v53, %s10560_s10 }
 0xada   : > { %6627 = vrot.lane.b32.xlu0 %v11034_v4, %s10560_s10  ;;  %v12442_v52 = vpop.eup %10256 }
 0xadb   : > { %v10259_v59 = vpop.eup %10258  ;;  %v5453_v45 = vsel %vm760_vm2, %v12442_v52, 0.0 }
 0xadc   : > { %v5481_v27 = vmul.f32 %v10259_v59, %v12277_v19 }
 0xade   : > { %6625 = vrot.lane.b32.xlu0 %v11034_v4, %s10561_s20  ;;  %v5497_v20 = vpack.c.bf16 %v5481_v27, %v5481_v27 }
 0xae2   : > { %6727 = vrot.lane.b32.xlu0 %v11043_v5, %s10560_s10 }
 0xae6   : > { %6725 = vrot.lane.b32.xlu0 %v11043_v5, %s10561_s20 }
 0xaea   : > { %6827 = vrot.lane.b32.xlu0 %v11054_v54, %s10560_s10 }
 0xaee   : > { %6825 = vrot.lane.b32.xlu0 %v11054_v54, %s10561_s20 }
 0xaf2   : > { %6927 = vrot.lane.b32.xlu0 %v11063_v17, %s10560_s10 }
 0xaf6   : > { %6925 = vrot.lane.b32.xlu0 %v11063_v17, %s10561_s20 }
 0xaf9   : > { %5442 = vadd.xlane.f32.xlu1 %v5441_v40 }
 0xafa   : > { %7027 = vrot.lane.b32.xlu0 %v11074_v8, %s10560_s10 }
 0xafd   : > { %5448 = vadd.xlane.f32.xlu1 %v5447_v15 }
 0xafe   : > { %7025 = vrot.lane.b32.xlu0 %v11074_v8, %s10561_s20 }
 0xb00   : > { %v5452_v22 = vpop.xlane.xlu0 %5451 }
 0xb01   : > { %5454 = vadd.xlane.f32.xlu1 %v5453_v45  ;;  %10260 = vrcp.f32 %v5452_v22 }
 0xb02   : > { %7127 = vrot.lane.b32.xlu0 %v11083_v31, %s10560_s10 }
 0xb04   : > { %v5796_v12 = vpop.permute.xlu0 %5795 }
 0xb05   : > { %v5801_v49 = vsel %vm1724_vm3, %v5796_v12, 0 }
 0xb06   : > { %7125 = vrot.lane.b32.xlu0 %v11083_v31, %s10561_s20  ;;  %9607 = vmatpush3.bf16.msra.mxu0 %v5801_v49 }
 0xb07   : > { %9618 = vmatprep.subr.bf16.mxu0 %v13120_v63 }
 0xb09   : > { %9609 = vmatmul.mubr.msk.bf16.vlgmr.msra.gmra.mrb[172].mxu0 %vm760_vm2, %v5497_v20 }
 0xb0a   : > { %7417 = vrot.lane.b32.xlu0 %v11019_v33, %s10562_s27  ;;  %9620 = vmatprep.mubr.msk.bf16.mxu0 %vm10551_vm1, %v13120_v63 }
 0xb0b   : > { %v10261_v39 = vpop.eup %10260 }
 0xb0c   : > { %v5488_v25 = vmul.f32 %v10261_v39, %v12331_v16 }
 0xb0e   : > { %7513 = vrot.lane.b32.xlu0 %v11029_v60, %s10562_s27  ;;  %v5504_v0 = vpack.c.bf16 %v5488_v25, %v5488_v25 }
 0xb12   : > { %6227 = vrot.lane.b32.xlu1 %v11094_v36, %s10559_s30  ;;  %s10563_s30 = smov [#allocation10]  }
 0xb16   : > { %6425 = vrot.lane.b32.xlu1 %v11019_v33, %s10561_s20 }
 0xb1a   : > { %6475 = vrot.lane.b32.xlu1 %v11023_v57, %s10561_s20 }
 0xb1e   : > { %6525 = vrot.lane.b32.xlu1 %v11029_v60, %s10561_s20 }
 0xb22   : > { %6575 = vrot.lane.b32.xlu1 %v11038_v53, %s10561_s20 }
 0xb26   : > { %6677 = vrot.lane.b32.xlu1 %v11048_v9, %s10560_s10 }
 0xb2a   : > { %6675 = vrot.lane.b32.xlu1 %v11048_v9, %s10561_s20 }
 0xb2e   : > { %6777 = vrot.lane.b32.xlu1 %v11058_v62, %s10560_s10 }
 0xb32   : > { %6775 = vrot.lane.b32.xlu1 %v11058_v62, %s10561_s20 }
 0xb35   : > { %v12480_v33 = vpop.xlane.xlu0 %5457 }
 0xb36   : > { %6877 = vrot.lane.b32.xlu1 %v11068_v23, %s10560_s10 }
 0xb39   : > { %v5892_v60 = vpop.permute.xlu0 %5891 }
 0xb3a   : > { %v5897_v19 = vsel %vm1724_vm3, %v5892_v60, 0  ;;  %6875 = vrot.lane.b32.xlu1 %v11068_v23, %s10561_s20 }
 0xb3b   : > { %9619 = vmatpush3.bf16.msra.mxu0 %v5897_v19 }
 0xb3c   : > { %9630 = vmatprep.subr.bf16.mxu0 %v13120_v63 }
 0xb3d   : > { %v6084_v49 = vpop.permute.xlu0 %6083 }
 0xb3e   : > { %v12488_v2 = vpop.f32.mrb[160].mxu0  ;;  %6977 = vrot.lane.b32.xlu1 %v11078_v29, %s10560_s10  ;;  %v6089_v25 = vsel %vm1724_vm3, %v6084_v49, 0 }
 0xb3f   : > { %v9574_v18 = vpop.f32.mrb[161].mxu0 }
 0xb40   : > { %v5552_v14 = vpop.f32.mrb[162].mxu0 }
 0xb41   : > { %v9575_v6 = vpop.f32.mrb[163].mxu0  ;;  %v6180_v14 = vpop.permute.xlu0 %6179 }
 0xb42   : > { %6975 = vrot.lane.b32.xlu1 %v11078_v29, %s10561_s20 }
 0xb46   : > { %v12494_v41 = vpop.f32.mrb[192].mxu1  ;;  %7077 = vrot.lane.b32.xlu1 %v11088_v35, %s10560_s10 }
 0xb47   : > { %v6275_v56 = vpack.c.bf16 %v12494_v41, %v12488_v2  ;;  %v9580_v28 = vpop.f32.mrb[193].mxu1 }
 0xb48   : > { %v5600_v61 = vpop.f32.mrb[194].mxu1 }
 0xb49   : > { %v9581_v13 = vpop.f32.mrb[195].mxu1 }
 0xb4a   : > { %7075 = vrot.lane.b32.xlu1 %v11088_v35, %s10561_s20 }
 0xb4e   : > { %v12502_v37 = vpop.f32.mrb[164].mxu0  ;;  %7177 = vrot.lane.b32.xlu1 %v11094_v36, %s10560_s10  ;;  %s10470_s10 = sshll.u32 %s10563_s30, 4  ;;  %s10471_s10 = int_to_ptr.vmem [resolvable:$false] %s10470_s10 }
 0xb4f   : > { %v9586_v30 = vpop.f32.mrb[165].mxu0  ;;  %p10473_p3 = scmp.lt.s32.totalorder %s13039_s7, %s10471_s10 }
 0xb50   : > { %v5648_v10 = vpop.f32.mrb[166].mxu0 }
 0xb51   : > { %v9587_v44 = vpop.f32.mrb[167].mxu0  ;;  %v5437_v47 = vpop.xlane.xlu1 %5436 }
 0xb52   : > { %10262 = vrcp.f32 %v5437_v47  ;;  %7175 = vrot.lane.b32.xlu1 %v11094_v36, %s10561_s20  ;;  %v6428_v10 = vpop.permute.xlu0 %6427  ;;  %s10472_s20 = scalar_lea.vmem %s10471_s10, 4096 }
 0xb53   : > { %10264 = vrcp.f32 %v12480_v33  ;;  %p10474_p7 = scmp.lt.s32.totalorder %s10472_s20, %s10466_s8 }
 0xb55   : > { %v6132_v7 = vpop.permute.xlu1 %6131  ;;  %p10475_p10 = por %p10474_p7, %p10473_p3 }
 0xb56   : > { %v6137_v32 = vsel %vm1724_vm3, %v6132_v7, 0  ;;  %v12510_v24 = vpop.f32.mrb[196].mxu1  ;;  %7465 = vrot.lane.b32.xlu1 %v11023_v57, %s10562_s27 }
 0xb57   : > { %v6276_v55 = vpack.c.bf16 %v12510_v24, %v12502_v37  ;;  %v9592_v50 = vpop.f32.mrb[197].mxu1  ;;  %9649 = vmatpush3.bf16.msra.mxu1 %v6137_v32  ;;  %p10476_p13 = pnand %p10475_p10, %p10469_p8 }
 0xb58   : > { %v5696_v51 = vpop.f32.mrb[198].mxu1  ;;  %9660 = vmatprep.subr.bf16.mxu1 %v13120_v63 }
 0xb59   : > { %v9593_v48 = vpop.f32.mrb[199].mxu1 }
 0xb5a   : > { %7561 = vrot.lane.b32.xlu1 %v11038_v53, %s10562_s27  ;;  %9651 = vmatmul.mubr.msk.bf16.vlgmr.msra.gmra.mrb[216].mxu1 %vm760_vm2, %v5504_v0  ;;  %v6433_v48 = vsel %vm760_vm2, %v6428_v10, 0 }
 0xb5b   : > { %9662 = vmatprep.mubr.msk.bf16.mxu1 %vm10551_vm1, %v13120_v63 }
 0xb5c   : > { %v10263_v16 = vpop.eup %10262 }
 0xb5d   : > { %v5483_v57 = vmul.f32 %v10263_v16, %v12388_v3  ;;  %v10265_v6 = vpop.eup %10264  ;;  %v6284_v16 = vld [vmem:[#allocation8 + $0x8] sm:$0xf] }
 0xb5e   : > { %v5490_v13 = vmul.f32 %v10265_v6, %v12366_v26 }
 0xb5f   : > { %v5499_v43 = vpack.c.bf16 %v5483_v57, %v5483_v57  ;;  %v6185_v57 = vsel %vm1724_vm3, %v6180_v14, 0 }
 0xb60   : > { %v5506_v7 = vpack.c.bf16 %v5490_v13, %v5490_v13 }
 0xb61   : > { %9621 = vmatmul.mubr.msk.bf16.vlgmr.msra.gmra.mrb[176].mxu0 %vm760_vm2, %v5499_v43 }
 0xb62   : > { %9631 = vmatpush3.bf16.msra.mxu0 %v5993_v58  ;;  %9632 = vmatprep.mubr.msk.bf16.mxu0 %vm10551_vm1, %v13120_v63 }
 0xb63   : > { %9642 = vmatprep.subr.bf16.mxu0 %v13120_v63 }
 0xb6f   : > { %v12529_v53 = vpop.f32.mrb[200].mxu1 }
 0xb70   : > { %v9604_v38 = vpop.f32.mrb[201].mxu1 }
 0xb71   : > { %v5792_v42 = vpop.f32.mrb[202].mxu1 }
 0xb72   : > { %v9605_v1 = vpop.f32.mrb[203].mxu1 }
 0xb73   : > { %v6310_v1 = vsel %vm1724_vm3, %v6284_v16, 0 }
 0xb77   : > { %v12531_v11 = vpop.f32.mrb[204].mxu1 }
 0xb78   : > { %v9616_v3 = vpop.f32.mrb[205].mxu1 }
 0xb79   : > { %v5888_v40 = vpop.f32.mrb[206].mxu1 }
 0xb7a   : > { %v9617_v15 = vpop.f32.mrb[207].mxu1 }
 0xb7f   : > { %v12533_v59 = vpop.f32.mrb[208].mxu1 }
 0xb80   : > { %v9628_v21 = vpop.f32.mrb[209].mxu1 }
 0xb81   : > { %v5984_v22 = vpop.f32.mrb[210].mxu1 }
 0xb82   : > { %v9629_v45 = vpop.f32.mrb[211].mxu1 }
 0xb86   : > { %v5443_v27 = vpop.xlane.xlu1 %5442 }
 0xb87   : > { %10266 = vrcp.f32 %v5443_v27  ;;  %v12536_v12 = vpop.f32.mrb[212].mxu1 }
 0xb88   : > { %v9640_v20 = vpop.f32.mrb[213].mxu1 }
 0xb89   : > { %v6080_v60 = vpop.f32.mrb[214].mxu1 }
 0xb8a   : > { %v9641_v19 = vpop.f32.mrb[215].mxu1  ;;  %v5449_v18 = vpop.xlane.xlu1 %5448 }
 0xb8b   : > { %10268 = vrcp.f32 %v5449_v18 }
 0xb8e   : > { %v5455_v28 = vpop.xlane.xlu1 %5454 }
 0xb8f   : > { %10270 = vrcp.f32 %v5455_v28 }
 0xb91   : > { %v10267_v61 = vpop.eup %10266 }
 0xb92   : > { %v5485_v30 = vmul.f32 %v10267_v61, %v12429_v46  ;;  %v6228_v33 = vpop.permute.xlu1 %6227  ;;  %v6478_v46 = vpop.permute.xlu0 %6477 }
 0xb93   : > { %v6233_v39 = vsel %vm1724_vm3, %v6228_v33, 0  ;;  %v6483_v3 = vsel %vm760_vm2, %v6478_v46, 0 }
 0xb94   : > { %v5501_v44 = vpack.c.bf16 %v5485_v30, %v5485_v30  ;;  %9661 = vmatpush3.bf16.msra.mxu1 %v6233_v39 }
 0xb95   : > { %v10269_v47 = vpop.eup %10268  ;;  %9684 = vmatprep.subr.bf16.mxu1 %v13120_v63 }
 0xb96   : > { %9633 = vmatmul.mubr.msk.bf16.vlgmr.msra.gmra.mrb[180].mxu0 %vm760_vm2, %v5501_v44  ;;  %v6426_v32 = vpop.permute.xlu1 %6425  ;;  %v5487_v26 = vmul.f32 %v10269_v47, %v12436_v34  ;;  %v6528_v43 = vpop.permute.xlu0 %6527 }
 0xb97   : > { %9643 = vmatpush3.bf16.msra.mxu0 %v6089_v25  ;;  %9644 = vmatprep.mubr.msk.bf16.mxu0 %vm10551_vm1, %v13120_v63  ;;  %v6533_v60 = vsel %vm760_vm2, %v6528_v43, 0 }
 0xb98   : > { %9663 = vmatmul.mubr.msk.bf16.vlgmr.msra.gmra.mrb[220].mxu1 %vm760_vm2, %v5506_v7  ;;  %9654 = vmatprep.subr.bf16.mxu0 %v13120_v63  ;;  %v5503_v51 = vpack.c.bf16 %v5487_v26, %v5487_v26 }
 0xb99   : > { %9686 = vmatprep.mubr.msk.bf16.mxu1 %vm10551_vm1, %v13120_v63  ;;  %v10271_v0 = vpop.eup %10270 }
 0xb9a   : > { %v6476_v50 = vpop.permute.xlu1 %6475  ;;  %v5489_v58 = vmul.f32 %v10271_v0, %v12442_v52  ;;  %v6578_v40 = vpop.permute.xlu0 %6577 }
 0xb9c   : > { %v5505_v42 = vpack.c.bf16 %v5489_v58, %v5489_v58 }
 0xb9d   : > { %9685 = vmatpush3.bf16.xpose.msra.mxu1 %v6433_v48 }
 0xb9e   : > { %9645 = vmatmul.mubr.msk.bf16.vlgmr.msra.gmra.mrb[184].mxu0 %vm760_vm2, %v5503_v51  ;;  %v6526_v34 = vpop.permute.xlu1 %6525  ;;  %9690 = vmatprep.subr.bf16.mxu1 %v13120_v63  ;;  %v6628_v20 = vpop.permute.xlu0 %6627 }
 0xb9f   : > { %9655 = vmatpush3.bf16.msra.mxu0 %v6185_v57  ;;  %9656 = vmatprep.mubr.msk.bf16.mxu0 %vm10551_vm1, %v13120_v63  ;;  %v6633_v2 = vsel %vm760_vm2, %v6628_v20, 0 }
 0xba0   : > { %9948 = vmatprep.subr.msk.bf16.mxu0 %vm1724_vm3, %v6284_v16 }
 0xba2   : > { %v6576_v38 = vpop.permute.xlu1 %6575  ;;  %v6626_v58 = vpop.permute.xlu0 %6625 }
 0xba4   : > { %9687 = vmatmul.mubr.msk.bf16.vlgmr.msra.gmra.mrb[224].mxu1 %vm760_vm2, %v6426_v32 }
 0xba5   : > { %9691 = vmatpush3.bf16.xpose.msra.mxu1 %v6483_v3  ;;  %9692 = vmatprep.mubr.msk.bf16.mxu1 %vm10551_vm1, %v13120_v63 }
 0xba6   : > { %9657 = vmatmul.mubr.msk.bf16.vlgmr.msra.gmra.mrb[188].mxu0 %vm760_vm2, %v5505_v42  ;;  %v6678_v15 = vpop.permute.xlu1 %6677  ;;  %9696 = vmatprep.subr.bf16.mxu1 %v13120_v63  ;;  %v6728_v42 = vpop.permute.xlu0 %6727 }
 0xba7   : > { %9667 = vmatpush3.bf16.msra.mxu0 %v6310_v1  ;;  %v5741_v52 = vpop.f32.mrb[168].mxu0  ;;  %9668 = vmatprep.mubr.msk.bf16.mxu0 %vm760_vm2, %v6275_v56  ;;  %v6683_v24 = vsel %vm760_vm2, %v6678_v15, 0 }
 0xba8   : > { %v6277_v21 = vpack.c.bf16 %v12529_v53, %v5741_v52  ;;  %v9598_v22 = vpop.f32.mrb[169].mxu0  ;;  %9708 = vmatprep.subr.bf16.mxu0 %v13120_v63  ;;  %v6583_v53 = vsel %vm760_vm2, %v6578_v40, 0 }
 0xba9   : > { %v5744_v45 = vpop.f32.mrb[170].mxu0 }
 0xbaa   : > { %v9599_v27 = vpop.f32.mrb[171].mxu0  ;;  %v6676_v49 = vpop.permute.xlu1 %6675 }
 0xbab   : > { %v6726_v27 = vpop.permute.xlu0 %6725 }
 0xbac   : > { %9693 = vmatmul.mubr.msk.bf16.vlgmr.msra.gmra.mrb[228].mxu1 %vm760_vm2, %v6476_v50 }
 0xbad   : > { %9697 = vmatpush3.bf16.xpose.msra.mxu1 %v6533_v60  ;;  %9698 = vmatprep.mubr.msk.bf16.mxu1 %vm10551_vm1, %v13120_v63 }
 0xbae   : > { %9669 = vmatmul.mubr.msk.bf16.vlgmr.msra.gmra.mrb[128].mxu0 %vm760_vm2, %v6276_v55  ;;  %v6778_v41 = vpop.permute.xlu1 %6777  ;;  %9702 = vmatprep.subr.bf16.mxu1 %v13120_v63 }
 0xbaf   : > { %9672 = vmatprep.mubr.msk.bf16.mxu0 %vm760_vm2, %v6277_v21  ;;  %v6783_v19 = vsel %vm760_vm2, %v6778_v41, 0  ;;  %v6828_v41 = vpop.permute.xlu0 %6827 }
 0xbb0   : > { %9709 = vmatpush3.bf16.xpose.msra.mxu0 %v6633_v2 }
 0xbb1   : > { %9720 = vmatprep.subr.bf16.mxu0 %v13120_v63 }
 0xbb2   : > { %v6776_v56 = vpop.permute.xlu1 %6775 }
 0xbb4   : > { %9699 = vmatmul.mubr.msk.bf16.vlgmr.msra.gmra.mrb[232].mxu1 %vm760_vm2, %v6526_v34 }
 0xbb5   : > { %9703 = vmatpush3.bf16.xpose.msra.mxu1 %v6583_v53  ;;  %9704 = vmatprep.mubr.msk.bf16.mxu1 %vm10551_vm1, %v13120_v63 }
 0xbb6   : > { %9714 = vmatprep.subr.bf16.mxu1 %v13120_v63  ;;  %v6878_v37 = vpop.permute.xlu1 %6877 }
 0xbb7   : > { %v6883_v6 = vsel %vm760_vm2, %v6878_v37, 0 }
 0xbba   : > { %v6876_v55 = vpop.permute.xlu1 %6875 }
 0xbbc   : > { %9705 = vmatmul.mubr.msk.bf16.vlgmr.msra.gmra.mrb[236].mxu1 %vm760_vm2, %v6576_v38 }
 0xbbd   : > { %9715 = vmatpush3.bf16.xpose.msra.mxu1 %v6683_v24  ;;  %9716 = vmatprep.mubr.msk.bf16.mxu1 %vm10551_vm1, %v13120_v63 }
 0xbbe   : > { %9726 = vmatprep.subr.bf16.mxu1 %v13120_v63  ;;  %v6978_v18 = vpop.permute.xlu1 %6977 }
 0xbbf   : > { %v6983_v61 = vsel %vm760_vm2, %v6978_v18, 0 }
 0xbc2   : > { %v6976_v14 = vpop.permute.xlu1 %6975 }
 0xbc4   : > { %9717 = vmatmul.mubr.msk.bf16.vlgmr.msra.gmra.mrb[240].mxu1 %vm760_vm2, %v6676_v49 }
 0xbc5   : > { %9727 = vmatpush3.bf16.xpose.msra.mxu1 %v6783_v19  ;;  %9728 = vmatprep.mubr.msk.bf16.mxu1 %vm10551_vm1, %v13120_v63 }
 0xbc6   : > { %9738 = vmatprep.subr.bf16.mxu1 %v13120_v63  ;;  %v7078_v28 = vpop.permute.xlu1 %7077 }
 0xbc7   : > { %v7083_v33 = vsel %vm760_vm2, %v7078_v28, 0  ;;  %v6826_v28 = vpop.permute.xlu0 %6825 }
 0xbca   : > { %v7076_v13 = vpop.permute.xlu1 %7075 }
 0xbcc   : > { %9729 = vmatmul.mubr.msk.bf16.vlgmr.msra.gmra.mrb[244].mxu1 %vm760_vm2, %v6776_v56 }
 0xbcd   : > { %9739 = vmatpush3.bf16.xpose.msra.mxu1 %v6883_v6  ;;  %9740 = vmatprep.mubr.msk.bf16.mxu1 %vm10551_vm1, %v13120_v63 }
 0xbce   : > { %9750 = vmatprep.subr.bf16.mxu1 %v13120_v63  ;;  %v7178_v44 = vpop.permute.xlu1 %7177 }
 0xbcf   : > { %v7183_v32 = vsel %vm760_vm2, %v7178_v44, 0  ;;  %v6928_v44 = vpop.permute.xlu0 %6927 }
 0xbd2   : > { %v7176_v7 = vpop.permute.xlu1 %7175 }
 0xbd4   : > { %9741 = vmatmul.mubr.msk.bf16.vlgmr.msra.gmra.mrb[248].mxu1 %vm760_vm2, %v6876_v55 }
 0xbd5   : > { %9751 = vmatpush3.bf16.xpose.msra.mxu1 %v6983_v61  ;;  %9752 = vmatprep.mubr.msk.bf16.mxu1 %vm10551_vm1, %v13120_v63 }
 0xbd6   : > { %9762 = vmatprep.subr.bf16.mxu1 %v13120_v63 }
 0xbdc   : > { %v5837_v30 = vpop.f32.mrb[172].mxu0  ;;  %9753 = vmatmul.mubr.msk.bf16.vlgmr.msra.gmra.mrb[252].mxu1 %vm760_vm2, %v6976_v14 }
 0xbdd   : > { %v6278_v10 = vpack.c.bf16 %v12531_v11, %v5837_v30  ;;  %v9610_v39 = vpop.f32.mrb[173].mxu0  ;;  %9763 = vmatpush3.bf16.xpose.msra.mxu1 %v7083_v33  ;;  %9764 = vmatprep.mubr.msk.bf16.mxu1 %vm10551_vm1, %v13120_v63  ;;  %v7466_v11 = vpop.permute.xlu1 %7465 }
 0xbde   : > { %v5840_v47 = vpop.f32.mrb[174].mxu0  ;;  %9774 = vmatprep.subr.bf16.mxu1 %v13120_v63  ;;  %v7471_v26 = vsel %vm1724_vm3, %v7466_v11, 0  ;;  %v6733_v39 = vsel %vm760_vm2, %v6728_v42, 0  ;;  %v6926_v11 = vpop.permute.xlu0 %6925 }
 0xbdf   : > { %v9611_v25 = vpop.f32.mrb[175].mxu0  ;;  %9673 = vmatmul.mubr.msk.bf16.gmra.mrb[132].mxu0 %vm760_vm2, %v6278_v10 }
 0xbe4   : > { %9765 = vmatmul.mubr.msk.bf16.vlgmr.msra.gmra.mrb[0].mxu1 %vm760_vm2, %v7076_v13 }
 0xbe5   : > { %9775 = vmatpush3.bf16.xpose.msra.mxu1 %v7183_v32  ;;  %9776 = vmatprep.mubr.msk.bf16.mxu1 %vm10551_vm1, %v13120_v63 }
 0xbe6   : > { %9786 = vmatprep.subr.bf16.mxu1 %v13120_v63 }
 0xbec   : > { %9777 = vmatmul.mubr.msk.bf16.vlgmr.msra.gmra.mrb[4].mxu1 %vm760_vm2, %v7176_v7 }
 0xbed   : > { %9787 = vmatpush3.bf16.msra.mxu1 %v7471_v26  ;;  %9788 = vmatprep.mubr.msk.bf16.mxu1 %vm10551_vm1, %v13120_v63 }
 0xbee   : > { %9798 = vmatprep.subr.bf16.mxu1 %v13120_v63 }
 0xc2d   : > { %v6173_v46 = vpop.f32.mrb[216].mxu1 }
 0xc2e   : > { %v9652_v50 = vpop.f32.mrb[217].mxu1 }
 0xc2f   : > { %v6176_v51 = vpop.f32.mrb[218].mxu1 }
 0xc30   : > { %v9653_v0 = vpop.f32.mrb[219].mxu1  ;;  %v7028_v51 = vpop.permute.xlu0 %7027 }
 0xc34   : > { %v5933_v48 = vpop.f32.mrb[176].mxu0 }
 0xc35   : > { %v6279_v16 = vpack.c.bf16 %v12533_v59, %v5933_v48  ;;  %v9622_v57 = vpop.f32.mrb[177].mxu0 }
 0xc36   : > { %v5936_v34 = vpop.f32.mrb[178].mxu0 }
 0xc37   : > { %v9623_v43 = vpop.f32.mrb[179].mxu0  ;;  %9676 = vmatprep.mubr.msk.bf16.mxu0 %vm760_vm2, %v6279_v16  ;;  %v6933_v34 = vsel %vm760_vm2, %v6928_v44, 0 }
 0xc38   : > { %v7026_v43 = vpop.permute.xlu0 %7025 }
 0xc69   : > { %v6029_v38 = vpop.f32.mrb[180].mxu0 }
 0xc6a   : > { %v6280_v1 = vpack.c.bf16 %v12536_v12, %v6029_v38  ;;  %v9634_v3 = vpop.f32.mrb[181].mxu0 }
 0xc6b   : > { %v6269_v40 = vpop.f32.mrb[220].mxu1  ;;  %v6032_v15 = vpop.f32.mrb[182].mxu0 }
 0xc6c   : > { %v9664_v52 = vpop.f32.mrb[221].mxu1  ;;  %v9635_v21 = vpop.f32.mrb[183].mxu0  ;;  %9677 = vmatmul.mubr.msk.bf16.gmra.mrb[136].mxu0 %vm760_vm2, %v6280_v1 }
 0xc6d   : > { %v6272_v22 = vpop.f32.mrb[222].mxu1  ;;  %v7128_v15 = vpop.permute.xlu0 %7127 }
 0xc6e   : > { %v9665_v45 = vpop.f32.mrb[223].mxu1 }
 0xc71   : > { %v6125_v59 = vpop.f32.mrb[184].mxu0 }
 0xc72   : > { %v6281_v49 = vpack.c.bf16 %v6173_v46, %v6125_v59  ;;  %v9646_v20 = vpop.f32.mrb[185].mxu0  ;;  %v6833_v46 = vsel %vm760_vm2, %v6828_v41, 0  ;;  %v7126_v59 = vpop.permute.xlu0 %7125 }
 0xc73   : > { %v6128_v60 = vpop.f32.mrb[186].mxu0 }
 0xc74   : > { %v9647_v2 = vpop.f32.mrb[187].mxu0  ;;  %9680 = vmatprep.mubr.msk.bf16.mxu0 %vm760_vm2, %v6281_v49  ;;  %v7133_v49 = vsel %vm760_vm2, %v7128_v15, 0 }
 0xc76   : > { %v7418_v60 = vpop.permute.xlu0 %7417 }
 0xc77   : > { %v12631_v56 = vpop.f32.mrb[224].mxu1 }
 0xc78   : > { %v9688_v12 = vpop.f32.mrb[225].mxu1  ;;  %v7225_v37 = vsel %vm760_vm2, %v12631_v56, -inf }
 0xc79   : > { %v6221_v53 = vpop.f32.mrb[188].mxu0  ;;  %7226 = vmax.xlane.f32.xlu0 %v7225_v37  ;;  %v6472_v55 = vpop.f32.mrb[226].mxu1  ;;  %v7423_v37 = vsel %vm1724_vm3, %v7418_v60, 0 }
 0xc7a   : > { %v6282_v24 = vpack.c.bf16 %v6269_v40, %v6221_v53  ;;  %v9658_v19 = vpop.f32.mrb[189].mxu0  ;;  %v9689_v18 = vpop.f32.mrb[227].mxu1  ;;  %v7033_v40 = vsel %vm760_vm2, %v7028_v51, 0 }
 0xc7b   : > { %v6224_v14 = vpop.f32.mrb[190].mxu0  ;;  %v12707_v51 = vpop.permute.xlu1 %7561 }
 0xc7c   : > { %v9659_v6 = vpop.f32.mrb[191].mxu0  ;;  %9681 = vmatmul.mubr.msk.bf16.gmra.mrb[140].mxu0 %vm760_vm2, %v6282_v24 }
 0xc7d   : > { %9710 = vmatprep.mubr.msk.bf16.mxu0 %vm10551_vm1, %v13120_v63 }
 0xc7f   : > { %v12638_v61 = vpop.f32.mrb[228].mxu1 }
 0xc80   : > { %v9694_v13 = vpop.f32.mrb[229].mxu1  ;;  %v7228_v30 = vsel %vm760_vm2, %v12638_v61, -inf }
 0xc81   : > { %7229 = vmax.xlane.f32.xlu1 %v7228_v30  ;;  %v6522_v33 = vpop.f32.mrb[230].mxu1 }
 0xc82   : > { %v9695_v10 = vpop.f32.mrb[231].mxu1 }
 0xc84   : > { %9711 = vmatmul.mubr.msk.bf16.vlgmr.msra.gmra.mrb[192].mxu0 %vm760_vm2, %v6626_v58 }
 0xc85   : > { %9721 = vmatpush3.bf16.xpose.msra.mxu0 %v6733_v39  ;;  %9722 = vmatprep.mubr.msk.bf16.mxu0 %vm10551_vm1, %v13120_v63 }
 0xc86   : > { %9732 = vmatprep.subr.bf16.mxu0 %v13120_v63 }
 0xc87   : > { %v12647_v47 = vpop.f32.mrb[232].mxu1 }
 0xc88   : > { %v9700_v25 = vpop.f32.mrb[233].mxu1  ;;  %v7231_v7 = vsel %vm760_vm2, %v12647_v47, -inf }
 0xc89   : > { %7232 = vmax.xlane.f32.xlu0 %v7231_v7  ;;  %v6572_v32 = vpop.f32.mrb[234].mxu1 }
 0xc8a   : > { %v9701_v26 = vpop.f32.mrb[235].mxu1  ;;  %v12704_v32 = vpop.permute.xlu0 %7513 }
 0xc8c   : > { %9723 = vmatmul.mubr.msk.bf16.vlgmr.msra.gmra.mrb[196].mxu0 %vm760_vm2, %v6726_v27 }
 0xc8d   : > { %9733 = vmatpush3.bf16.xpose.msra.mxu0 %v6833_v46  ;;  %9734 = vmatprep.mubr.msk.bf16.mxu0 %vm10551_vm1, %v13120_v63 }
 0xc8e   : > { %9744 = vmatprep.subr.bf16.mxu0 %v13120_v63 }
 0xc8f   : > { %v12656_v50 = vpop.f32.mrb[236].mxu1 }
 0xc90   : > { %v9706_v0 = vpop.f32.mrb[237].mxu1  ;;  %v7234_v48 = vsel %vm760_vm2, %v12656_v50, -inf }
 0xc91   : > { %7235 = vmax.xlane.f32.xlu0 %v7234_v48  ;;  %v6622_v16 = vpop.f32.mrb[238].mxu1 }
 0xc92   : > { %v9707_v57 = vpop.f32.mrb[239].mxu1 }
 0xc94   : > { %9735 = vmatmul.mubr.msk.bf16.vlgmr.msra.gmra.mrb[200].mxu0 %vm760_vm2, %v6826_v28 }
 0xc95   : > { %9745 = vmatpush3.bf16.xpose.msra.mxu0 %v6933_v34  ;;  %9746 = vmatprep.mubr.msk.bf16.mxu0 %vm10551_vm1, %v13120_v63 }
 0xc96   : > { %9756 = vmatprep.subr.bf16.mxu0 %v13120_v63 }
 0xc97   : > { %v12665_v58 = vpop.f32.mrb[240].mxu1 }
 0xc98   : > { %v9718_v38 = vpop.f32.mrb[241].mxu1  ;;  %v7240_v42 = vsel %vm760_vm2, %v12665_v58, -inf }
 0xc99   : > { %7241 = vmax.xlane.f32.xlu1 %v7240_v42  ;;  %v6722_v1 = vpop.f32.mrb[242].mxu1 }
 0xc9a   : > { %v9719_v3 = vpop.f32.mrb[243].mxu1 }
 0xc9c   : > { %9747 = vmatmul.mubr.msk.bf16.vlgmr.msra.gmra.mrb[204].mxu0 %vm760_vm2, %v6926_v11 }
 0xc9d   : > { %9757 = vmatpush3.bf16.xpose.msra.mxu0 %v7033_v40  ;;  %9758 = vmatprep.mubr.msk.bf16.mxu0 %vm10551_vm1, %v13120_v63 }
 0xc9e   : > { %9768 = vmatprep.subr.bf16.mxu0 %v13120_v63 }
 0xc9f   : > { %v12674_v52 = vpop.f32.mrb[244].mxu1 }
 0xca0   : > { %v9730_v21 = vpop.f32.mrb[245].mxu1  ;;  %v7246_v22 = vsel %vm760_vm2, %v12674_v52, -inf }
 0xca1   : > { %7247 = vmax.xlane.f32.xlu1 %v7246_v22  ;;  %v6822_v45 = vpop.f32.mrb[246].mxu1 }
 0xca2   : > { %v9731_v27 = vpop.f32.mrb[247].mxu1 }
 0xca4   : > { %9759 = vmatmul.mubr.msk.bf16.vlgmr.msra.gmra.mrb[208].mxu0 %vm760_vm2, %v7026_v43 }
 0xca5   : > { %9769 = vmatpush3.bf16.xpose.msra.mxu0 %v7133_v49  ;;  %9770 = vmatprep.mubr.msk.bf16.mxu0 %vm10551_vm1, %v13120_v63 }
 0xca6   : > { %9780 = vmatprep.subr.bf16.mxu0 %v13120_v63 }
 0xca7   : > { %v12683_v20 = vpop.f32.mrb[248].mxu1 }
 0xca8   : > { %v9742_v2 = vpop.f32.mrb[249].mxu1  ;;  %v7252_v41 = vsel %vm760_vm2, %v12683_v20, -inf }
 0xca9   : > { %7253 = vmax.xlane.f32.xlu1 %v7252_v41  ;;  %v6922_v12 = vpop.f32.mrb[250].mxu1 }
 0xcaa   : > { %v9743_v53 = vpop.f32.mrb[251].mxu1 }
 0xcac   : > { %9771 = vmatmul.mubr.msk.bf16.vlgmr.msra.gmra.mrb[212].mxu0 %vm760_vm2, %v7126_v59 }
 0xcad   : > { %9781 = vmatpush3.bf16.msra.mxu0 %v7423_v37  ;;  %9782 = vmatprep.mubr.msk.bf16.mxu0 %vm10551_vm1, %v13120_v63 }
 0xcae   : > { %9792 = vmatprep.subr.bf16.mxu0 %v13120_v63 }
 0xcaf   : > { %v12692_v24 = vpop.f32.mrb[252].mxu1 }
 0xcb0   : > { %v9754_v55 = vpop.f32.mrb[253].mxu1  ;;  %v7258_v19 = vsel %vm760_vm2, %v12692_v24, -inf }
 0xcb1   : > { %7259 = vmax.xlane.f32.xlu1 %v7258_v19  ;;  %v7022_v18 = vpop.f32.mrb[254].mxu1 }
 0xcb2   : > { %v9755_v14 = vpop.f32.mrb[255].mxu1 }
 0xcb7   : > { %v12696_v6 = vpop.f32.mrb[0].mxu1 }
 0xcb8   : > { %v9766_v28 = vpop.f32.mrb[1].mxu1  ;;  %v7264_v13 = vsel %vm760_vm2, %v12696_v6, -inf }
 0xcb9   : > { %7265 = vmax.xlane.f32.xlu1 %v7264_v13  ;;  %v7122_v30 = vpop.f32.mrb[2].mxu1 }
 0xcba   : > { %v9767_v33 = vpop.f32.mrb[3].mxu1 }
 0xcbf   : > { %v12700_v10 = vpop.f32.mrb[4].mxu1 }
 0xcc0   : > { %v9778_v39 = vpop.f32.mrb[5].mxu1  ;;  %v7270_v44 = vsel %vm760_vm2, %v12700_v10, -inf }
 0xcc1   : > { %7271 = vmax.xlane.f32.xlu1 %v7270_v44  ;;  %v7222_v25 = vpop.f32.mrb[6].mxu1 }
 0xcc2   : > { %v9779_v7 = vpop.f32.mrb[7].mxu1 }
 0xd06   : > { %v7227_v11 = vpop.xlane.xlu0 %7226 }
 0xd07   : > { %v7273_v26 = vsub.f32 %v12631_v56, %v7227_v11 }
 0xd09   : > { %v7289_v46 = vmul.f32 1.442695, %v7273_v26 }
 0xd0b   : > { %10272 = vpow2.f32 %v7289_v46 }
 0xd0e   : > { %v7230_v0 = vpop.xlane.xlu1 %7229 }
 0xd0f   : > { %v7274_v48 = vsub.f32 %v12638_v61, %v7230_v0 }
 0xd11   : > { %v7291_v16 = vmul.f32 1.442695, %v7274_v48 }
 0xd13   : > { %10274 = vpow2.f32 %v7291_v16 }
 0xd15   : > { %v12710_v57 = vpop.eup %10272 }
 0xd16   : > { %v7233_v34 = vpop.xlane.xlu0 %7232  ;;  %v7321_v43 = vsel %vm760_vm2, %v12710_v57, 0.0 }
 0xd17   : > { %v7275_v38 = vsub.f32 %v12647_v47, %v7233_v34  ;;  %7322 = vadd.xlane.f32.xlu0 %v7321_v43 }
 0xd19   : > { %v7293_v42 = vmul.f32 1.442695, %v7275_v38 }
 0xd1b   : > { %10276 = vpow2.f32 %v7293_v42 }
 0xd1d   : > { %v12715_v56 = vpop.eup %10274 }
 0xd1e   : > { %v7236_v1 = vpop.xlane.xlu0 %7235  ;;  %v7324_v3 = vsel %vm760_vm2, %v12715_v56, 0.0 }
 0xd1f   : > { %v7276_v61 = vsub.f32 %v12656_v50, %v7236_v1  ;;  %7325 = vadd.xlane.f32.xlu1 %v7324_v3 }
 0xd21   : > { %v7295_v40 = vmul.f32 1.442695, %v7276_v61 }
 0xd23   : > { %10278 = vpow2.f32 %v7295_v40 }
 0xd25   : > { %v12720_v15 = vpop.eup %10276 }
 0xd26   : > { %v7242_v21 = vpop.xlane.xlu1 %7241  ;;  %v7327_v47 = vsel %vm760_vm2, %v12720_v15, 0.0 }
 0xd27   : > { %v7278_v22 = vsub.f32 %v12665_v58, %v7242_v21  ;;  %7328 = vadd.xlane.f32.xlu0 %v7327_v47 }
 0xd29   : > { %v7299_v45 = vmul.f32 1.442695, %v7278_v22 }
 0xd2b   : > { %10280 = vpow2.f32 %v7299_v45 }
 0xd2d   : > { %v12725_v59 = vpop.eup %10278 }
 0xd2e   : > { %v7248_v27 = vpop.xlane.xlu1 %7247  ;;  %v7330_v50 = vsel %vm760_vm2, %v12725_v59, 0.0 }
 0xd2f   : > { %v7280_v49 = vsub.f32 %v12674_v52, %v7248_v27  ;;  %7331 = vadd.xlane.f32.xlu1 %v7330_v50 }
 0xd31   : > { %v7303_v60 = vmul.f32 1.442695, %v7280_v49 }
 0xd33   : > { %10282 = vpow2.f32 %v7303_v60 }
 0xd35   : > { %v12730_v2 = vpop.eup %10280 }
 0xd36   : > { %v7254_v41 = vpop.xlane.xlu1 %7253  ;;  %v7336_v58 = vsel %vm760_vm2, %v12730_v2, 0.0 }
 0xd37   : > { %v7282_v12 = vsub.f32 %v12683_v20, %v7254_v41  ;;  %7337 = vadd.xlane.f32.xlu1 %v7336_v58 }
 0xd39   : > { %v7307_v53 = vmul.f32 1.442695, %v7282_v12 }
 0xd3b   : > { %10284 = vpow2.f32 %v7307_v53 }
 0xd3d   : > { %v12735_v37 = vpop.eup %10282 }
 0xd3e   : > { %v7260_v55 = vpop.xlane.xlu1 %7259  ;;  %v7342_v52 = vsel %vm760_vm2, %v12735_v37, 0.0 }
 0xd3f   : > { %v7284_v19 = vsub.f32 %v12692_v24, %v7260_v55  ;;  %7343 = vadd.xlane.f32.xlu1 %v7342_v52  ;;  %v7519_v52 = vsel %vm1724_vm3, %v12704_v32, 0 }
 0xd41   : > { %v7311_v18 = vmul.f32 1.442695, %v7284_v19 }
 0xd43   : > { %10286 = vpow2.f32 %v7311_v18 }
 0xd45   : > { %v12740_v14 = vpop.eup %10284 }
 0xd46   : > { %v7348_v28 = vsel %vm760_vm2, %v12740_v14, 0.0  ;;  %v7266_v22 = vpop.xlane.xlu1 %7265 }
 0xd47   : > { %7349 = vadd.xlane.f32.xlu0 %v7348_v28  ;;  %v7286_v45 = vsub.f32 %v12696_v6, %v7266_v22 }
 0xd49   : > { %v7315_v27 = vmul.f32 1.442695, %v7286_v45 }
 0xd4b   : > { %10288 = vpow2.f32 %v7315_v27 }
 0xd4d   : > { %v12744_v20 = vpop.eup %10286 }
 0xd4e   : > { %v7354_v13 = vsel %vm760_vm2, %v12744_v20, 0.0  ;;  %v12785_v41 = vpop.xlane.xlu1 %7271 }
 0xd4f   : > { %7355 = vadd.xlane.f32.xlu0 %v7354_v13 }
 0xd50   : > { %7657 = vrot.lane.b32.xlu1 %v11048_v9, %s10562_s27 }
 0xd54   : > { %7753 = vrot.lane.b32.xlu1 %v11058_v62, %s10562_s27 }
 0xd55   : > { %v12783_v60 = vpop.eup %10288 }
 0xd56   : > { %v7360_v58 = vsel %vm760_vm2, %v12783_v60, 0.0 }
 0xd57   : > { %v12752_v24 = vpop.f32.mrb[192].mxu0 }
 0xd58   : > { %v9712_v30 = vpop.f32.mrb[193].mxu0  ;;  %v7237_v33 = vsel %vm760_vm2, %v12752_v24, -inf  ;;  %7849 = vrot.lane.b32.xlu1 %v11068_v23, %s10562_s27 }
 0xd59   : > { %v6672_v39 = vpop.f32.mrb[194].mxu0  ;;  %7238 = vmax.xlane.f32.xlu0 %v7237_v33 }
 0xd5a   : > { %v9713_v44 = vpop.f32.mrb[195].mxu0 }
 0xd5c   : > { %7897 = vrot.lane.b32.xlu1 %v11063_v17, %s10562_s27 }
 0xd5f   : > { %v12760_v25 = vpop.f32.mrb[196].mxu0 }
 0xd60   : > { %v9724_v9 = vpop.f32.mrb[197].mxu0  ;;  %v7243_v62 = vsel %vm760_vm2, %v12760_v25, -inf  ;;  %7945 = vrot.lane.b32.xlu1 %v11078_v29, %s10562_s27 }
 0xd61   : > { %v6772_v7 = vpop.f32.mrb[198].mxu0  ;;  %7244 = vmax.xlane.f32.xlu0 %v7243_v62 }
 0xd62   : > { %v9725_v11 = vpop.f32.mrb[199].mxu0 }
 0xd67   : > { %v12766_v26 = vpop.f32.mrb[200].mxu0 }
 0xd68   : > { %v9736_v23 = vpop.f32.mrb[201].mxu0  ;;  %v7249_v46 = vsel %vm760_vm2, %v12766_v26, -inf }
 0xd69   : > { %v6872_v0 = vpop.f32.mrb[202].mxu0  ;;  %7250 = vmax.xlane.f32.xlu0 %v7249_v46 }
 0xd6a   : > { %v9737_v17 = vpop.f32.mrb[203].mxu0 }
 0xd6f   : > { %v12770_v48 = vpop.f32.mrb[204].mxu0 }
 0xd70   : > { %v9748_v16 = vpop.f32.mrb[205].mxu0  ;;  %v7255_v34 = vsel %vm760_vm2, %v12770_v48, -inf }
 0xd71   : > { %v6972_v43 = vpop.f32.mrb[206].mxu0  ;;  %7256 = vmax.xlane.f32.xlu0 %v7255_v34 }
 0xd72   : > { %v9749_v29 = vpop.f32.mrb[207].mxu0 }
 0xd77   : > { %v12774_v38 = vpop.f32.mrb[208].mxu0 }
 0xd78   : > { %v9760_v42 = vpop.f32.mrb[209].mxu0  ;;  %v7261_v49 = vsel %vm760_vm2, %v12774_v38, -inf }
 0xd79   : > { %v7072_v1 = vpop.f32.mrb[210].mxu0 }
 0xd7a   : > { %v9761_v3 = vpop.f32.mrb[211].mxu0 }
 0xd7f   : > { %v12776_v61 = vpop.f32.mrb[212].mxu0 }
 0xd80   : > { %v9772_v40 = vpop.f32.mrb[213].mxu0  ;;  %v7267_v6 = vsel %vm760_vm2, %v12776_v61, -inf }
 0xd81   : > { %v7172_v21 = vpop.f32.mrb[214].mxu0 }
 0xd82   : > { %v9773_v47 = vpop.f32.mrb[215].mxu0 }
 0xd87   : > { %7609 = vrot.lane.b32.xlu0 %v11034_v4, %s10562_s27 }
 0xda4   : > { %v7323_v50 = vpop.xlane.xlu0 %7322 }
 0xda5   : > { %10290 = vrcp.f32 %v7323_v50 }
 0xda6   : > { %7262 = vmax.xlane.f32.xlu0 %v7261_v49 }
 0xdaa   : > { %7361 = vadd.xlane.f32.xlu0 %v7360_v58 }
 0xdac   : > { %v7326_v4 = vpop.xlane.xlu1 %7325 }
 0xdad   : > { %10292 = vrcp.f32 %v7326_v4 }
 0xdae   : > { %7268 = vmax.xlane.f32.xlu0 %v7267_v6 }
 0xdaf   : > { %v10291_v12 = vpop.eup %10290 }
 0xdb0   : > { %v7385_v53 = vmul.f32 %v10291_v12, %v12710_v57  ;;  %v7567_v57 = vsel %vm1724_vm3, %v12707_v51, 0 }
 0xdb2   : > { %v7401_v55 = vpack.c.bf16 %v7385_v53, %v7385_v53 }
 0xdb4   : > { %9783 = vmatmul.mubr.msk.bf16.vlgmr.msra.gmra.mrb[216].mxu0 %vm760_vm2, %v7401_v55  ;;  %v7329_v19 = vpop.xlane.xlu0 %7328 }
 0xdb5   : > { %9793 = vmatpush3.bf16.msra.mxu0 %v7519_v52  ;;  %10294 = vrcp.f32 %v7329_v19  ;;  %9794 = vmatprep.mubr.msk.bf16.mxu0 %vm10551_vm1, %v13120_v63 }
 0xdb6   : > { %9804 = vmatprep.subr.bf16.mxu0 %v13120_v63 }
 0xdb7   : > { %v10293_v18 = vpop.eup %10292 }
 0xdb8   : > { %v7386_v28 = vmul.f32 %v10293_v18, %v12715_v56 }
 0xdba   : > { %v7402_v13 = vpack.c.bf16 %v7386_v28, %v7386_v28  ;;  %v7288_v28 = vsub.f32 %v12700_v10, %v12785_v41 }
 0xdbc   : > { %9789 = vmatmul.mubr.msk.bf16.vlgmr.msra.gmra.mrb[8].mxu1 %vm760_vm2, %v7402_v13  ;;  %v7332_v32 = vpop.xlane.xlu1 %7331 }
 0xdbd   : > { %9799 = vmatpush3.bf16.msra.mxu1 %v7567_v57  ;;  %10296 = vrcp.f32 %v7332_v32  ;;  %9800 = vmatprep.mubr.msk.bf16.mxu1 %vm10551_vm1, %v13120_v63  ;;  %v7319_v57 = vmul.f32 1.442695, %v7288_v28 }
 0xdbe   : > { %9810 = vmatprep.subr.bf16.mxu1 %v13120_v63 }
 0xdbf   : > { %v10295_v30 = vpop.eup %10294 }
 0xdc0   : > { %v7387_v33 = vmul.f32 %v10295_v30, %v12720_v15 }
 0xdc2   : > { %v7403_v39 = vpack.c.bf16 %v7387_v33, %v7387_v33 }
 0xdc4   : > { %v7338_v44 = vpop.xlane.xlu1 %7337  ;;  %9795 = vmatmul.mubr.msk.bf16.vlgmr.msra.gmra.mrb[220].mxu0 %vm760_vm2, %v7403_v39 }
 0xdc5   : > { %10298 = vrcp.f32 %v7338_v44  ;;  %9806 = vmatprep.mubr.msk.bf16.mxu0 %vm10551_vm1, %v13120_v63 }
 0xdc7   : > { %v10297_v51 = vpop.eup %10296 }
 0xdc8   : > { %v7388_v56 = vmul.f32 %v10297_v51, %v12725_v59 }
 0xdca   : > { %v7404_v9 = vpack.c.bf16 %v7388_v56, %v7388_v56 }
 0xdcc   : > { %9801 = vmatmul.mubr.msk.bf16.vlgmr.msra.gmra.mrb[12].mxu1 %vm760_vm2, %v7404_v9  ;;  %v7344_v62 = vpop.xlane.xlu1 %7343 }
 0xdcd   : > { %10300 = vrcp.f32 %v7344_v62  ;;  %9812 = vmatprep.mubr.msk.bf16.mxu1 %vm10551_vm1, %v13120_v63 }
 0xdcf   : > { %v10299_v15 = vpop.eup %10298 }
 0xdd0   : > { %v7390_v7 = vmul.f32 %v10299_v15, %v12730_v2  ;;  %v7658_v11 = vpop.permute.xlu1 %7657 }
 0xdd1   : > { %v7663_v23 = vsel %vm1724_vm3, %v7658_v11, 0 }
 0xdd2   : > { %v7406_v46 = vpack.c.bf16 %v7390_v7, %v7390_v7  ;;  %9811 = vmatpush3.bf16.msra.mxu1 %v7663_v23 }
 0xdd3   : > { %9822 = vmatprep.subr.bf16.mxu1 %v13120_v63 }
 0xdd4   : > { %v7754_v0 = vpop.permute.xlu1 %7753  ;;  %v7350_v59 = vpop.xlane.xlu0 %7349 }
 0xdd5   : > { %v7759_v17 = vsel %vm1724_vm3, %v7754_v0, 0  ;;  %10302 = vrcp.f32 %v7350_v59  ;;  %9813 = vmatmul.mubr.msk.bf16.vlgmr.msra.gmra.mrb[16].mxu1 %vm760_vm2, %v7406_v46 }
 0xdd6   : > { %9823 = vmatpush3.bf16.msra.mxu1 %v7759_v17  ;;  %9824 = vmatprep.mubr.msk.bf16.mxu1 %vm10551_vm1, %v13120_v63 }
 0xdd7   : > { %v10301_v16 = vpop.eup %10300  ;;  %9834 = vmatprep.subr.bf16.mxu1 %v13120_v63 }
 0xdd8   : > { %v7392_v2 = vmul.f32 %v10301_v16, %v12735_v37  ;;  %v7850_v34 = vpop.permute.xlu1 %7849 }
 0xdd9   : > { %v7855_v1 = vsel %vm1724_vm3, %v7850_v34, 0 }
 0xdda   : > { %v7408_v43 = vpack.c.bf16 %v7392_v2, %v7392_v2 }
 0xddc   : > { %v12822_v29 = vpop.permute.xlu1 %7897  ;;  %v7356_v42 = vpop.xlane.xlu0 %7355 }
 0xddd   : > { %10304 = vrcp.f32 %v7356_v42  ;;  %9825 = vmatmul.mubr.msk.bf16.vlgmr.msra.gmra.mrb[20].mxu1 %vm760_vm2, %v7408_v43 }
 0xdde   : > { %9835 = vmatpush3.bf16.msra.mxu1 %v7855_v1  ;;  %9836 = vmatprep.mubr.msk.bf16.mxu1 %vm10551_vm1, %v13120_v63 }
 0xddf   : > { %v10303_v3 = vpop.eup %10302  ;;  %9846 = vmatprep.subr.bf16.mxu1 %v13120_v63 }
 0xde0   : > { %v7394_v40 = vmul.f32 %v10303_v3, %v12740_v14  ;;  %v7946_v21 = vpop.permute.xlu1 %7945 }
 0xde1   : > { %v7951_v47 = vsel %vm1724_vm3, %v7946_v21, 0 }
 0xde2   : > { %v7410_v37 = vpack.c.bf16 %v7394_v40, %v7394_v40 }
 0xde5   : > { %9837 = vmatmul.mubr.msk.bf16.vlgmr.msra.gmra.mrb[24].mxu1 %vm760_vm2, %v7410_v37 }
 0xde6   : > { %v7239_v22 = vpop.xlane.xlu0 %7238  ;;  %9847 = vmatpush3.bf16.msra.mxu1 %v7951_v47  ;;  %9848 = vmatprep.mubr.msk.bf16.mxu1 %vm10551_vm1, %v13120_v63 }
 0xde7   : > { %v7277_v45 = vsub.f32 %v12752_v24, %v7239_v22  ;;  %v10305_v27 = vpop.eup %10304  ;;  %9858 = vmatprep.subr.bf16.mxu1 %v13120_v63 }
 0xde8   : > { %v7396_v50 = vmul.f32 %v10305_v27, %v12744_v20 }
 0xde9   : > { %v7297_v49 = vmul.f32 1.442695, %v7277_v45 }
 0xdea   : > { %v7412_v14 = vpack.c.bf16 %v7396_v50, %v7396_v50 }
 0xdeb   : > { %10306 = vpow2.f32 %v7297_v49 }
 0xded   : > { %9849 = vmatmul.mubr.msk.bf16.vlgmr.msra.gmra.mrb[28].mxu1 %vm760_vm2, %v7412_v14 }
 0xdee   : > { %9860 = vmatprep.mubr.msk.bf16.mxu1 %vm10551_vm1, %v13120_v63  ;;  %v7245_v58 = vpop.xlane.xlu0 %7244 }
 0xdf5   : > { %v10307_v4 = vpop.eup %10306 }
 0xdf6   : > { %v7251_v6 = vpop.xlane.xlu0 %7250  ;;  %v7333_v24 = vsel %vm760_vm2, %v10307_v4, 0.0 }
 0xdf7   : > { %v7281_v12 = vsub.f32 %v12766_v26, %v7251_v6  ;;  %7334 = vadd.xlane.f32.xlu0 %v7333_v24  ;;  %v7279_v26 = vsub.f32 %v12760_v25, %v7245_v58 }
 0xdf9   : > { %v7305_v53 = vmul.f32 1.442695, %v7281_v12  ;;  %v7301_v13 = vmul.f32 1.442695, %v7279_v26 }
 0xdfb   : > { %10308 = vpow2.f32 %v7305_v53 }
 0xdfc   : > { %10310 = vpow2.f32 %v7301_v13 }
 0xdfd   : > { %10312 = vpow2.f32 %v7319_v57 }
 0xdfe   : > { %v7257_v55 = vpop.xlane.xlu0 %7256 }
 0xdff   : > { %v7283_v32 = vsub.f32 %v12770_v48, %v7257_v55 }
 0xe01   : > { %v7309_v33 = vmul.f32 1.442695, %v7283_v32 }
 0xe02   : > { %v7610_v20 = vpop.permute.xlu0 %7609 }
 0xe03   : > { %v7615_v52 = vsel %vm1724_vm3, %v7610_v20, 0  ;;  %10314 = vpow2.f32 %v7309_v33 }
 0xe04   : > { %9805 = vmatpush3.bf16.msra.mxu0 %v7615_v52 }
 0xe05   : > { %v12843_v19 = vpop.eup %10308  ;;  %9816 = vmatprep.subr.bf16.mxu0 %v13120_v63 }
 0xe06   : > { %v7345_v18 = vsel %vm760_vm2, %v12843_v19, 0.0  ;;  %v12856_v30 = vpop.eup %10310 }
 0xe07   : > { %7346 = vadd.xlane.f32.xlu1 %v7345_v18  ;;  %v12860_v39 = vpop.eup %10312 }
 0xe0d   : > { %7705 = vrot.lane.b32.xlu0 %v11043_v5, %s10562_s27  ;;  %v7339_v5 = vsel %vm760_vm2, %v12856_v30, 0.0  ;;  %v12865_v48 = vpop.eup %10314 }
 0xe0e   : > { %v7351_v56 = vsel %vm760_vm2, %v12865_v48, 0.0 }
 0xe18   : > { %8041 = vrot.lane.b32.xlu1 %v11088_v35, %s10562_s27  ;;  %v7366_v35 = vsel %vm760_vm2, %v12860_v39, 0.0 }
 0xe2c   : > { %7340 = vadd.xlane.f32.xlu0 %v7339_v5 }
 0xe30   : > { %7367 = vadd.xlane.f32.xlu0 %v7366_v35 }
 0xe33   : > { %v7263_v10 = vpop.xlane.xlu0 %7262 }
 0xe34   : > { %v7285_v25 = vsub.f32 %v12774_v38, %v7263_v10 }
 0xe36   : > { %v7313_v41 = vmul.f32 1.442695, %v7285_v25 }
 0xe37   : > { %v7362_v44 = vpop.xlane.xlu0 %7361 }
 0xe38   : > { %10316 = vpow2.f32 %v7313_v41 }
 0xe3b   : > { %v7269_v51 = vpop.xlane.xlu0 %7268 }
 0xe3c   : > { %v7287_v9 = vsub.f32 %v12776_v61, %v7269_v51  ;;  %7352 = vadd.xlane.f32.xlu1 %v7351_v56 }
 0xe3e   : > { %v7317_v62 = vmul.f32 1.442695, %v7287_v9 }
 0xe40   : > { %10318 = vpow2.f32 %v7317_v62 }
 0xe42   : > { %v12870_v15 = vpop.eup %10316 }
 0xe43   : > { %v7357_v7 = vsel %vm760_vm2, %v12870_v15, 0.0 }
 0xe44   : > { %7358 = vadd.xlane.f32.xlu1 %v7357_v7 }
 0xe46   : > { %7801 = vrot.lane.b32.xlu0 %v11054_v54, %s10562_s27 }
 0xe4a   : > { %v12876_v38 = vpop.eup %10318  ;;  %7993 = vrot.lane.b32.xlu0 %v11074_v8, %s10562_s27 }
 0xe4b   : > { %v7363_v61 = vsel %vm760_vm2, %v12876_v38, 0.0 }
 0xe4c   : > { %7364 = vadd.xlane.f32.xlu1 %v7363_v61 }
 0xe4e   : > { %8089 = vrot.lane.b32.xlu0 %v11083_v31, %s10562_s27 }
 0xe5d   : > { %8137 = vrot.lane.b32.xlu1 %v11094_v36, %s10562_s27 }
 0xe84   : > { %v7335_v11 = vpop.xlane.xlu0 %7334 }
 0xe85   : > { %10320 = vrcp.f32 %v7335_v11 }
 0xe86   : > { %10322 = vrcp.f32 %v7362_v44 }
 0xe87   : > { %v12886_v23 = vpop.f32.mrb[216].mxu0 }
 0xe88   : > { %v9784_v54 = vpop.f32.mrb[217].mxu0  ;;  %v7706_v16 = vpop.permute.xlu0 %7705 }
 0xe89   : > { %v7462_v46 = vpop.f32.mrb[218].mxu0  ;;  %v7711_v1 = vsel %vm1724_vm3, %v7706_v16, 0 }
 0xe8a   : > { %v9785_v0 = vpop.f32.mrb[219].mxu0 }
 0xe8f   : > { %v10321_v59 = vpop.eup %10320  ;;  %v12888_v17 = vpop.f32.mrb[8].mxu1 }
 0xe90   : > { %v7389_v8 = vmul.f32 %v10321_v59, %v10307_v4  ;;  %v8185_v2 = vpack.c.bf16 %v12888_v17, %v12886_v23  ;;  %v9790_v31 = vpop.f32.mrb[9].mxu1  ;;  %v10323_v42 = vpop.eup %10322 }
 0xe91   : > { %v7510_v34 = vpop.f32.mrb[10].mxu1  ;;  %v7398_v40 = vmul.f32 %v10323_v42, %v12783_v60 }
 0xe92   : > { %v7405_v43 = vpack.c.bf16 %v7389_v8, %v7389_v8  ;;  %v9791_v36 = vpop.f32.mrb[11].mxu1 }
 0xe93   : > { %v7414_v27 = vpack.c.bf16 %v7398_v40, %v7398_v40  ;;  %v8194_v40 = vld [vmem:[#allocation8 + $0xc] sm:$0xf] }
 0xe94   : > { %v7347_v3 = vpop.xlane.xlu1 %7346  ;;  %9807 = vmatmul.mubr.msk.bf16.vlgmr.msra.gmra.mrb[224].mxu0 %vm760_vm2, %v7405_v43 }
 0xe95   : > { %9817 = vmatpush3.bf16.msra.mxu0 %v7711_v1  ;;  %9818 = vmatprep.mubr.msk.bf16.mxu0 %vm10551_vm1, %v13120_v63 }
 0xe96   : > { %9828 = vmatprep.subr.bf16.mxu0 %v13120_v63 }
 0xe97   : > { %v12898_v37 = vpop.f32.mrb[220].mxu0 }
 0xe98   : > { %v8042_v21 = vpop.permute.xlu1 %8041  ;;  %v9796_v47 = vpop.f32.mrb[221].mxu0 }
 0xe99   : > { %v8047_v22 = vsel %vm1724_vm3, %v8042_v21, 0  ;;  %v7558_v45 = vpop.f32.mrb[222].mxu0 }
 0xe9a   : > { %9859 = vmatpush3.bf16.msra.mxu1 %v8047_v22  ;;  %v9797_v50 = vpop.f32.mrb[223].mxu0  ;;  %v8220_v22 = vsel %vm1724_vm3, %v8194_v40, 0 }
 0xe9b   : > { %9870 = vmatprep.subr.bf16.mxu1 %v13120_v63 }
 0xe9d   : > { %9861 = vmatmul.mubr.msk.bf16.vlgmr.msra.gmra.mrb[32].mxu1 %vm760_vm2, %v7414_v27 }
 0xe9e   : > { %9872 = vmatprep.mubr.msk.bf16.mxu1 %vm10551_vm1, %v13120_v63 }
 0xe9f   : > { %v12905_v49 = vpop.f32.mrb[12].mxu1 }
 0xea0   : > { %v8186_v60 = vpack.c.bf16 %v12905_v49, %v12898_v37  ;;  %v9802_v14 = vpop.f32.mrb[13].mxu1 }
 0xea1   : > { %v7606_v58 = vpop.f32.mrb[14].mxu1 }
 0xea2   : > { %v9803_v4 = vpop.f32.mrb[15].mxu1 }
 0xea8   : > { %v12909_v6 = vpop.f32.mrb[16].mxu1 }
 0xea9   : > { %v9814_v24 = vpop.f32.mrb[17].mxu1 }
 0xeaa   : > { %v7702_v12 = vpop.f32.mrb[18].mxu1 }
 0xeab   : > { %v9815_v53 = vpop.f32.mrb[19].mxu1 }
 0xeb0   : > { %v12911_v55 = vpop.f32.mrb[20].mxu1 }
 0xeb1   : > { %v9826_v20 = vpop.f32.mrb[21].mxu1 }
 0xeb2   : > { %v7798_v52 = vpop.f32.mrb[22].mxu1 }
 0xeb3   : > { %v9827_v18 = vpop.f32.mrb[23].mxu1 }
 0xeb8   : > { %v12913_v26 = vpop.f32.mrb[24].mxu1 }
 0xeb9   : > { %v7341_v28 = vpop.xlane.xlu0 %7340  ;;  %v9838_v13 = vpop.f32.mrb[25].mxu1 }
 0xeba   : > { %10324 = vrcp.f32 %v7341_v28  ;;  %v7894_v57 = vpop.f32.mrb[26].mxu1 }
 0xebb   : > { %v9839_v32 = vpop.f32.mrb[27].mxu1  ;;  %10326 = vrcp.f32 %v7347_v3 }
 0xebd   : > { %v7368_v33 = vpop.xlane.xlu0 %7367 }
 0xec0   : > { %v12915_v5 = vpop.f32.mrb[28].mxu1 }
 0xec1   : > { %v9850_v35 = vpop.f32.mrb[29].mxu1  ;;  %v7802_v51 = vpop.permute.xlu0 %7801 }
 0xec2   : > { %v7990_v10 = vpop.f32.mrb[30].mxu1  ;;  %v7807_v62 = vsel %vm1724_vm3, %v7802_v51, 0 }
 0xec3   : > { %v9851_v41 = vpop.f32.mrb[31].mxu1 }
 0xec4   : > { %v10325_v25 = vpop.eup %10324 }
 0xec5   : > { %v7391_v44 = vmul.f32 %v10325_v25, %v12856_v30  ;;  %v10327_v9 = vpop.eup %10326  ;;  %v7903_v30 = vsel %vm1724_vm3, %v12822_v29, 0  ;;  %v7994_v0 = vpop.permute.xlu0 %7993 }
 0xec6   : > { %v7393_v61 = vmul.f32 %v10327_v9, %v12843_v19  ;;  %v7999_v16 = vsel %vm1724_vm3, %v7994_v0, 0 }
 0xec7   : > { %v7407_v56 = vpack.c.bf16 %v7391_v44, %v7391_v44 }
 0xec8   : > { %v7409_v11 = vpack.c.bf16 %v7393_v61, %v7393_v61 }
 0xec9   : > { %v7353_v7 = vpop.xlane.xlu1 %7352  ;;  %9819 = vmatmul.mubr.msk.bf16.vlgmr.msra.gmra.mrb[228].mxu0 %vm760_vm2, %v7407_v56  ;;  %v8090_v36 = vpop.permute.xlu0 %8089 }
 0xeca   : > { %10328 = vrcp.f32 %v7353_v7  ;;  %9829 = vmatpush3.bf16.msra.mxu0 %v7807_v62  ;;  %9830 = vmatprep.mubr.msk.bf16.mxu0 %vm10551_vm1, %v13120_v63  ;;  %v8095_v21 = vsel %vm1724_vm3, %v8090_v36, 0  ;;  %v12969_v7 = vld [vmem:[%s13095_s5] ss:$0 sm:$0xff] }
 0xecb   : > { %9840 = vmatprep.subr.bf16.mxu0 %v13120_v63  ;;  %10330 = vrcp.f32 %v7368_v33 }
 0xed1   : > { %v7359_v54 = vpop.xlane.xlu1 %7358  ;;  %9831 = vmatmul.mubr.msk.bf16.vlgmr.msra.gmra.mrb[232].mxu0 %vm760_vm2, %v7409_v11 }
 0xed2   : > { %10332 = vrcp.f32 %v7359_v54  ;;  %9841 = vmatpush3.bf16.msra.mxu0 %v7903_v30  ;;  %9842 = vmatprep.mubr.msk.bf16.mxu0 %vm10551_vm1, %v13120_v63 }
 0xed3   : > { %9852 = vmatprep.subr.bf16.mxu0 %v13120_v63 }
 0xed4   : > { %v10329_v46 = vpop.eup %10328 }
 0xed5   : > { %v7395_v19 = vmul.f32 %v10329_v46, %v12865_v48  ;;  %v10331_v8 = vpop.eup %10330 }
 0xed6   : > { %v7400_v34 = vmul.f32 %v10331_v8, %v12860_v39 }
 0xed7   : > { %v7411_v59 = vpack.c.bf16 %v7395_v19, %v7395_v19  ;;  %v10336_v19 = vld [vmem:[%s10793_s14 + $0x10] sm:$0xff] }
 0xed8   : > { %v7416_v3 = vpack.c.bf16 %v7400_v34, %v7400_v34  ;;  %v10338_v34 = vld [vmem:[%s10793_s14 + $0x18] sm:$0xff] }
 0xed9   : > { %v7365_v31 = vpop.xlane.xlu1 %7364  ;;  %9843 = vmatmul.mubr.msk.bf16.vlgmr.msra.gmra.mrb[236].mxu0 %vm760_vm2, %v7411_v59 }
 0xeda   : > { %10334 = vrcp.f32 %v7365_v31  ;;  %9853 = vmatpush3.bf16.msra.mxu0 %v7999_v16  ;;  %9854 = vmatprep.mubr.msk.bf16.mxu0 %vm10551_vm1, %v13120_v63  ;;  %v10337_v16 = vld [vmem:[%s10793_s14] sm:$0xff] }
 0xedb   : > { %9864 = vmatprep.subr.bf16.mxu0 %v13120_v63 }
 0xedc   : > { %v10333_v29 = vpop.eup %10332 }
 0xedd   : > { %v7397_v48 = vmul.f32 %v10333_v29, %v12870_v15  ;;  %v8138_v43 = vpop.permute.xlu1 %8137 }
 0xede   : > { %v8143_v42 = vsel %vm1724_vm3, %v8138_v43, 0  ;;  %v10339_v43 = vld [vmem:[%s10793_s14 + $0x8] sm:$0xff] }
 0xedf   : > { %9871 = vmatpush3.bf16.msra.mxu1 %v8143_v42  ;;  %v7413_v1 = vpack.c.bf16 %v7397_v48, %v7397_v48 }
 0xee1   : > { %9855 = vmatmul.mubr.msk.bf16.vlgmr.msra.gmra.mrb[240].mxu0 %vm760_vm2, %v7413_v1 }
 0xee2   : > { %9865 = vmatpush3.bf16.msra.mxu0 %v8095_v21  ;;  %9873 = vmatmul.mubr.msk.bf16.vlgmr.msra.gmra.mrb[36].mxu1 %vm760_vm2, %v7416_v3 }
 0xee3   : > { %9866 = vmatprep.mubr.msk.bf16.mxu0 %vm10551_vm1, %v13120_v63  ;;  %9949 = vmatprep.subr.msk.bf16.mxu0 %vm1724_vm3, %v8194_v40 }
 0xee4   : > { %v10335_v39 = vpop.eup %10334 }
 0xee5   : > { %v7399_v15 = vmul.f32 %v10335_v39, %v12876_v38  ;;  %v10340_v39 = vld [vmem:[%s10793_s14 + $0x30] sm:$0xff] }
 0xee7   : > { %v7415_v47 = vpack.c.bf16 %v7399_v15, %v7399_v15 }
 0xee9   : > { %9867 = vmatmul.mubr.msk.bf16.vlgmr.msra.gmra.mrb[244].mxu0 %vm760_vm2, %v7415_v47 }
 0xeea   : > { %9878 = vmatprep.mubr.msk.bf16.mxu0 %vm760_vm2, %v8185_v2  ;;  %9877 = vmatpush3.bf16.msra.mxu0 %v8220_v22 }
 0xef1   : > { %9879 = vmatmul.mubr.msk.bf16.vlgmr.msra.gmra.mrb[128].mxu0 %vm760_vm2, %v8186_v60 }
 0xf67   : > { %v7651_v63 = vpop.f32.mrb[224].mxu0 }
 0xf68   : > { %v8187_v45 = vpack.c.bf16 %v12909_v6, %v7651_v63  ;;  %v9808_v38 = vpop.f32.mrb[225].mxu0  ;;  %v10341_v63 = vld [vmem:[%s10793_s14 + $0x20] sm:$0xff] }
 0xf69   : > { %v7654_v27 = vpop.f32.mrb[226].mxu0 }
 0xf6a   : > { %v9809_v50 = vpop.f32.mrb[227].mxu0  ;;  %9882 = vmatprep.mubr.msk.bf16.mxu0 %vm760_vm2, %v8187_v45  ;;  %v10342_v27 = vld [vmem:[%s10793_s14 + $0x38] sm:$0xff] }
 0xf70   : > { %v8083_v14 = vpop.f32.mrb[32].mxu1 }
 0xf71   : > { %v9862_v58 = vpop.f32.mrb[33].mxu1 }
 0xf72   : > { %v8086_v4 = vpop.f32.mrb[34].mxu1 }
 0xf73   : > { %v9863_v23 = vpop.f32.mrb[35].mxu1 }
 0xf9c   : > { %v7747_v17 = vpop.f32.mrb[228].mxu0 }
 0xf9d   : > { %v8188_v2 = vpack.c.bf16 %v12911_v55, %v7747_v17  ;;  %v9820_v24 = vpop.f32.mrb[229].mxu0 }
 0xf9e   : > { %v7750_v12 = vpop.f32.mrb[230].mxu0 }
 0xf9f   : > { %v9821_v37 = vpop.f32.mrb[231].mxu0  ;;  %9883 = vmatmul.mubr.msk.bf16.gmra.mrb[132].mxu0 %vm760_vm2, %v8188_v2  ;;  %v10344_v12 = vld [vmem:[%s10793_s14 + $0x50] sm:$0xff] }
 0xfa4   : > { %v7843_v49 = vpop.f32.mrb[232].mxu0 }
 0xfa5   : > { %v8189_v60 = vpack.c.bf16 %v12913_v26, %v7843_v49  ;;  %v9832_v6 = vpop.f32.mrb[233].mxu0 }
 0xfa6   : > { %v7846_v53 = vpop.f32.mrb[234].mxu0  ;;  %v10345_v6 = vld [vmem:[%s10793_s14 + $0x40] sm:$0xff] }
 0xfa7   : > { %v9833_v20 = vpop.f32.mrb[235].mxu0  ;;  %9886 = vmatprep.mubr.msk.bf16.mxu0 %vm760_vm2, %v8189_v60 }
 0xfac   : > { %v7939_v52 = vpop.f32.mrb[236].mxu0 }
 0xfad   : > { %v8190_v18 = vpack.c.bf16 %v12915_v5, %v7939_v52  ;;  %v9844_v28 = vpop.f32.mrb[237].mxu0  ;;  %v10346_v52 = vld [vmem:[%s10793_s14 + $0x58] sm:$0xff] }
 0xfae   : > { %v7942_v13 = vpop.f32.mrb[238].mxu0  ;;  %v10347_v28 = vld [vmem:[%s10793_s14 + $0x48] sm:$0xff] }
 0xfaf   : > { %v9845_v57 = vpop.f32.mrb[239].mxu0  ;;  %9887 = vmatmul.mubr.msk.bf16.gmra.mrb[136].mxu0 %vm760_vm2, %v8190_v18 }
 0xfb4   : > { %v8035_v55 = vpop.f32.mrb[240].mxu0 }
 0xfb5   : > { %v8191_v32 = vpack.c.bf16 %v8083_v14, %v8035_v55  ;;  %v9856_v33 = vpop.f32.mrb[241].mxu0  ;;  %v8179_v35 = vpop.f32.mrb[36].mxu1  ;;  %v10343_v14 = vld [vmem:[%s10793_s14 + $0x28] sm:$0xff] }
 0xfb6   : > { %v8038_v10 = vpop.f32.mrb[242].mxu0  ;;  %v9874_v25 = vpop.f32.mrb[37].mxu1 }
 0xfb7   : > { %v9857_v26 = vpop.f32.mrb[243].mxu0  ;;  %v8182_v41 = vpop.f32.mrb[38].mxu1  ;;  %9890 = vmatprep.mubr.msk.bf16.mxu0 %vm760_vm2, %v8191_v32  ;;  %v10348_v10 = vld [vmem:[%s10793_s14 + $0x70] sm:$0xff] }
 0xfb8   : > { %v9875_v44 = vpop.f32.mrb[39].mxu1 }
 0xfb9   : > { %v10349_v44 = vld [vmem:[%s10793_s14 + $0x60] sm:$0xff] }
 0xfbc   : > { %v8131_v51 = vpop.f32.mrb[244].mxu0 }
 0xfbd   : > { %v8192_v5 = vpack.c.bf16 %v8179_v35, %v8131_v51  ;;  %v9868_v56 = vpop.f32.mrb[245].mxu0 }
 0xfbe   : > { %v8134_v9 = vpop.f32.mrb[246].mxu0  ;;  %v10350_v56 = vld [vmem:[%s10793_s14 + $0x78] sm:$0xff] }
 0xfbf   : > { %v9869_v62 = vpop.f32.mrb[247].mxu0  ;;  %9891 = vmatmul.mubr.msk.bf16.gmra.mrb[140].mxu0 %vm760_vm2, %v8192_v5 }
 0xfc0   : > { %v10351_v62 = vld [vmem:[%s10793_s14 + $0x68] sm:$0xff] }
 0xfc4   : > { %v9880_v61 = vpop.f32.mrb[128].mxu0 }
 0xfc5   : > { %v8344_v11 = vadd.f32 %v9880_v61, %v12969_v7  ;;  %v8256_v30 = vpop.f32.mrb[129].mxu0 }
 0xfc6   : > { %v8342_v54 = vadd.f32 %v12969_v7, %v8256_v30  ;;  %v9881_v46 = vpop.f32.mrb[130].mxu0 }
 0xfc7   : > { %v8360_v0 = vadd.f32 %v10336_v19, %v8344_v11  ;;  %v8345_v59 = vadd.f32 %v9881_v46, %v12969_v7  ;;  %v8259_v8 = vpop.f32.mrb[131].mxu0 }
 0xfc8   : > { %v8358_v31 = vadd.f32 %v10337_v16, %v8342_v54  ;;  %v8343_v29 = vadd.f32 %v12969_v7, %v8259_v8 }
 0xfc9   : > { %8376 = vst.msk [vmem:[%s12979_s19 + $0x10] sm:$0xff] %vm348_vm0, %v8360_v0  ;;  %v8361_v48 = vadd.f32 %v10338_v34, %v8345_v59 }
 0xfca   : > { %8374 = vst.msk [vmem:[%s12979_s19] sm:$0xff] %vm348_vm0, %v8358_v31  ;;  %v8359_v36 = vadd.f32 %v10339_v43, %v8343_v29 }
 0xfcb   : > { %8377 = vst.msk [vmem:[%s12979_s19 + $0x18] sm:$0xff] %vm348_vm0, %v8361_v48 }
 0xfcc   : > { %8375 = vst.msk [vmem:[%s12979_s19 + $0x8] sm:$0xff] %vm348_vm0, %v8359_v36 }
0x1072   : > { %v9884_v42 = vpop.f32.mrb[132].mxu0 }
0x1073   : > { %v8348_v1 = vadd.f32 %v9884_v42, %v12969_v7  ;;  %v8272_v3 = vpop.f32.mrb[133].mxu0 }
0x1074   : > { %v8346_v40 = vadd.f32 %v12969_v7, %v8272_v3  ;;  %v9885_v21 = vpop.f32.mrb[134].mxu0 }
0x1075   : > { %v8364_v15 = vadd.f32 %v10340_v39, %v8348_v1  ;;  %v8349_v47 = vadd.f32 %v9885_v21, %v12969_v7  ;;  %v8275_v22 = vpop.f32.mrb[135].mxu0 }
0x1076   : > { %v8362_v45 = vadd.f32 %v10341_v63, %v8346_v40  ;;  %v8347_v38 = vadd.f32 %v12969_v7, %v8275_v22 }
0x1077   : > { %8380 = vst.msk [vmem:[%s12979_s19 + $0x30] sm:$0xff] %vm348_vm0, %v8364_v15  ;;  %v8365_v50 = vadd.f32 %v10342_v27, %v8349_v47 }
0x1078   : > { %8378 = vst.msk [vmem:[%s12979_s19 + $0x20] sm:$0xff] %vm348_vm0, %v8362_v45  ;;  %v8363_v58 = vadd.f32 %v10343_v14, %v8347_v38 }
0x1079   : > { %8381 = vst.msk [vmem:[%s12979_s19 + $0x38] sm:$0xff] %vm348_vm0, %v8365_v50 }
0x107a   : > { %8379 = vst.msk [vmem:[%s12979_s19 + $0x28] sm:$0xff] %vm348_vm0, %v8363_v58 }
0x1082   : > { %v9888_v4 = vpop.f32.mrb[136].mxu0 }
0x1083   : > { %v8352_v23 = vadd.f32 %v9888_v4, %v12969_v7  ;;  %v8288_v17 = vpop.f32.mrb[137].mxu0 }
0x1084   : > { %v8350_v2 = vadd.f32 %v12969_v7, %v8288_v17  ;;  %v9889_v24 = vpop.f32.mrb[138].mxu0 }
0x1085   : > { %v8368_v37 = vadd.f32 %v10344_v12, %v8352_v23  ;;  %v8353_v49 = vadd.f32 %v9889_v24, %v12969_v7  ;;  %v8291_v60 = vpop.f32.mrb[139].mxu0 }
0x1086   : > { %v8366_v53 = vadd.f32 %v10345_v6, %v8350_v2  ;;  %v8351_v20 = vadd.f32 %v12969_v7, %v8291_v60 }
0x1087   : > { %8384 = vst.msk [vmem:[%s12979_s19 + $0x50] sm:$0xff] %vm348_vm0, %v8368_v37  ;;  %v8369_v18 = vadd.f32 %v10346_v52, %v8353_v49 }
0x1088   : > { %8382 = vst.msk [vmem:[%s12979_s19 + $0x40] sm:$0xff] %vm348_vm0, %v8366_v53  ;;  %v8367_v13 = vadd.f32 %v10347_v28, %v8351_v20 }
0x1089   : > { %8385 = vst.msk [vmem:[%s12979_s19 + $0x58] sm:$0xff] %vm348_vm0, %v8369_v18 }
0x108a   : > { %8383 = vst.msk [vmem:[%s12979_s19 + $0x48] sm:$0xff] %vm348_vm0, %v8367_v13 }
0x1092   : > { %v9892_v57 = vpop.f32.mrb[140].mxu0 }
0x1093   : > { %v8356_v55 = vadd.f32 %v9892_v57, %v12969_v7  ;;  %v8304_v32 = vpop.f32.mrb[141].mxu0 }
0x1094   : > { %v8354_v33 = vadd.f32 %v12969_v7, %v8304_v32  ;;  %v9893_v35 = vpop.f32.mrb[142].mxu0 }
0x1095   : > { %v8372_v25 = vadd.f32 %v10348_v10, %v8356_v55  ;;  %v8357_v26 = vadd.f32 %v9893_v35, %v12969_v7  ;;  %v8307_v41 = vpop.f32.mrb[143].mxu0 }
0x1096   : > { %v8370_v51 = vadd.f32 %v10349_v44, %v8354_v33  ;;  %v8355_v5 = vadd.f32 %v12969_v7, %v8307_v41 }
0x1097   : > { %8388 = vst.msk [vmem:[%s12979_s19 + $0x70] sm:$0xff] %vm348_vm0, %v8372_v25  ;;  %v8373_v9 = vadd.f32 %v10350_v56, %v8357_v26 }
0x1098   : > { %8386 = vst.msk [vmem:[%s12979_s19 + $0x60] sm:$0xff] %vm348_vm0, %v8370_v51  ;;  %v8371_v61 = vadd.f32 %v10351_v62, %v8355_v5 }
0x1099   : > { %8389 = vst.msk [vmem:[%s12979_s19 + $0x78] sm:$0xff] %vm348_vm0, %v8373_v9 }
0x109a   : > { %8387 = vst.msk [vmem:[%s12979_s19 + $0x68] sm:$0xff] %vm348_vm0, %v8371_v61 }
0x109b   : > { %10479 = shalt.err (!%p10476_p13)
}
0x109c   : > { %s10480_s14 = scalar_lea.hbm %s13037_s26, 2048  ;;  %s10484_s16 = scalar_lea.hbm %s13096_s6, 4096 }
0x109d   : > { %p10481_p0 = scmp.ne.s32.totalorder %s13037_s26, %s10480_s14  ;;  %p10485_p9 = scmp.lt.u32.totalorder %s13037_s26, %s13096_s6 }
0x109e   : > { %p10486_p12 = scmp.lt.u32.totalorder %s10484_s16, %s10480_s14  ;;  %p10488_p1 = scmp.lt.u32.totalorder %s10480_s14, %s13037_s26 }
0x109f   : > { %p10482_p5 = pnand %p10481_p0, %p10739_p6 }
0x10a0   : > { %p10487_p2 = por %p10486_p12, %p10485_p9 }
0x10a1   : > { %p10483_p11 = pneg %p10482_p5 }
0x10a2   : > { %p10489_p4 = por %p10488_p1, %p10487_p2 }
0x10a4   : > { %p10490_p8 = pnand %p10489_p4, %p10483_p11 }
0x10a6   : > { %10493 = shalt.err (!%p10490_p8)
}
0x10a7   : > { %s10564_s9 = smov 128   ;;  %s10565_s25 = smov 8  }
0x10a8   : > { %9964 = dma.vmem_to_hbm [thread:$0]  (%p10739_p6), %s13039_s7, 2048, %s13037_s26, %s8391_s17, %s10564_s9, %s10564_s9, %s10565_s25  }
0x10a9 PF: > { %s8419_s8 = sand.u32 1, %s10528_s21   ;;  %p13131_p3 = scmp.ne.s32.totalorder %s13105_s28, 0 }
0x10aa   : > { %p13132_p7 = scmp.ge.s32.totalorder %s10540_s24, 2  ;;  %s8420_s30 = scalar_lea.sflag [#allocation4], %s8419_s8 }
0x10ac   : > { %p9981_p10 = pnand %p13132_p7, %p13131_p3 }
0x10ae   : > { %10523 = dma.done.wait (!%p9981_p10), %s8420_s30, 2048  }
0x10af   : > { %10525 = vsyncadd (!%p9981_p10), %s8420_s30, 4294965248  ;;  %p21_p13 = scmp.ge.s32.totalorder %s10725_s18, 4   ;;  %s13133_s21 = smov %s10532_s22 }
0x10b0   : > { %s13134_s22 = smov %s10536_s23  ;;  %s13135_s23 = smov %s10735_s11 }
0x10b1   : > { %s13136_s24 = smov %s10725_s18  ;;  %23 = sbr.rel (!%p21_p13) target bundleno = 7 (0x7), region = 104 }
0x10b8   :  { %8425 = vsyncpa [#allocation3], 1 }
0x10b9   :  { %8427 = vsyncpa [#allocation3 + $0x1], 1 }
0x10ba   :  { %8428 = vsyncpa [#allocation6], 1 }
0x10bb   :  { %8429 = vsyncpa [#allocation9], 1 }
0x10bc   :  { %8430 = vsyncpa [#allocation4], 1 }
0x10bd   :  { %8432 = vsyncpa [#allocation4 + $0x1], 1 }

</bundles_post_ra>
